<compile_context>
chip_gen: v6e
topology: v6e:2x2x1
jax: 0.10.0
libtpu: 0.0.40
codegen_flags: <defaults>
</compile_context>

<pallas_src>
import functools

import jax
import jax.numpy as jnp
from jax.experimental import pallas as pl
from jax.experimental.pallas import tpu as pltpu

LANE = 128      # channel dims padded to multiples of this (lane-dense)
HALO_L = 16     # left halo width in a_buf: bf16 (16,128)-tile aligned interior


def _round_up(n, m=LANE):
    return ((n + m - 1) // m) * m


# ----------------------------------------------------------------------------
# Fused ResBottleneckBlock kernel (one grid step == one batch element)
# ----------------------------------------------------------------------------
def fused_block_kernel(*args, stride, Ho, Wo, cin_p, has_proj):
    (x_ref, a_w, a_sc, a_sh, bw_k, b_sc, b_sh,
     se_w1, se_b1, se_w2, se_b2, c_w, c_sc, c_sh) = args[:14]
    idx = 14
    if has_proj:
        pj_w, pj_sc, pj_sh = args[14:17]
        idx = 17
    o_ref, a_buf = args[idx], args[idx + 1]

    s = stride
    cb_p = a_w.shape[1]
    P = Ho * Wo
    HL = HALO_L
    bf16 = jnp.bfloat16

    xb = x_ref[...]                                    # (Ho, s, Wo, s*cin_p) f32

    def x_phase(rp, cp):
        return xb[:, rp, :, cp * cin_p:(cp + 1) * cin_p]       # (Ho, Wo, cin_p)

    # --- a: 1x1 conv + BN + ReLU; all s*s spatial phases in ONE MXU matmul ---
    phases = [x_phase(rp, cp).reshape(P, cin_p).astype(bf16)
              for rp in range(s) for cp in range(s)]
    xm = phases[0] if s == 1 else jnp.concatenate(phases, axis=0)
    a_all = jnp.dot(xm, a_w[...], preferred_element_type=jnp.float32)
    a_all = jnp.maximum(a_all * a_sc[...] + a_sh[...], 0.0).astype(bf16)

    # Zero only the 1-pixel halo border the taps actually read (the interior
    # is fully overwritten every step; safe per-step on any core count).
    Wt = a_buf.shape[2]
    zrow = jnp.zeros((1, Wt, cb_p), bf16)
    zcol = jnp.zeros((Ho + 2, 1, cb_p), bf16)
    for ph in range(s * s):
        a_buf[ph, 0:1, :, :] = zrow
        a_buf[ph, Ho + 1:Ho + 2, :, :] = zrow
        a_buf[ph, :, HL - 1:HL, :] = zcol
        a_buf[ph, :, HL + Wo:HL + Wo + 1, :] = zcol
        a_buf[ph, 1:Ho + 1, HL:HL + Wo, :] = (
            a_all[ph * P:(ph + 1) * P].reshape(Ho, Wo, cb_p))

    # --- b: 3x3 grouped conv (stride s) + BN + ReLU --------------------------
    # Tap (di, dj) of the stride-s conv reads a[s*oh + di - 1, s*ow + dj - 1];
    # with di - 1 = s*ro + rp this is a static window of the (rp, cp) phase
    # buffer shifted by (ro, co) into the halo.  im2col along K: one matmul
    # accumulates all 9 taps on the MXU.
    taps = []
    for di in range(3):
        ro, rp = divmod(di - 1, s)
        for dj in range(3):
            co, cp = divmod(dj - 1, s)
            taps.append(a_buf[rp * s + cp,
                              1 + ro:1 + ro + Ho,
                              HL + co:HL + co + Wo, :].reshape(P, cb_p))
    patches = jnp.concatenate(taps, axis=-1)                 # (P, 9*cb_p) bf16
    acc = jnp.dot(patches, bw_k[...], preferred_element_type=jnp.float32)
    yb = jnp.maximum(acc * b_sc[...] + b_sh[...], 0.0)        # (P, cb_p) f32

    # --- SE: global-average-pool channel gate (fused) -------------------------
    pooled = jnp.mean(yb, axis=0, keepdims=True)              # (1, cb_p)
    h = jnp.maximum(
        jnp.dot(pooled.astype(bf16), se_w1[...],
                preferred_element_type=jnp.float32) + se_b1[...], 0.0)
    gate = jax.nn.sigmoid(
        jnp.dot(h.astype(bf16), se_w2[...],
                preferred_element_type=jnp.float32) + se_b2[...])
    yse = (yb * gate).astype(bf16)

    # --- c: 1x1 conv + BN (no ReLU) -------------------------------------------
    f = (jnp.dot(yse, c_w[...], preferred_element_type=jnp.float32)
         * c_sc[...] + c_sh[...])                             # (P, cout_p) f32

    # --- shortcut (optional proj 1x1 stride-s conv + BN) + add + ReLU ---------
    x00 = x_phase(0, 0).reshape(P, cin_p)                     # f32
    if has_proj:
        sc = (jnp.dot(x00.astype(bf16), pj_w[...],
                      preferred_element_type=jnp.float32)
              * pj_sc[...] + pj_sh[...])
    else:
        sc = x00                                              # cin_p == cout_p
    out = jnp.maximum(sc + f, 0.0)
    o_ref[0] = out.reshape(Ho, Wo, o_ref.shape[-1]).astype(o_ref.dtype)


# ----------------------------------------------------------------------------
# Wrapper: one pallas_call per block (channels stay LANE-padded across blocks)
# ----------------------------------------------------------------------------
def _rep_spec(shape):
    nd = len(shape)
    return pl.BlockSpec(shape, lambda n, _nd=nd: (0,) * _nd)


def _pad2(w, r, c):
    return jnp.pad(w, ((0, r - w.shape[0]), (0, c - w.shape[1])))


def _padv(v, c):
    return jnp.pad(v, ((0, c - v.shape[0]),)).reshape(1, c).astype(jnp.float32)


def res_bottleneck_block(x, p):
    # x: (N, H, W, cin_p) NHWC, channels already zero-padded to LANE multiple.
    N, H, W, cin_p = x.shape
    s = p['stride']
    assert H % s == 0 and W % s == 0, 'spatial dims must divide the stride'
    Ho, Wo = H // s, W // s
    cin = p['a_w'].shape[0]
    cb = p['a_w'].shape[1]
    cout = p['c_w'].shape[1]
    w_se = p['se_w1'].shape[1]
    groups = p['groups']
    cing = cb // groups
    cb_p, cout_p, wse_p = _round_up(cb), _round_up(cout), _round_up(w_se)
    assert cin_p == _round_up(cin)
    if not p['proj']:
        assert cin == cout and cin_p == cout_p, 'identity shortcut needs cin==cout'

    bf16 = jnp.bfloat16

    # bf16 MXU operands (f32 accumulation in-kernel); zero-padded to LANE.
    a_w = _pad2(p['a_w'], cin_p, cb_p).astype(bf16)
    c_w = _pad2(p['c_w'], cb_p, cout_p).astype(bf16)
    se_w1 = _pad2(p['se_w1'], cb_p, wse_p).astype(bf16)
    se_w2 = _pad2(p['se_w2'], wse_p, cb_p).astype(bf16)

    # Grouped 3x3 conv -> dense block-diagonal per-tap weights laid out as one
    # (9*cb_p, cb_p) im2col weight: all 9 taps accumulate inside one matmul.
    # TODO(synk): at production group counts pack groups into 128/256-lane
    # tiles instead of a fully dense block-diagonal weight.
    w3 = p['b_w'].reshape(groups, 9, cing, cing)
    bw = jnp.zeros((9, cb_p, cb_p), jnp.float32)
    for g in range(groups):
        bw = bw.at[:, g * cing:(g + 1) * cing,
                   g * cing:(g + 1) * cing].set(w3[g])
    bw_k = bw.reshape(9 * cb_p, cb_p).astype(bf16)

    # Phase-decomposed input: element (n*Ho+oh, rp, ow, cp*cin_p+c) =
    # x[n, oh*s+rp, ow*s+cp, c] -- a free row-major reshape, no HBM pad.
    inputs = [
        x.reshape(N * Ho, s, Wo, s * cin_p),
        a_w, _padv(p['a_scale'], cb_p), _padv(p['a_shift'], cb_p),
        bw_k, _padv(p['b_scale'], cb_p), _padv(p['b_shift'], cb_p),
        se_w1, _padv(p['se_b1'], wse_p),
        se_w2, _padv(p['se_b2'], cb_p),
        c_w, _padv(p['c_scale'], cout_p), _padv(p['c_shift'], cout_p),
    ]
    in_specs = [pl.BlockSpec((Ho, s, Wo, s * cin_p), lambda n: (n, 0, 0, 0))]
    in_specs += [_rep_spec(a.shape) for a in inputs[1:]]

    if p['proj']:
        proj_in = [_pad2(p['proj_w'], cin_p, cout_p).astype(bf16),
                   _padv(p['proj_scale'], cout_p),
                   _padv(p['proj_shift'], cout_p)]
        inputs += proj_in
        in_specs += [_rep_spec(a.shape) for a in proj_in]

    # TODO(synk): single-buffer the replicated weight specs (pl.Buffered(1))
    # and add a spatial row-tile grid axis (two-pass SE) for production shapes.
    kernel = functools.partial(fused_block_kernel, stride=s, Ho=Ho, Wo=Wo,
                               cin_p=cin_p, has_proj=p['proj'])
    return pl.pallas_call(
        kernel,
        out_shape=jax.ShapeDtypeStruct((N, Ho, Wo, cout_p), x.dtype),
        grid=(N,),
        in_specs=in_specs,
        out_specs=pl.BlockSpec((1, Ho, Wo, cout_p), lambda n: (n, 0, 0, 0)),
        scratch_shapes=[pltpu.VMEM((s * s, Ho + 2, Wo + HALO_L + 1, cb_p),
                                   jnp.bfloat16)],
        compiler_params=pltpu.CompilerParams(
            dimension_semantics=("parallel",),
            vmem_limit_bytes=64 * 1024 * 1024),
    )(*inputs)


def any_stage(x_nchw, params_list):
    # NCHW at the API boundary (PyTorch); NHWC + LANE-padded channels inside.
    x = jnp.transpose(x_nchw, (0, 2, 3, 1))
    cin = x.shape[-1]
    x = jnp.pad(x, ((0, 0), (0, 0), (0, 0), (0, _round_up(cin) - cin)))
    for p in params_list:
        x = res_bottleneck_block(x, p)
    cout = params_list[-1]['c_w'].shape[1]
    x = x[..., :cout]
    return jnp.transpose(x, (0, 3, 1, 2))


# ----------------------------------------------------------------------------
# Deterministic parameter init (synthetic; shapes follow pycls BottleneckBlock)
# ----------------------------------------------------------------------------
def _fold_bn(gamma, beta, mean, var, eps=1e-5):
    scale = gamma / jnp.sqrt(var + eps)
    return scale, beta - mean * scale


def _init_bn(key, c):
    k1, k2 = jax.random.split(key)
    gamma = 1.0 + 0.1 * jax.random.normal(k1, (c,), jnp.float32)
    beta = 0.1 * jax.random.normal(k2, (c,), jnp.float32)
    return _fold_bn(gamma, beta, jnp.zeros((c,), jnp.float32),
                    jnp.ones((c,), jnp.float32))


def init_block(key, w_in, w_out, stride, bm, gw, se_r):
    w_b = int(round(w_out * bm))
    groups = w_b // gw
    w_se = int(round(w_in * se_r))
    cing, coutg = w_b // groups, w_b // groups
    ks = jax.random.split(key, 12)
    p = {'stride': stride, 'groups': groups,
         'proj': (w_in != w_out) or (stride != 1)}
    if p['proj']:
        p['proj_w'] = 0.2 * jax.random.normal(ks[0], (w_in, w_out), jnp.float32)
        p['proj_scale'], p['proj_shift'] = _init_bn(ks[1], w_out)
    p['a_w'] = 0.2 * jax.random.normal(ks[2], (w_in, w_b), jnp.float32)
    p['a_scale'], p['a_shift'] = _init_bn(ks[3], w_b)
    p['b_w'] = 0.2 * jax.random.normal(ks[4], (groups * 9, cing, coutg),
                                       jnp.float32)
    p['b_scale'], p['b_shift'] = _init_bn(ks[5], w_b)
    p['se_w1'] = 0.2 * jax.random.normal(ks[6], (w_b, w_se), jnp.float32)
    p['se_b1'] = 0.1 * jax.random.normal(ks[7], (w_se,), jnp.float32)
    p['se_w2'] = 0.2 * jax.random.normal(ks[8], (w_se, w_b), jnp.float32)
    p['se_b2'] = 0.1 * jax.random.normal(ks[9], (w_b,), jnp.float32)
    p['c_w'] = 0.2 * jax.random.normal(ks[10], (w_b, w_out), jnp.float32)
    p['c_scale'], p['c_shift'] = _init_bn(ks[11], w_out)
    return p


# ----------------------------------------------------------------------------
# Pure-JAX reference (mirrors the kernel's bf16 matmul operands / f32 accum)
# ----------------------------------------------------------------------------
def _bf16(x):
    return x.astype(jnp.bfloat16)


def _ref_pointwise(x, w, scale, shift, relu):
    y = jnp.einsum('nhwc,cd->nhwd', _bf16(x), _bf16(w),
                   preferred_element_type=jnp.float32) * scale + shift
    return jnp.maximum(y, 0.0) if relu else y


def _ref_conv3x3(x, w3, scale, shift, groups, stride):
    cing, coutg = w3.shape[1], w3.shape[2]
    w = w3.reshape(groups, 3, 3, cing, coutg)
    w = jnp.transpose(w, (1, 2, 3, 0, 4)).reshape(3, 3, cing, groups * coutg)
    y = jax.lax.conv_general_dilated(
        _bf16(x), _bf16(w), (stride, stride), ((1, 1), (1, 1)),
        dimension_numbers=('NHWC', 'HWIO', 'NHWC'),
        feature_group_count=groups,
        preferred_element_type=jnp.float32)
    return jnp.maximum(y * scale + shift, 0.0)


def _ref_se(x, w1, b1, w2, b2):
    pooled = jnp.mean(x, axis=(1, 2), keepdims=True)
    h = jnp.maximum(jnp.einsum('nhwc,cd->nhwd', _bf16(pooled), _bf16(w1),
                               preferred_element_type=jnp.float32) + b1, 0.0)
    gate = jax.nn.sigmoid(jnp.einsum('nhwc,cd->nhwd', _bf16(h), _bf16(w2),
                                     preferred_element_type=jnp.float32) + b2)
    return x * gate


def _ref_block(x, p):
    s = p['stride']
    a = _ref_pointwise(x, p['a_w'], p['a_scale'], p['a_shift'], True)
    b = _ref_conv3x3(a, p['b_w'], p['b_scale'], p['b_shift'], p['groups'], s)
    b = _ref_se(b, p['se_w1'], p['se_b1'], p['se_w2'], p['se_b2'])
    f = _ref_pointwise(b, p['c_w'], p['c_scale'], p['c_shift'], False)
    if p['proj']:
        xs = x[:, ::s, ::s, :] if s > 1 else x
        sc = _ref_pointwise(xs, p['proj_w'], p['proj_scale'],
                            p['proj_shift'], False)
    else:
        sc = x
    return jnp.maximum(sc + f, 0.0)


def _ref_stage(x_nchw, params_list):
    x = jnp.transpose(x_nchw, (0, 2, 3, 1))
    for p in params_list:
        x = _ref_block(x, p)
    return jnp.transpose(x, (0, 3, 1, 2))


# ----------------------------------------------------------------------------
if __name__ == "__main__":
    key = jax.random.PRNGKey(0)
    kx, kp = jax.random.split(key)

    # AnyStage(w_in=4, w_out=8, stride=2, d=2, block_fun=ResBottleneckBlock,
    #          bm=1.0, gw=4, se_r=0.5)
    w_in, w_out, stride, d, bm, gw, se_r = 4, 8, 2, 2, 1.0, 4, 0.5

    x = jax.random.normal(kx, (2, w_in, 16, 16), jnp.float32)  # NCHW

    params = []
    bkeys = jax.random.split(kp, d)
    for i in range(d):
        b_stride = stride if i == 0 else 1
        b_w_in = w_in if i == 0 else w_out
        params.append(init_block(bkeys[i], b_w_in, w_out, b_stride, bm, gw,
                                 se_r))

    out = any_stage(x, params)
    out = jax.block_until_ready(out)

    assert out.shape == (2, w_out, 16 // stride, 16 // stride), out.shape
    ref = _ref_stage(x, params)
    err = float(jnp.max(jnp.abs(out - ref)))
    assert jnp.allclose(out, ref, atol=2e-3, rtol=2e-3), err

    print("KERNEL_OK")
</pallas_src>

<mosaic_0001>
module attributes {stable_mosaic.version = 11 : i64} {
  func.func @fused_block_kernel(%arg0: i32, %arg1: memref<8x2x8x256xf32, #tpu.memory_space<vmem>>, %arg2: memref<128x128xbf16, #tpu.memory_space<vmem>>, %arg3: memref<1x128xf32, #tpu.memory_space<vmem>>, %arg4: memref<1x128xf32, #tpu.memory_space<vmem>>, %arg5: memref<1152x128xbf16, #tpu.memory_space<vmem>>, %arg6: memref<1x128xf32, #tpu.memory_space<vmem>>, %arg7: memref<1x128xf32, #tpu.memory_space<vmem>>, %arg8: memref<128x128xbf16, #tpu.memory_space<vmem>>, %arg9: memref<1x128xf32, #tpu.memory_space<vmem>>, %arg10: memref<128x128xbf16, #tpu.memory_space<vmem>>, %arg11: memref<1x128xf32, #tpu.memory_space<vmem>>, %arg12: memref<128x128xbf16, #tpu.memory_space<vmem>>, %arg13: memref<1x128xf32, #tpu.memory_space<vmem>>, %arg14: memref<1x128xf32, #tpu.memory_space<vmem>>, %arg15: memref<128x128xbf16, #tpu.memory_space<vmem>>, %arg16: memref<1x128xf32, #tpu.memory_space<vmem>>, %arg17: memref<1x128xf32, #tpu.memory_space<vmem>>, %arg18: memref<1x8x8x128xf32, #tpu.memory_space<vmem>>, %arg19: memref<4x10x25x128xbf16, #tpu.memory_space<vmem>>) attributes {dimension_semantics = [#tpu.dimension_semantics<parallel>], iteration_bounds = array<i64: 2>, scalar_prefetch = 0 : i64, scratch_operands = 1 : i64, tpu.core_type = #tpu.core_type<tc>, window_params = [{transform_indices = @transform_0, window_bounds = array<i64: 8, 2, 8, 256>}, {pipeline_mode = #tpu.pipeline_mode<synchronous>, transform_indices = @transform_1, window_bounds = array<i64: 128, 128>}, {pipeline_mode = #tpu.pipeline_mode<synchronous>, transform_indices = @transform_2, window_bounds = array<i64: 1, 128>}, {pipeline_mode = #tpu.pipeline_mode<synchronous>, transform_indices = @transform_3, window_bounds = array<i64: 1, 128>}, {pipeline_mode = #tpu.pipeline_mode<synchronous>, transform_indices = @transform_4, window_bounds = array<i64: 1152, 128>}, {pipeline_mode = #tpu.pipeline_mode<synchronous>, transform_indices = @transform_5, window_bounds = array<i64: 1, 128>}, {pipeline_mode = #tpu.pipeline_mode<synchronous>, transform_indices = @transform_6, window_bounds = array<i64: 1, 128>}, {pipeline_mode = #tpu.pipeline_mode<synchronous>, transform_indices = @transform_7, window_bounds = array<i64: 128, 128>}, {pipeline_mode = #tpu.pipeline_mode<synchronous>, transform_indices = @transform_8, window_bounds = array<i64: 1, 128>}, {pipeline_mode = #tpu.pipeline_mode<synchronous>, transform_indices = @transform_9, window_bounds = array<i64: 128, 128>}, {pipeline_mode = #tpu.pipeline_mode<synchronous>, transform_indices = @transform_10, window_bounds = array<i64: 1, 128>}, {pipeline_mode = #tpu.pipeline_mode<synchronous>, transform_indices = @transform_11, window_bounds = array<i64: 128, 128>}, {pipeline_mode = #tpu.pipeline_mode<synchronous>, transform_indices = @transform_12, window_bounds = array<i64: 1, 128>}, {pipeline_mode = #tpu.pipeline_mode<synchronous>, transform_indices = @transform_13, window_bounds = array<i64: 1, 128>}, {pipeline_mode = #tpu.pipeline_mode<synchronous>, transform_indices = @transform_14, window_bounds = array<i64: 128, 128>}, {pipeline_mode = #tpu.pipeline_mode<synchronous>, transform_indices = @transform_15, window_bounds = array<i64: 1, 128>}, {pipeline_mode = #tpu.pipeline_mode<synchronous>, transform_indices = @transform_16, window_bounds = array<i64: 1, 128>}, {transform_indices = @transform_17, window_bounds = array<i64: 1, 8, 8, 128>}]} {
    %c0 = arith.constant 0 : index
    %c0_0 = arith.constant 0 : index
    %c0_1 = arith.constant 0 : index
    %c0_2 = arith.constant 0 : index
    %0 = vector.load %arg1[%c0, %c0_0, %c0_1, %c0_2] : memref<8x2x8x256xf32, #tpu.memory_space<vmem>>, vector<8x2x8x256xf32>
    %1 = vector.extract_strided_slice %0 {offsets = [0, 0, 0, 0], sizes = [8, 1, 8, 128], strides = [1, 1, 1, 1]} : vector<8x2x8x256xf32> to vector<8x1x8x128xf32>
    %2 = vector.shape_cast %1 : vector<8x1x8x128xf32> to vector<8x8x128xf32>
    %3 = vector.shape_cast %2 : vector<8x8x128xf32> to vector<64x128xf32>
    %4 = arith.truncf %3 : vector<64x128xf32> to vector<64x128xbf16>
    %5 = vector.extract_strided_slice %0 {offsets = [0, 0, 0, 128], sizes = [8, 1, 8, 128], strides = [1, 1, 1, 1]} : vector<8x2x8x256xf32> to vector<8x1x8x128xf32>
    %6 = vector.shape_cast %5 : vector<8x1x8x128xf32> to vector<8x8x128xf32>
    %7 = vector.shape_cast %6 : vector<8x8x128xf32> to vector<64x128xf32>
    %8 = arith.truncf %7 : vector<64x128xf32> to vector<64x128xbf16>
    %9 = vector.extract_strided_slice %0 {offsets = [0, 1, 0, 0], sizes = [8, 1, 8, 128], strides = [1, 1, 1, 1]} : vector<8x2x8x256xf32> to vector<8x1x8x128xf32>
    %10 = vector.shape_cast %9 : vector<8x1x8x128xf32> to vector<8x8x128xf32>
    %11 = vector.shape_cast %10 : vector<8x8x128xf32> to vector<64x128xf32>
    %12 = arith.truncf %11 : vector<64x128xf32> to vector<64x128xbf16>
    %13 = vector.extract_strided_slice %0 {offsets = [0, 1, 0, 128], sizes = [8, 1, 8, 128], strides = [1, 1, 1, 1]} : vector<8x2x8x256xf32> to vector<8x1x8x128xf32>
    %14 = vector.shape_cast %13 : vector<8x1x8x128xf32> to vector<8x8x128xf32>
    %15 = vector.shape_cast %14 : vector<8x8x128xf32> to vector<64x128xf32>
    %16 = arith.truncf %15 : vector<64x128xf32> to vector<64x128xbf16>
    %17 = tpu.concatenate %4, %8, %12, %16 in 0 : vector<64x128xbf16>, vector<64x128xbf16>, vector<64x128xbf16>, vector<64x128xbf16> -> vector<256x128xbf16>
    %c0_3 = arith.constant 0 : index
    %c0_4 = arith.constant 0 : index
    %18 = vector.load %arg2[%c0_3, %c0_4] : memref<128x128xbf16, #tpu.memory_space<vmem>>, vector<128x128xbf16>
    %cst = arith.constant dense<0.000000e+00> : vector<256x128xf32>
    %19 = tpu.matmul %17, %18, %cst {dimension_numbers = #tpu.dot_dimension_numbers<[1], [0], [0], [1], [0, 0, 1, 1], [], []>} : vector<256x128xbf16>, vector<128x128xbf16>, vector<256x128xf32> -> vector<256x128xf32>
    %c0_5 = arith.constant 0 : index
    %c0_6 = arith.constant 0 : index
    %20 = vector.load %arg3[%c0_5, %c0_6] : memref<1x128xf32, #tpu.memory_space<vmem>>, vector<1x128xf32>
    %21 = vector.broadcast %20 : vector<1x128xf32> to vector<256x128xf32>
    %22 = arith.mulf %19, %21 : vector<256x128xf32>
    %c0_7 = arith.constant 0 : index
    %c0_8 = arith.constant 0 : index
    %23 = vector.load %arg4[%c0_7, %c0_8] : memref<1x128xf32, #tpu.memory_space<vmem>>, vector<1x128xf32>
    %24 = vector.broadcast %23 : vector<1x128xf32> to vector<256x128xf32>
    %25 = arith.addf %22, %24 : vector<256x128xf32>
    %cst_9 = arith.constant 0.000000e+00 : f32
    %26 = vector.broadcast %cst_9 : f32 to vector<256x128xf32>
    %27 = arith.maximumf %25, %26 : vector<256x128xf32>
    %28 = arith.truncf %27 : vector<256x128xf32> to vector<256x128xbf16>
    %cst_10 = arith.constant 0.000000e+00 : bf16
    %29 = vector.broadcast %cst_10 : bf16 to vector<1x25x128xbf16>
    %cst_11 = arith.constant 0.000000e+00 : bf16
    %30 = vector.broadcast %cst_11 : bf16 to vector<10x1x128xbf16>
    %c0_12 = arith.constant 0 : index
    %c0_13 = arith.constant 0 : index
    %c0_14 = arith.constant 0 : index
    %c0_15 = arith.constant 0 : index
    %31 = vector.load %arg19[%c0_12, %c0_13, %c0_14, %c0_15] : memref<4x10x25x128xbf16, #tpu.memory_space<vmem>>, vector<1x1x25x128xbf16>
    %32 = vector.shape_cast %31 : vector<1x1x25x128xbf16> to vector<1x25x128xbf16>
    %33 = vector.shape_cast %29 : vector<1x25x128xbf16> to vector<1x1x25x128xbf16>
    tpu.vector_store %arg19[%c0_12, %c0_13, %c0_14, %c0_15], %33 {strides = array<i32>} : memref<4x10x25x128xbf16, #tpu.memory_space<vmem>>, vector<1x1x25x128xbf16>,
    %c0_16 = arith.constant 0 : index
    %c9 = arith.constant 9 : index
    %c0_17 = arith.constant 0 : index
    %c0_18 = arith.constant 0 : index
    %34 = vector.load %arg19[%c0_16, %c9, %c0_17, %c0_18] : memref<4x10x25x128xbf16, #tpu.memory_space<vmem>>, vector<1x1x25x128xbf16>
    %35 = vector.shape_cast %34 : vector<1x1x25x128xbf16> to vector<1x25x128xbf16>
    %36 = vector.shape_cast %29 : vector<1x25x128xbf16> to vector<1x1x25x128xbf16>
    tpu.vector_store %arg19[%c0_16, %c9, %c0_17, %c0_18], %36 {strides = array<i32>} : memref<4x10x25x128xbf16, #tpu.memory_space<vmem>>, vector<1x1x25x128xbf16>,
    %c0_19 = arith.constant 0 : index
    %c0_20 = arith.constant 0 : index
    %c15 = arith.constant 15 : index
    %c0_21 = arith.constant 0 : index
    %37 = vector.load %arg19[%c0_19, %c0_20, %c15, %c0_21] : memref<4x10x25x128xbf16, #tpu.memory_space<vmem>>, vector<1x10x1x128xbf16>
    %38 = vector.shape_cast %37 : vector<1x10x1x128xbf16> to vector<10x1x128xbf16>
    %39 = vector.shape_cast %30 : vector<10x1x128xbf16> to vector<1x10x1x128xbf16>
    tpu.vector_store %arg19[%c0_19, %c0_20, %c15, %c0_21], %39 {strides = array<i32>} : memref<4x10x25x128xbf16, #tpu.memory_space<vmem>>, vector<1x10x1x128xbf16>,
    %c0_22 = arith.constant 0 : index
    %c0_23 = arith.constant 0 : index
    %c24 = arith.constant 24 : index
    %c0_24 = arith.constant 0 : index
    %40 = vector.load %arg19[%c0_22, %c0_23, %c24, %c0_24] : memref<4x10x25x128xbf16, #tpu.memory_space<vmem>>, vector<1x10x1x128xbf16>
    %41 = vector.shape_cast %40 : vector<1x10x1x128xbf16> to vector<10x1x128xbf16>
    %42 = vector.shape_cast %30 : vector<10x1x128xbf16> to vector<1x10x1x128xbf16>
    tpu.vector_store %arg19[%c0_22, %c0_23, %c24, %c0_24], %42 {strides = array<i32>} : memref<4x10x25x128xbf16, #tpu.memory_space<vmem>>, vector<1x10x1x128xbf16>,
    %43 = vector.extract_strided_slice %28 {offsets = [0, 0], sizes = [64, 128], strides = [1, 1]} : vector<256x128xbf16> to vector<64x128xbf16>
    %44 = vector.shape_cast %43 : vector<64x128xbf16> to vector<8x8x128xbf16>
    %c0_25 = arith.constant 0 : index
    %c1 = arith.constant 1 : index
    %c16 = arith.constant 16 : index
    %c0_26 = arith.constant 0 : index
    %45 = vector.load %arg19[%c0_25, %c1, %c16, %c0_26] : memref<4x10x25x128xbf16, #tpu.memory_space<vmem>>, vector<1x8x8x128xbf16>
    %46 = vector.shape_cast %45 : vector<1x8x8x128xbf16> to vector<8x8x128xbf16>
    %47 = vector.shape_cast %44 : vector<8x8x128xbf16> to vector<1x8x8x128xbf16>
    tpu.vector_store %arg19[%c0_25, %c1, %c16, %c0_26], %47 {strides = array<i32>} : memref<4x10x25x128xbf16, #tpu.memory_space<vmem>>, vector<1x8x8x128xbf16>,
    %c1_27 = arith.constant 1 : index
    %c0_28 = arith.constant 0 : index
    %c0_29 = arith.constant 0 : index
    %c0_30 = arith.constant 0 : index
    %48 = vector.load %arg19[%c1_27, %c0_28, %c0_29, %c0_30] : memref<4x10x25x128xbf16, #tpu.memory_space<vmem>>, vector<1x1x25x128xbf16>
    %49 = vector.shape_cast %48 : vector<1x1x25x128xbf16> to vector<1x25x128xbf16>
    %50 = vector.shape_cast %29 : vector<1x25x128xbf16> to vector<1x1x25x128xbf16>
    tpu.vector_store %arg19[%c1_27, %c0_28, %c0_29, %c0_30], %50 {strides = array<i32>} : memref<4x10x25x128xbf16, #tpu.memory_space<vmem>>, vector<1x1x25x128xbf16>,
    %c1_31 = arith.constant 1 : index
    %c9_32 = arith.constant 9 : index
    %c0_33 = arith.constant 0 : index
    %c0_34 = arith.constant 0 : index
    %51 = vector.load %arg19[%c1_31, %c9_32, %c0_33, %c0_34] : memref<4x10x25x128xbf16, #tpu.memory_space<vmem>>, vector<1x1x25x128xbf16>
    %52 = vector.shape_cast %51 : vector<1x1x25x128xbf16> to vector<1x25x128xbf16>
    %53 = vector.shape_cast %29 : vector<1x25x128xbf16> to vector<1x1x25x128xbf16>
    tpu.vector_store %arg19[%c1_31, %c9_32, %c0_33, %c0_34], %53 {strides = array<i32>} : memref<4x10x25x128xbf16, #tpu.memory_space<vmem>>, vector<1x1x25x128xbf16>,
    %c1_35 = arith.constant 1 : index
    %c0_36 = arith.constant 0 : index
    %c15_37 = arith.constant 15 : index
    %c0_38 = arith.constant 0 : index
    %54 = vector.load %arg19[%c1_35, %c0_36, %c15_37, %c0_38] : memref<4x10x25x128xbf16, #tpu.memory_space<vmem>>, vector<1x10x1x128xbf16>
    %55 = vector.shape_cast %54 : vector<1x10x1x128xbf16> to vector<10x1x128xbf16>
    %56 = vector.shape_cast %30 : vector<10x1x128xbf16> to vector<1x10x1x128xbf16>
    tpu.vector_store %arg19[%c1_35, %c0_36, %c15_37, %c0_38], %56 {strides = array<i32>} : memref<4x10x25x128xbf16, #tpu.memory_space<vmem>>, vector<1x10x1x128xbf16>,
    %c1_39 = arith.constant 1 : index
    %c0_40 = arith.constant 0 : index
    %c24_41 = arith.constant 24 : index
    %c0_42 = arith.constant 0 : index
    %57 = vector.load %arg19[%c1_39, %c0_40, %c24_41, %c0_42] : memref<4x10x25x128xbf16, #tpu.memory_space<vmem>>, vector<1x10x1x128xbf16>
    %58 = vector.shape_cast %57 : vector<1x10x1x128xbf16> to vector<10x1x128xbf16>
    %59 = vector.shape_cast %30 : vector<10x1x128xbf16> to vector<1x10x1x128xbf16>
    tpu.vector_store %arg19[%c1_39, %c0_40, %c24_41, %c0_42], %59 {strides = array<i32>} : memref<4x10x25x128xbf16, #tpu.memory_space<vmem>>, vector<1x10x1x128xbf16>,
    %60 = vector.extract_strided_slice %28 {offsets = [64, 0], sizes = [64, 128], strides = [1, 1]} : vector<256x128xbf16> to vector<64x128xbf16>
    %61 = vector.shape_cast %60 : vector<64x128xbf16> to vector<8x8x128xbf16>
    %c1_43 = arith.constant 1 : index
    %c1_44 = arith.constant 1 : index
    %c16_45 = arith.constant 16 : index
    %c0_46 = arith.constant 0 : index
    %62 = vector.load %arg19[%c1_43, %c1_44, %c16_45, %c0_46] : memref<4x10x25x128xbf16, #tpu.memory_space<vmem>>, vector<1x8x8x128xbf16>
    %63 = vector.shape_cast %62 : vector<1x8x8x128xbf16> to vector<8x8x128xbf16>
    %64 = vector.shape_cast %61 : vector<8x8x128xbf16> to vector<1x8x8x128xbf16>
    tpu.vector_store %arg19[%c1_43, %c1_44, %c16_45, %c0_46], %64 {strides = array<i32>} : memref<4x10x25x128xbf16, #tpu.memory_space<vmem>>, vector<1x8x8x128xbf16>,
    %c2 = arith.constant 2 : index
    %c0_47 = arith.constant 0 : index
    %c0_48 = arith.constant 0 : index
    %c0_49 = arith.constant 0 : index
    %65 = vector.load %arg19[%c2, %c0_47, %c0_48, %c0_49] : memref<4x10x25x128xbf16, #tpu.memory_space<vmem>>, vector<1x1x25x128xbf16>
    %66 = vector.shape_cast %65 : vector<1x1x25x128xbf16> to vector<1x25x128xbf16>
    %67 = vector.shape_cast %29 : vector<1x25x128xbf16> to vector<1x1x25x128xbf16>
    tpu.vector_store %arg19[%c2, %c0_47, %c0_48, %c0_49], %67 {strides = array<i32>} : memref<4x10x25x128xbf16, #tpu.memory_space<vmem>>, vector<1x1x25x128xbf16>,
    %c2_50 = arith.constant 2 : index
    %c9_51 = arith.constant 9 : index
    %c0_52 = arith.constant 0 : index
    %c0_53 = arith.constant 0 : index
    %68 = vector.load %arg19[%c2_50, %c9_51, %c0_52, %c0_53] : memref<4x10x25x128xbf16, #tpu.memory_space<vmem>>, vector<1x1x25x128xbf16>
    %69 = vector.shape_cast %68 : vector<1x1x25x128xbf16> to vector<1x25x128xbf16>
    %70 = vector.shape_cast %29 : vector<1x25x128xbf16> to vector<1x1x25x128xbf16>
    tpu.vector_store %arg19[%c2_50, %c9_51, %c0_52, %c0_53], %70 {strides = array<i32>} : memref<4x10x25x128xbf16, #tpu.memory_space<vmem>>, vector<1x1x25x128xbf16>,
    %c2_54 = arith.constant 2 : index
    %c0_55 = arith.constant 0 : index
    %c15_56 = arith.constant 15 : index
    %c0_57 = arith.constant 0 : index
    %71 = vector.load %arg19[%c2_54, %c0_55, %c15_56, %c0_57] : memref<4x10x25x128xbf16, #tpu.memory_space<vmem>>, vector<1x10x1x128xbf16>
    %72 = vector.shape_cast %71 : vector<1x10x1x128xbf16> to vector<10x1x128xbf16>
    %73 = vector.shape_cast %30 : vector<10x1x128xbf16> to vector<1x10x1x128xbf16>
    tpu.vector_store %arg19[%c2_54, %c0_55, %c15_56, %c0_57], %73 {strides = array<i32>} : memref<4x10x25x128xbf16, #tpu.memory_space<vmem>>, vector<1x10x1x128xbf16>,
    %c2_58 = arith.constant 2 : index
    %c0_59 = arith.constant 0 : index
    %c24_60 = arith.constant 24 : index
    %c0_61 = arith.constant 0 : index
    %74 = vector.load %arg19[%c2_58, %c0_59, %c24_60, %c0_61] : memref<4x10x25x128xbf16, #tpu.memory_space<vmem>>, vector<1x10x1x128xbf16>
    %75 = vector.shape_cast %74 : vector<1x10x1x128xbf16> to vector<10x1x128xbf16>
    %76 = vector.shape_cast %30 : vector<10x1x128xbf16> to vector<1x10x1x128xbf16>
    tpu.vector_store %arg19[%c2_58, %c0_59, %c24_60, %c0_61], %76 {strides = array<i32>} : memref<4x10x25x128xbf16, #tpu.memory_space<vmem>>, vector<1x10x1x128xbf16>,
    %77 = vector.extract_strided_slice %28 {offsets = [128, 0], sizes = [64, 128], strides = [1, 1]} : vector<256x128xbf16> to vector<64x128xbf16>
    %78 = vector.shape_cast %77 : vector<64x128xbf16> to vector<8x8x128xbf16>
    %c2_62 = arith.constant 2 : index
    %c1_63 = arith.constant 1 : index
    %c16_64 = arith.constant 16 : index
    %c0_65 = arith.constant 0 : index
    %79 = vector.load %arg19[%c2_62, %c1_63, %c16_64, %c0_65] : memref<4x10x25x128xbf16, #tpu.memory_space<vmem>>, vector<1x8x8x128xbf16>
    %80 = vector.shape_cast %79 : vector<1x8x8x128xbf16> to vector<8x8x128xbf16>
    %81 = vector.shape_cast %78 : vector<8x8x128xbf16> to vector<1x8x8x128xbf16>
    tpu.vector_store %arg19[%c2_62, %c1_63, %c16_64, %c0_65], %81 {strides = array<i32>} : memref<4x10x25x128xbf16, #tpu.memory_space<vmem>>, vector<1x8x8x128xbf16>,
    %c3 = arith.constant 3 : index
    %c0_66 = arith.constant 0 : index
    %c0_67 = arith.constant 0 : index
    %c0_68 = arith.constant 0 : index
    %82 = vector.load %arg19[%c3, %c0_66, %c0_67, %c0_68] : memref<4x10x25x128xbf16, #tpu.memory_space<vmem>>, vector<1x1x25x128xbf16>
    %83 = vector.shape_cast %82 : vector<1x1x25x128xbf16> to vector<1x25x128xbf16>
    %84 = vector.shape_cast %29 : vector<1x25x128xbf16> to vector<1x1x25x128xbf16>
    tpu.vector_store %arg19[%c3, %c0_66, %c0_67, %c0_68], %84 {strides = array<i32>} : memref<4x10x25x128xbf16, #tpu.memory_space<vmem>>, vector<1x1x25x128xbf16>,
    %c3_69 = arith.constant 3 : index
    %c9_70 = arith.constant 9 : index
    %c0_71 = arith.constant 0 : index
    %c0_72 = arith.constant 0 : index
    %85 = vector.load %arg19[%c3_69, %c9_70, %c0_71, %c0_72] : memref<4x10x25x128xbf16, #tpu.memory_space<vmem>>, vector<1x1x25x128xbf16>
    %86 = vector.shape_cast %85 : vector<1x1x25x128xbf16> to vector<1x25x128xbf16>
    %87 = vector.shape_cast %29 : vector<1x25x128xbf16> to vector<1x1x25x128xbf16>
    tpu.vector_store %arg19[%c3_69, %c9_70, %c0_71, %c0_72], %87 {strides = array<i32>} : memref<4x10x25x128xbf16, #tpu.memory_space<vmem>>, vector<1x1x25x128xbf16>,
    %c3_73 = arith.constant 3 : index
    %c0_74 = arith.constant 0 : index
    %c15_75 = arith.constant 15 : index
    %c0_76 = arith.constant 0 : index
    %88 = vector.load %arg19[%c3_73, %c0_74, %c15_75, %c0_76] : memref<4x10x25x128xbf16, #tpu.memory_space<vmem>>, vector<1x10x1x128xbf16>
    %89 = vector.shape_cast %88 : vector<1x10x1x128xbf16> to vector<10x1x128xbf16>
    %90 = vector.shape_cast %30 : vector<10x1x128xbf16> to vector<1x10x1x128xbf16>
    tpu.vector_store %arg19[%c3_73, %c0_74, %c15_75, %c0_76], %90 {strides = array<i32>} : memref<4x10x25x128xbf16, #tpu.memory_space<vmem>>, vector<1x10x1x128xbf16>,
    %c3_77 = arith.constant 3 : index
    %c0_78 = arith.constant 0 : index
    %c24_79 = arith.constant 24 : index
    %c0_80 = arith.constant 0 : index
    %91 = vector.load %arg19[%c3_77, %c0_78, %c24_79, %c0_80] : memref<4x10x25x128xbf16, #tpu.memory_space<vmem>>, vector<1x10x1x128xbf16>
    %92 = vector.shape_cast %91 : vector<1x10x1x128xbf16> to vector<10x1x128xbf16>
    %93 = vector.shape_cast %30 : vector<10x1x128xbf16> to vector<1x10x1x128xbf16>
    tpu.vector_store %arg19[%c3_77, %c0_78, %c24_79, %c0_80], %93 {strides = array<i32>} : memref<4x10x25x128xbf16, #tpu.memory_space<vmem>>, vector<1x10x1x128xbf16>,
    %94 = vector.extract_strided_slice %28 {offsets = [192, 0], sizes = [64, 128], strides = [1, 1]} : vector<256x128xbf16> to vector<64x128xbf16>
    %95 = vector.shape_cast %94 : vector<64x128xbf16> to vector<8x8x128xbf16>
    %c3_81 = arith.constant 3 : index
    %c1_82 = arith.constant 1 : index
    %c16_83 = arith.constant 16 : index
    %c0_84 = arith.constant 0 : index
    %96 = vector.load %arg19[%c3_81, %c1_82, %c16_83, %c0_84] : memref<4x10x25x128xbf16, #tpu.memory_space<vmem>>, vector<1x8x8x128xbf16>
    %97 = vector.shape_cast %96 : vector<1x8x8x128xbf16> to vector<8x8x128xbf16>
    %98 = vector.shape_cast %95 : vector<8x8x128xbf16> to vector<1x8x8x128xbf16>
    tpu.vector_store %arg19[%c3_81, %c1_82, %c16_83, %c0_84], %98 {strides = array<i32>} : memref<4x10x25x128xbf16, #tpu.memory_space<vmem>>, vector<1x8x8x128xbf16>,
    %c3_85 = arith.constant 3 : index
    %c0_86 = arith.constant 0 : index
    %c15_87 = arith.constant 15 : index
    %c0_88 = arith.constant 0 : index
    %99 = vector.load %arg19[%c3_85, %c0_86, %c15_87, %c0_88] : memref<4x10x25x128xbf16, #tpu.memory_space<vmem>>, vector<1x8x8x128xbf16>
    %100 = vector.shape_cast %99 : vector<1x8x8x128xbf16> to vector<8x8x128xbf16>
    %101 = vector.shape_cast %100 : vector<8x8x128xbf16> to vector<64x128xbf16>
    %c2_89 = arith.constant 2 : index
    %c0_90 = arith.constant 0 : index
    %c16_91 = arith.constant 16 : index
    %c0_92 = arith.constant 0 : index
    %102 = vector.load %arg19[%c2_89, %c0_90, %c16_91, %c0_92] : memref<4x10x25x128xbf16, #tpu.memory_space<vmem>>, vector<1x8x8x128xbf16>
    %103 = vector.shape_cast %102 : vector<1x8x8x128xbf16> to vector<8x8x128xbf16>
    %104 = vector.shape_cast %103 : vector<8x8x128xbf16> to vector<64x128xbf16>
    %c3_93 = arith.constant 3 : index
    %c0_94 = arith.constant 0 : index
    %c16_95 = arith.constant 16 : index
    %c0_96 = arith.constant 0 : index
    %105 = vector.load %arg19[%c3_93, %c0_94, %c16_95, %c0_96] : memref<4x10x25x128xbf16, #tpu.memory_space<vmem>>, vector<1x8x8x128xbf16>
    %106 = vector.shape_cast %105 : vector<1x8x8x128xbf16> to vector<8x8x128xbf16>
    %107 = vector.shape_cast %106 : vector<8x8x128xbf16> to vector<64x128xbf16>
    %c1_97 = arith.constant 1 : index
    %c1_98 = arith.constant 1 : index
    %c15_99 = arith.constant 15 : index
    %c0_100 = arith.constant 0 : index
    %108 = vector.load %arg19[%c1_97, %c1_98, %c15_99, %c0_100] : memref<4x10x25x128xbf16, #tpu.memory_space<vmem>>, vector<1x8x8x128xbf16>
    %109 = vector.shape_cast %108 : vector<1x8x8x128xbf16> to vector<8x8x128xbf16>
    %110 = vector.shape_cast %109 : vector<8x8x128xbf16> to vector<64x128xbf16>
    %c0_101 = arith.constant 0 : index
    %c1_102 = arith.constant 1 : index
    %c16_103 = arith.constant 16 : index
    %c0_104 = arith.constant 0 : index
    %111 = vector.load %arg19[%c0_101, %c1_102, %c16_103, %c0_104] : memref<4x10x25x128xbf16, #tpu.memory_space<vmem>>, vector<1x8x8x128xbf16>
    %112 = vector.shape_cast %111 : vector<1x8x8x128xbf16> to vector<8x8x128xbf16>
    %113 = vector.shape_cast %112 : vector<8x8x128xbf16> to vector<64x128xbf16>
    %c1_105 = arith.constant 1 : index
    %c1_106 = arith.constant 1 : index
    %c16_107 = arith.constant 16 : index
    %c0_108 = arith.constant 0 : index
    %114 = vector.load %arg19[%c1_105, %c1_106, %c16_107, %c0_108] : memref<4x10x25x128xbf16, #tpu.memory_space<vmem>>, vector<1x8x8x128xbf16>
    %115 = vector.shape_cast %114 : vector<1x8x8x128xbf16> to vector<8x8x128xbf16>
    %116 = vector.shape_cast %115 : vector<8x8x128xbf16> to vector<64x128xbf16>
    %c3_109 = arith.constant 3 : index
    %c1_110 = arith.constant 1 : index
    %c15_111 = arith.constant 15 : index
    %c0_112 = arith.constant 0 : index
    %117 = vector.load %arg19[%c3_109, %c1_110, %c15_111, %c0_112] : memref<4x10x25x128xbf16, #tpu.memory_space<vmem>>, vector<1x8x8x128xbf16>
    %118 = vector.shape_cast %117 : vector<1x8x8x128xbf16> to vector<8x8x128xbf16>
    %119 = vector.shape_cast %118 : vector<8x8x128xbf16> to vector<64x128xbf16>
    %c2_113 = arith.constant 2 : index
    %c1_114 = arith.constant 1 : index
    %c16_115 = arith.constant 16 : index
    %c0_116 = arith.constant 0 : index
    %120 = vector.load %arg19[%c2_113, %c1_114, %c16_115, %c0_116] : memref<4x10x25x128xbf16, #tpu.memory_space<vmem>>, vector<1x8x8x128xbf16>
    %121 = vector.shape_cast %120 : vector<1x8x8x128xbf16> to vector<8x8x128xbf16>
    %122 = vector.shape_cast %121 : vector<8x8x128xbf16> to vector<64x128xbf16>
    %c3_117 = arith.constant 3 : index
    %c1_118 = arith.constant 1 : index
    %c16_119 = arith.constant 16 : index
    %c0_120 = arith.constant 0 : index
    %123 = vector.load %arg19[%c3_117, %c1_118, %c16_119, %c0_120] : memref<4x10x25x128xbf16, #tpu.memory_space<vmem>>, vector<1x8x8x128xbf16>
    %124 = vector.shape_cast %123 : vector<1x8x8x128xbf16> to vector<8x8x128xbf16>
    %125 = vector.shape_cast %124 : vector<8x8x128xbf16> to vector<64x128xbf16>
    %126 = tpu.concatenate %101, %104, %107, %110, %113, %116, %119, %122, %125 in 1 : vector<64x128xbf16>, vector<64x128xbf16>, vector<64x128xbf16>, vector<64x128xbf16>, vector<64x128xbf16>, vector<64x128xbf16>, vector<64x128xbf16>, vector<64x128xbf16>, vector<64x128xbf16> -> vector<64x1152xbf16>
    %c0_121 = arith.constant 0 : index
    %c0_122 = arith.constant 0 : index
    %127 = vector.load %arg5[%c0_121, %c0_122] : memref<1152x128xbf16, #tpu.memory_space<vmem>>, vector<1152x128xbf16>
    %cst_123 = arith.constant dense<0.000000e+00> : vector<64x128xf32>
    %128 = tpu.matmul %126, %127, %cst_123 {dimension_numbers = #tpu.dot_dimension_numbers<[1], [0], [0], [1], [0, 0, 1, 1], [], []>} : vector<64x1152xbf16>, vector<1152x128xbf16>, vector<64x128xf32> -> vector<64x128xf32>
    %c0_124 = arith.constant 0 : index
    %c0_125 = arith.constant 0 : index
    %129 = vector.load %arg6[%c0_124, %c0_125] : memref<1x128xf32, #tpu.memory_space<vmem>>, vector<1x128xf32>
    %130 = vector.broadcast %129 : vector<1x128xf32> to vector<64x128xf32>
    %131 = arith.mulf %128, %130 : vector<64x128xf32>
    %c0_126 = arith.constant 0 : index
    %c0_127 = arith.constant 0 : index
    %132 = vector.load %arg7[%c0_126, %c0_127] : memref<1x128xf32, #tpu.memory_space<vmem>>, vector<1x128xf32>
    %133 = vector.broadcast %132 : vector<1x128xf32> to vector<64x128xf32>
    %134 = arith.addf %131, %133 : vector<64x128xf32>
    %cst_128 = arith.constant 0.000000e+00 : f32
    %135 = vector.broadcast %cst_128 : f32 to vector<64x128xf32>
    %136 = arith.maximumf %134, %135 : vector<64x128xf32>
    %cst_129 = arith.constant dense<0.000000e+00> : vector<128xf32>
    %137 = vector.multi_reduction <add>, %136, %cst_129 [0] : vector<64x128xf32> to vector<128xf32>
    %138 = vector.shape_cast %137 : vector<128xf32> to vector<1x128xf32>
    %cst_130 = arith.constant 6.400000e+01 : f32
    %139 = vector.broadcast %cst_130 : f32 to vector<1x128xf32>
    %140 = arith.divf %138, %139 : vector<1x128xf32>
    %141 = arith.truncf %140 : vector<1x128xf32> to vector<1x128xbf16>
    %c0_131 = arith.constant 0 : index
    %c0_132 = arith.constant 0 : index
    %142 = vector.load %arg8[%c0_131, %c0_132] : memref<128x128xbf16, #tpu.memory_space<vmem>>, vector<128x128xbf16>
    %cst_133 = arith.constant dense<0.000000e+00> : vector<1x128xf32>
    %143 = tpu.matmul %141, %142, %cst_133 {dimension_numbers = #tpu.dot_dimension_numbers<[1], [0], [0], [1], [0, 0, 1, 1], [], []>} : vector<1x128xbf16>, vector<128x128xbf16>, vector<1x128xf32> -> vector<1x128xf32>
    %c0_134 = arith.constant 0 : index
    %c0_135 = arith.constant 0 : index
    %144 = vector.load %arg9[%c0_134, %c0_135] : memref<1x128xf32, #tpu.memory_space<vmem>>, vector<1x128xf32>
    %145 = arith.addf %143, %144 : vector<1x128xf32>
    %cst_136 = arith.constant 0.000000e+00 : f32
    %146 = vector.broadcast %cst_136 : f32 to vector<1x128xf32>
    %147 = arith.maximumf %145, %146 : vector<1x128xf32>
    %148 = arith.truncf %147 : vector<1x128xf32> to vector<1x128xbf16>
    %c0_137 = arith.constant 0 : index
    %c0_138 = arith.constant 0 : index
    %149 = vector.load %arg10[%c0_137, %c0_138] : memref<128x128xbf16, #tpu.memory_space<vmem>>, vector<128x128xbf16>
    %cst_139 = arith.constant dense<0.000000e+00> : vector<1x128xf32>
    %150 = tpu.matmul %148, %149, %cst_139 {dimension_numbers = #tpu.dot_dimension_numbers<[1], [0], [0], [1], [0, 0, 1, 1], [], []>} : vector<1x128xbf16>, vector<128x128xbf16>, vector<1x128xf32> -> vector<1x128xf32>
    %c0_140 = arith.constant 0 : index
    %c0_141 = arith.constant 0 : index
    %151 = vector.load %arg11[%c0_140, %c0_141] : memref<1x128xf32, #tpu.memory_space<vmem>>, vector<1x128xf32>
    %152 = arith.addf %150, %151 : vector<1x128xf32>
    %153 = arith.negf %152 : vector<1x128xf32>
    %154 = math.exp %153 : vector<1x128xf32>
    %cst_142 = arith.constant 1.000000e+00 : f32
    %155 = vector.broadcast %cst_142 : f32 to vector<1x128xf32>
    %156 = arith.addf %155, %154 : vector<1x128xf32>
    %157 = arith.divf %155, %156 : vector<1x128xf32>
    %158 = vector.broadcast %157 : vector<1x128xf32> to vector<64x128xf32>
    %159 = arith.mulf %136, %158 : vector<64x128xf32>
    %160 = arith.truncf %159 : vector<64x128xf32> to vector<64x128xbf16>
    %c0_143 = arith.constant 0 : index
    %c0_144 = arith.constant 0 : index
    %161 = vector.load %arg12[%c0_143, %c0_144] : memref<128x128xbf16, #tpu.memory_space<vmem>>, vector<128x128xbf16>
    %cst_145 = arith.constant dense<0.000000e+00> : vector<64x128xf32>
    %162 = tpu.matmul %160, %161, %cst_145 {dimension_numbers = #tpu.dot_dimension_numbers<[1], [0], [0], [1], [0, 0, 1, 1], [], []>} : vector<64x128xbf16>, vector<128x128xbf16>, vector<64x128xf32> -> vector<64x128xf32>
    %c0_146 = arith.constant 0 : index
    %c0_147 = arith.constant 0 : index
    %163 = vector.load %arg13[%c0_146, %c0_147] : memref<1x128xf32, #tpu.memory_space<vmem>>, vector<1x128xf32>
    %164 = vector.broadcast %163 : vector<1x128xf32> to vector<64x128xf32>
    %165 = arith.mulf %162, %164 : vector<64x128xf32>
    %c0_148 = arith.constant 0 : index
    %c0_149 = arith.constant 0 : index
    %166 = vector.load %arg14[%c0_148, %c0_149] : memref<1x128xf32, #tpu.memory_space<vmem>>, vector<1x128xf32>
    %167 = vector.broadcast %166 : vector<1x128xf32> to vector<64x128xf32>
    %168 = arith.addf %165, %167 : vector<64x128xf32>
    %169 = vector.extract_strided_slice %0 {offsets = [0, 0, 0, 0], sizes = [8, 1, 8, 128], strides = [1, 1, 1, 1]} : vector<8x2x8x256xf32> to vector<8x1x8x128xf32>
    %170 = vector.shape_cast %169 : vector<8x1x8x128xf32> to vector<8x8x128xf32>
    %171 = vector.shape_cast %170 : vector<8x8x128xf32> to vector<64x128xf32>
    %172 = arith.truncf %171 : vector<64x128xf32> to vector<64x128xbf16>
    %c0_150 = arith.constant 0 : index
    %c0_151 = arith.constant 0 : index
    %173 = vector.load %arg15[%c0_150, %c0_151] : memref<128x128xbf16, #tpu.memory_space<vmem>>, vector<128x128xbf16>
    %cst_152 = arith.constant dense<0.000000e+00> : vector<64x128xf32>
    %174 = tpu.matmul %172, %173, %cst_152 {dimension_numbers = #tpu.dot_dimension_numbers<[1], [0], [0], [1], [0, 0, 1, 1], [], []>} : vector<64x128xbf16>, vector<128x128xbf16>, vector<64x128xf32> -> vector<64x128xf32>
    %c0_153 = arith.constant 0 : index
    %c0_154 = arith.constant 0 : index
    %175 = vector.load %arg16[%c0_153, %c0_154] : memref<1x128xf32, #tpu.memory_space<vmem>>, vector<1x128xf32>
    %176 = vector.broadcast %175 : vector<1x128xf32> to vector<64x128xf32>
    %177 = arith.mulf %174, %176 : vector<64x128xf32>
    %c0_155 = arith.constant 0 : index
    %c0_156 = arith.constant 0 : index
    %178 = vector.load %arg17[%c0_155, %c0_156] : memref<1x128xf32, #tpu.memory_space<vmem>>, vector<1x128xf32>
    %179 = vector.broadcast %178 : vector<1x128xf32> to vector<64x128xf32>
    %180 = arith.addf %177, %179 : vector<64x128xf32>
    %181 = arith.addf %180, %168 : vector<64x128xf32>
    %cst_157 = arith.constant 0.000000e+00 : f32
    %182 = vector.broadcast %cst_157 : f32 to vector<64x128xf32>
    %183 = arith.maximumf %181, %182 : vector<64x128xf32>
    %184 = vector.shape_cast %183 : vector<64x128xf32> to vector<8x8x128xf32>
    %c0_158 = arith.constant 0 : index
    %c0_159 = arith.constant 0 : index
    %c0_160 = arith.constant 0 : index
    %c0_161 = arith.constant 0 : index
    %185 = vector.load %arg18[%c0_158, %c0_159, %c0_160, %c0_161] : memref<1x8x8x128xf32, #tpu.memory_space<vmem>>, vector<1x8x8x128xf32>
    %186 = vector.shape_cast %185 : vector<1x8x8x128xf32> to vector<8x8x128xf32>
    %187 = vector.shape_cast %184 : vector<8x8x128xf32> to vector<1x8x8x128xf32>
    tpu.vector_store %arg18[%c0_158, %c0_159, %c0_160, %c0_161], %187 {strides = array<i32>} : memref<1x8x8x128xf32, #tpu.memory_space<vmem>>, vector<1x8x8x128xf32>,
    return
  }
  func.func @transform_0(%arg0: i32) -> (i32, i32, i32, i32) {
    %c0_i32 = arith.constant 0 : i32
    %c0_i32_0 = arith.constant 0 : i32
    %c0_i32_1 = arith.constant 0 : i32
    %c0_i32_2 = arith.constant 0 : i32
    return %arg0, %c0_i32, %c0_i32_0, %c0_i32_1 : i32, i32, i32, i32
  }
  func.func @transform_1(%arg0: i32) -> (i32, i32) {
    %c0_i32 = arith.constant 0 : i32
    %c0_i32_0 = arith.constant 0 : i32
    %c0_i32_1 = arith.constant 0 : i32
    return %c0_i32, %c0_i32_0 : i32, i32
  }
  func.func @transform_2(%arg0: i32) -> (i32, i32) {
    %c0_i32 = arith.constant 0 : i32
    %c0_i32_0 = arith.constant 0 : i32
    %c0_i32_1 = arith.constant 0 : i32
    return %c0_i32, %c0_i32_0 : i32, i32
  }
  func.func @transform_3(%arg0: i32) -> (i32, i32) {
    %c0_i32 = arith.constant 0 : i32
    %c0_i32_0 = arith.constant 0 : i32
    %c0_i32_1 = arith.constant 0 : i32
    return %c0_i32, %c0_i32_0 : i32, i32
  }
  func.func @transform_4(%arg0: i32) -> (i32, i32) {
    %c0_i32 = arith.constant 0 : i32
    %c0_i32_0 = arith.constant 0 : i32
    %c0_i32_1 = arith.constant 0 : i32
    return %c0_i32, %c0_i32_0 : i32, i32
  }
  func.func @transform_5(%arg0: i32) -> (i32, i32) {
    %c0_i32 = arith.constant 0 : i32
    %c0_i32_0 = arith.constant 0 : i32
    %c0_i32_1 = arith.constant 0 : i32
    return %c0_i32, %c0_i32_0 : i32, i32
  }
  func.func @transform_6(%arg0: i32) -> (i32, i32) {
    %c0_i32 = arith.constant 0 : i32
    %c0_i32_0 = arith.constant 0 : i32
    %c0_i32_1 = arith.constant 0 : i32
    return %c0_i32, %c0_i32_0 : i32, i32
  }
  func.func @transform_7(%arg0: i32) -> (i32, i32) {
    %c0_i32 = arith.constant 0 : i32
    %c0_i32_0 = arith.constant 0 : i32
    %c0_i32_1 = arith.constant 0 : i32
    return %c0_i32, %c0_i32_0 : i32, i32
  }
  func.func @transform_8(%arg0: i32) -> (i32, i32) {
    %c0_i32 = arith.constant 0 : i32
    %c0_i32_0 = arith.constant 0 : i32
    %c0_i32_1 = arith.constant 0 : i32
    return %c0_i32, %c0_i32_0 : i32, i32
  }
  func.func @transform_9(%arg0: i32) -> (i32, i32) {
    %c0_i32 = arith.constant 0 : i32
    %c0_i32_0 = arith.constant 0 : i32
    %c0_i32_1 = arith.constant 0 : i32
    return %c0_i32, %c0_i32_0 : i32, i32
  }
  func.func @transform_10(%arg0: i32) -> (i32, i32) {
    %c0_i32 = arith.constant 0 : i32
    %c0_i32_0 = arith.constant 0 : i32
    %c0_i32_1 = arith.constant 0 : i32
    return %c0_i32, %c0_i32_0 : i32, i32
  }
  func.func @transform_11(%arg0: i32) -> (i32, i32) {
    %c0_i32 = arith.constant 0 : i32
    %c0_i32_0 = arith.constant 0 : i32
    %c0_i32_1 = arith.constant 0 : i32
    return %c0_i32, %c0_i32_0 : i32, i32
  }
  func.func @transform_12(%arg0: i32) -> (i32, i32) {
    %c0_i32 = arith.constant 0 : i32
    %c0_i32_0 = arith.constant 0 : i32
    %c0_i32_1 = arith.constant 0 : i32
    return %c0_i32, %c0_i32_0 : i32, i32
  }
  func.func @transform_13(%arg0: i32) -> (i32, i32) {
    %c0_i32 = arith.constant 0 : i32
    %c0_i32_0 = arith.constant 0 : i32
    %c0_i32_1 = arith.constant 0 : i32
    return %c0_i32, %c0_i32_0 : i32, i32
  }
  func.func @transform_14(%arg0: i32) -> (i32, i32) {
    %c0_i32 = arith.constant 0 : i32
    %c0_i32_0 = arith.constant 0 : i32
    %c0_i32_1 = arith.constant 0 : i32
    return %c0_i32, %c0_i32_0 : i32, i32
  }
  func.func @transform_15(%arg0: i32) -> (i32, i32) {
    %c0_i32 = arith.constant 0 : i32
    %c0_i32_0 = arith.constant 0 : i32
    %c0_i32_1 = arith.constant 0 : i32
    return %c0_i32, %c0_i32_0 : i32, i32
  }
  func.func @transform_16(%arg0: i32) -> (i32, i32) {
    %c0_i32 = arith.constant 0 : i32
    %c0_i32_0 = arith.constant 0 : i32
    %c0_i32_1 = arith.constant 0 : i32
    return %c0_i32, %c0_i32_0 : i32, i32
  }
  func.func @transform_17(%arg0: i32) -> (i32, i32, i32, i32) {
    %c0_i32 = arith.constant 0 : i32
    %c0_i32_0 = arith.constant 0 : i32
    %c0_i32_1 = arith.constant 0 : i32
    %c0_i32_2 = arith.constant 0 : i32
    return %arg0, %c0_i32, %c0_i32_0, %c0_i32_1 : i32, i32, i32, i32
  }
}

</mosaic_0001>

<bundles_post_ra>
// kernel: tpu_custom_call.1
= control target key start
LH: loop header
LB: loop body
LE: loop exit
PB: predicated region body
PF: predicated region fallthrough
CT: control target
= control target key end

     0   :  { %s6130_s0 = inlined_call_operand.hbm [shape: f32[16,2,8,256], index: 0, kind: input, shape index: {}]   ;;  %s6131_s1 = inlined_call_operand.hbm [shape: bf16[128,128], index: 1, kind: input, shape index: {}]   ;;  %s6132_s2 = inlined_call_operand.vmem [shape: f32[1,128], index: 2, kind: input, shape index: {}]   ;;  %s6133_s3 = inlined_call_operand.vmem [shape: f32[1,128], index: 3, kind: input, shape index: {}]   ;;  %s6134_s4 = inlined_call_operand.hbm [shape: bf16[1152,128], index: 4, kind: input, shape index: {}]   ;;  %s6135_s5 = inlined_call_operand.vmem [shape: f32[1,128], index: 5, kind: input, shape index: {}]   ;;  %s6136_s6 = inlined_call_operand.vmem [shape: f32[1,128], index: 6, kind: input, shape index: {}]   ;;  %s6137_s7 = inlined_call_operand.hbm [shape: bf16[128,128], index: 7, kind: input, shape index: {}]   ;;  %s6138_s8 = inlined_call_operand.vmem [shape: f32[1,128], index: 8, kind: input, shape index: {}]   ;;  %s6139_s9 = inlined_call_operand.hbm [shape: bf16[128,128], index: 9, kind: input, shape index: {}]   ;;  %s6140_s10 = inlined_call_operand.vmem [shape: f32[1,128], index: 10, kind: input, shape index: {}]   ;;  %s6141_s11 = inlined_call_operand.hbm [shape: bf16[128,128], index: 11, kind: input, shape index: {}]   ;;  %s6142_s12 = inlined_call_operand.vmem [shape: f32[1,128], index: 12, kind: input, shape index: {}]   ;;  %s6143_s13 = inlined_call_operand.vmem [shape: f32[1,128], index: 13, kind: input, shape index: {}]   ;;  %s6144_s14 = inlined_call_operand.hbm [shape: bf16[128,128], index: 14, kind: input, shape index: {}]   ;;  %s6145_s15 = inlined_call_operand.vmem [shape: f32[1,128], index: 15, kind: input, shape index: {}]   ;;  %s6146_s16 = inlined_call_operand.vmem [shape: f32[1,128], index: 16, kind: input, shape index: {}]   ;;  %s6147_s17 = inlined_call_operand.hbm [shape: f32[2,8,8,128], index: 17, kind: output, shape index: {}]  }
   0x1   :  { %6158 = sst [smem:[#allocation26_spill]] %s6130_s0 }
   0x2   :  { %6159 = sst [smem:[#allocation27_spill]] %s6131_s1 }
   0x3   :  { %6160 = sst [smem:[#allocation28_spill]] %s6134_s4 }
   0x4   :  { %6161 = sst [smem:[#allocation29_spill]] %s6137_s7 }
   0x5   :  { %6162 = sst [smem:[#allocation30_spill]] %s6139_s9 }
   0x6   :  { %6163 = sst [smem:[#allocation31_spill]] %s6141_s11 }
   0x7   :  { %6164 = sst [smem:[#allocation32_spill]] %s6143_s13 }
   0x8   :  { %6165 = sst [smem:[#allocation33_spill]] %s6144_s14 }
   0x9   :  { %6166 = sst [smem:[#allocation34_spill]] %s6146_s16 }
   0xa   :  { %6167 = sst [smem:[#allocation35_spill]] %s6147_s17 }
   0xb   :  { %22 = vsyncpa [#allocation4], 0 }
   0xc   :  { %24 = vsyncpa [#allocation4 + $0x1], 0 }
   0xd   :  { %25 = vsyncpa [#allocation7], 0 }
   0xe   :  { %26 = vsyncpa [#allocation10], 0 }
   0xf   :  { %27 = vsyncpa [#allocation13], 0 }
  0x10   :  { %28 = vsyncpa [#allocation5], 0 }
  0x11   :  { %30 = vsyncpa [#allocation5 + $0x1], 0  ;;  %s5072_s24 = smov 0   ;;  %s5074_s25 = smov 0  }
  0x12   :  { %s5076_s26 = smov 0   ;;  %s5078_s27 = smov 0  }
  0x13 LB: > { %6168 = sst [smem:[#allocation21_spill]] %s4959_s26  ;;  %s4965_s28 = smov [#allocation6]   ;;  %s4963_s27 = sphi %s5078_s27, %s6219_s27   ;;  %s4959_s26 = sphi %s5076_s26, %s6216_s26   ;;  %s4955_s25 = sphi %s5074_s25, %s6218_s25   ;;  %s4951_s24 = sphi %s5072_s24, %s6217_s24  }
  0x14   : > { %s441_s29 = sshll.u32 %s4965_s28, 4  ;;  %s5093_s0 = sadd.s32 4294967295, %s4963_s27   ;;  %s442_s29 = int_to_ptr.vmem [resolvable:$true] %s441_s29 }
  0x15   : > { %p3759_p0 = scmp.ge.s32.totalorder %s4963_s27, 1  ;;  %p6150_p1 = scmp.eq.s32.totalorder %s5093_s0, 0 }
  0x16   : > { %p429_p2 = scmp.lt.s32.totalorder %s4963_s27, 3  ;;  %s4966_s18 = smov [#allocation9]  }
  0x17   : > { %s479_s19 = sshll.u32 %s4966_s18, 4  ;;  %s4967_s20 = smov [#allocation12]   ;;  %s5111_s19 = int_to_ptr.vmem [resolvable:$true] %s479_s19 }
  0x18   : > { %p5098_p3 = pnand %p3759_p0, %p429_p2  ;;  %s511_s21 = sshll.u32 %s4967_s20, 4  ;;  %s5113_s21 = int_to_ptr.vmem [resolvable:$true] %s511_s21 }
  0x19   : > { %s4714_s23 = scalar_lea.vmem %s442_s29, 1024  ;;  %p4722_p11 = scmp.lt.s32.totalorder %s442_s29, %s442_s29 }
  0x1a   : > { %s6169_s30 = scalar_select %p5098_p3, 1, 0 }
  0x1b   : > { %p4475_p5 = pneg %p5098_p3  ;;  %p4715_p8 = scmp.ne.s32.totalorder %s442_s29, %s4714_s23 }
  0x1c   : > { %p4723_p12 = scmp.lt.s32.totalorder %s4714_s23, %s4714_s23 }
  0x1d   : > { %p5107_p6 = pnand %p4475_p5, %p6150_p1 }
  0x1e   : > { %p4724_p13 = por %p4723_p12, %p4722_p11 }
  0x1f   : > { %p5117_p7 = pneg %p5107_p6 }
  0x21   : > { %p4717_p9 = pnand %p4715_p8, %p5117_p7 }
  0x23   : > { %p4718_p10 = pneg %p4717_p9 }
  0x25   : > { %p4725_p0 = pnand %p4724_p13, %p4718_p10 }
  0x27   : > { %4728 = shalt.err (!%p4725_p0)
}
  0x28   : > { %s4968_s28 = smov 64   ;;  %s4969_s18 = smov 4  }
  0x29   : > { %s6172_s13 = sld [smem:[#allocation27_spill]]  ;;  %s4740_s16 = scalar_lea.vmem %s5111_s19, 1024 }
  0x2a   : > { %p4741_p2 = scmp.ne.s32.totalorder %s5111_s19, %s4740_s16  ;;  %p4748_p9 = scmp.lt.s32.totalorder %s5111_s19, %s5111_s19 }
  0x2b   : > { %p4749_p10 = scmp.lt.s32.totalorder %s4740_s16, %s4740_s16 }
  0x2c   : > { %p4743_p5 = pnand %p4741_p2, %p5117_p7 }
  0x2d   : > { %p4750_p11 = por %p4749_p10, %p4748_p9 }
  0x2e   : > { %p4744_p8 = pneg %p4743_p5 }
  0x2f   : > { %4478 = dma.hbm_to_vmem [thread:$0]  (!%p5107_p6), %s6172_s13, 1024, %s442_s29, [#allocation7], %s4968_s28, %s4968_s28, %s4969_s18  }
  0x30   : > { %p4751_p12 = pnand %p4750_p11, %p4744_p8 }
  0x32   : > { %4754 = shalt.err (!%p4751_p12)
}
  0x33   : > { %s6173_s7 = sld [smem:[#allocation29_spill]]  ;;  %s4766_s13 = scalar_lea.vmem %s5113_s21, 1024 }
  0x34   : > { %p4767_p13 = scmp.ne.s32.totalorder %s5113_s21, %s4766_s13  ;;  %p4774_p5 = scmp.lt.s32.totalorder %s5113_s21, %s5113_s21 }
  0x35   : > { %p4775_p8 = scmp.lt.s32.totalorder %s4766_s13, %s4766_s13 }
  0x36   : > { %p4769_p0 = pnand %p4767_p13, %p5117_p7 }
  0x37   : > { %p4776_p9 = por %p4775_p8, %p4774_p5 }
  0x38   : > { %p4770_p2 = pneg %p4769_p0 }
  0x39   : > { %4484 = dma.hbm_to_vmem [thread:$0]  (!%p5107_p6), %s6173_s7, 1024, %s5111_s19, [#allocation10], %s4968_s28, %s4968_s28, %s4969_s18  }
  0x3a   : > { %p4777_p10 = pnand %p4776_p9, %p4770_p2 }
  0x3c   : > { %4780 = shalt.err (!%p4777_p10)
}
  0x3d   : > { %s6174_s11 = sld [smem:[#allocation31_spill]]  ;;  %s4970_s19 = smov [#allocation8]  }
  0x3e   : > { %s460_s20 = sshll.u32 %s4970_s19, 4  ;;  %s4971_s23 = smov [#allocation11]   ;;  %s461_s20 = int_to_ptr.vmem [resolvable:$true] %s460_s20 }
  0x3f   : > { %s495_s17 = sshll.u32 %s4971_s23, 4  ;;  %s4792_s13 = scalar_lea.vmem %s461_s20, 9216  ;;  %s496_s17 = int_to_ptr.vmem [resolvable:$true] %s495_s17 }
  0x40   : > { %p4793_p11 = scmp.ne.s32.totalorder %s461_s20, %s4792_s13  ;;  %p4800_p0 = scmp.lt.s32.totalorder %s461_s20, %s461_s20 }
  0x41   : > { %p4801_p2 = scmp.lt.s32.totalorder %s4792_s13, %s4792_s13 }
  0x42   : > { %p4795_p12 = pnand %p4793_p11, %p5117_p7 }
  0x43   : > { %4490 = dma.hbm_to_vmem [thread:$0]  (!%p5107_p6), %s6174_s11, 1024, %s5113_s21, [#allocation13], %s4968_s28, %s4968_s28, %s4969_s18  }
  0x44   : > { %p4796_p13 = pneg %p4795_p12  ;;  %p4802_p5 = por %p4801_p2, %p4800_p0 }
  0x46   : > { %p4803_p8 = pnand %p4802_p5, %p4796_p13 }
  0x48   : > { %4806 = shalt.err (!%p4803_p8)
}
  0x49   : > { %s6175_s4 = sld [smem:[#allocation28_spill]]  ;;  %s4818_s29 = scalar_lea.vmem %s496_s17, 1024 }
  0x4a   : > { %p4819_p9 = scmp.ne.s32.totalorder %s496_s17, %s4818_s29  ;;  %p4826_p12 = scmp.lt.s32.totalorder %s496_s17, %s496_s17 }
  0x4b   : > { %p4827_p0 = scmp.lt.s32.totalorder %s4818_s29, %s4818_s29 }
  0x4c   : > { %p4821_p10 = pnand %p4819_p9, %p5117_p7 }
  0x4d   : > { %p4828_p13 = por %p4827_p0, %p4826_p12 }
  0x4e   : > { %p4822_p11 = pneg %p4821_p10 }
  0x4f   : > { %4481 = dma.hbm_to_vmem [thread:$0]  (!%p5107_p6), %s6175_s4, 9216, %s461_s20, [#allocation7], %s4968_s28, %s4968_s28, %s4969_s18  }
  0x50   : > { %p4829_p2 = pnand %p4828_p13, %p4822_p11 }
  0x52   : > { %4832 = shalt.err (!%p4829_p2)
}
  0x53   : > { %s6176_s9 = sld [smem:[#allocation30_spill]]  ;;  %s4972_s20 = smov [#allocation14]  }
  0x54   : > { %s530_s13 = sshll.u32 %s4972_s20, 4  ;;  %s531_s13 = int_to_ptr.vmem [resolvable:$true] %s530_s13 }
  0x55   : > { %s4844_s21 = scalar_lea.vmem %s531_s13, 1024  ;;  %p4852_p10 = scmp.lt.s32.totalorder %s531_s13, %s531_s13 }
  0x56   : > { %p4845_p5 = scmp.ne.s32.totalorder %s531_s13, %s4844_s21  ;;  %p4853_p11 = scmp.lt.s32.totalorder %s4844_s21, %s4844_s21 }
  0x58   : > { %p4847_p8 = pnand %p4845_p5, %p5117_p7  ;;  %p4854_p12 = por %p4853_p11, %p4852_p10 }
  0x59   : > { %4487 = dma.hbm_to_vmem [thread:$0]  (!%p5107_p6), %s6176_s9, 1024, %s496_s17, [#allocation10], %s4968_s28, %s4968_s28, %s4969_s18  }
  0x5a   : > { %p4848_p9 = pneg %p4847_p8 }
  0x5c   : > { %p4855_p0 = pnand %p4854_p12, %p4848_p9 }
  0x5e   : > { %4858 = shalt.err (!%p4855_p0)
}
  0x5f   : > { %s6177_s14 = sld [smem:[#allocation33_spill]]  ;;  %s3758_s1 = sadd.s32 4294967294, %s4963_s27  }
  0x60   : > { %s5193_s22 = sadd.s32 1, %s4963_s27   ;;  %s43_s19 = sadd.s32 1, %s4959_s26 }
  0x61   : > { %s40_s29 = ssub.s32 %s4963_s27, %s5193_s22  ;;  %p50_p13 = scmp.ne.s32.totalorder %s4959_s26, %s4955_s25 }
  0x62   : > { %p41_p7 = scmp.eq.s32.totalorder %s40_s29, 0  ;;  %p51_p2 = scmp.eq.s32.totalorder %s4963_s27, 0 }
  0x63   : > { %p56_p5 = scmp.ne.s32.totalorder %s4955_s25, %s4951_s24  ;;  %p416_p9 = scmp.eq.s32.totalorder %s5093_s0, 1 }
  0x64   : > { %s5204_s23 = scalar_select %p41_p7, %s4959_s26, %s43_s19  }
  0x65   : > { %4493 = dma.hbm_to_vmem [thread:$0]  (!%p5107_p6), %s6177_s14, 1024, %s531_s13, [#allocation13], %s4968_s28, %s4968_s28, %s4969_s18  }
  0x66   : > { %6178 = sst [smem:[#allocation22_spill]] %s5204_s23  ;;  %p5206_p8 = por %p51_p2, %p50_p13 }
  0x67   : > { %p5212_p6 = por %p6150_p1, %p56_p5  ;;  %p422_p10 = scmp.eq.s32.totalorder %s3758_s1, 1 }
  0x68   : > { %p4508_p11 = scmp.lt.s32.totalorder %s4963_s27, 2  ;;  %s550_s18 = sand.u32 1, %s4959_s26  }
  0x69   : > { %s6180_s28 = scalar_select %p5212_p6, 1, 0 }
  0x6a   : > { %p5219_p12 = por %p416_p9, %p50_p13  ;;  %p5223_p0 = por %p422_p10, %p56_p5 }
  0x6b   : > { %s3767_s16 = sshll.u32 %s550_s18, 8  ;;  %s3999_s17 = sshll.u32 %s4963_s27, 12 }
  0x6c   : > { %s6181_s13 = scalar_select %p5219_p12, 1, 0 }
  0x6d   : > { %s6182_s21 = scalar_select %p5223_p0, 1, 0 }
  0x6e   : > { %s6183_s4 = sld [smem:[#allocation26_spill]]  ;;  %s554_s1 = scalar_lea.vmem [#allocation3], %s3767_s16 }
  0x6f   : > { %s562_s9 = sshll.u32 %s554_s1, 4  ;;  %p5237_p7 = pnand %p4508_p11, %p5206_p8  ;;  %s5233_s9 = int_to_ptr.vmem [resolvable:$true] %s562_s9 }
  0x70   : > { %s5241_s14 = scalar_lea.sflag [#allocation4], %s550_s18 }
  0x71   : > { %p4861_p2 = pneg %p5237_p7 }
  0x74   : > { %s5231_s7 = scalar_lea.hbm %s6183_s4, %s3999_s17  ;;  %s4864_s16 = scalar_lea.hbm %s6183_s4, 8192 }
  0x75   : > { %s4859_s23 = scalar_lea.hbm %s5231_s7, 4096  ;;  %p4865_p8 = scmp.lt.s32.totalorder %s5231_s7, %s6183_s4 }
  0x76   : > { %p4860_p13 = scmp.ne.s32.totalorder %s5231_s7, %s4859_s23  ;;  %p4866_p10 = scmp.lt.s32.totalorder %s4864_s16, %s4859_s23 }
  0x78   : > { %p4862_p5 = pnand %p4861_p2, %p4860_p13  ;;  %p4867_p11 = por %p4866_p10, %p4865_p8 }
  0x7a   : > { %p4863_p9 = pneg %p4862_p5 }
  0x7c   : > { %p4868_p4 = pnand %p4867_p11, %p4863_p9 }
  0x7e   : > { %4871 = shalt.err (!%p4868_p4)
}
  0x7f   : > { %s4872_s20 = scalar_lea.vmem %s5233_s9, 4096  ;;  %s4973_s18 = smov [#allocation3]  }
  0x80   : > { %p4873_p1 = scmp.ne.s32.totalorder %s5233_s9, %s4872_s20  ;;  %s4877_s26 = sshll.u32 %s4973_s18, 4  ;;  %s4878_s26 = int_to_ptr.vmem [resolvable:$false] %s4877_s26 }
  0x81   : > { %s4879_s17 = scalar_lea.vmem %s4878_s26, 8192  ;;  %p4880_p5 = scmp.lt.s32.totalorder %s5233_s9, %s4878_s26 }
  0x82   : > { %p4875_p0 = pnand %p4873_p1, %p4861_p2  ;;  %p4881_p12 = scmp.lt.s32.totalorder %s4879_s17, %s4872_s20 }
  0x84   : > { %p4876_p13 = pneg %p4875_p0  ;;  %p4882_p6 = por %p4881_p12, %p4880_p5 }
  0x86   : > { %p4883_p3 = pnand %p4882_p6, %p4876_p13 }
  0x88   : > { %4886 = shalt.err (!%p4883_p3)
}
  0x89   : > { %s4974_s23 = smov 256   ;;  %s4975_s29 = smov 16  }
  0x8a   : > { %4497 = dma.hbm_to_vmem [thread:$0]  (!%p5237_p7), %s5231_s7, 4096, %s5233_s9, %s5241_s14, %s4974_s23, %s4974_s23, %s4975_s29  }
  0x8b   : > { %p6185_p1 = scmp.ne.s32.totalorder %s6169_s30, 0 }
  0x8d   : > { %574 = sbr.rel (%p6185_p1) target bundleno = 1464 (0x5b8), region = 88 }
  0x92   : > { %s5265_s16 = sand.u32 1, %s4955_s25   ;;  %p6186_p3 = scmp.ne.s32.totalorder %s6180_s28, 0 }
  0x93   : > { %s3772_s26 = sshll.u32 %s5265_s16, 8  ;;  %s577_s19 = scalar_lea.sflag [#allocation4], %s5265_s16 }
  0x94   : > { %s5269_s1 = scalar_lea.vmem [#allocation3], %s3772_s26 }
  0x95   : > { %4930 = dma.done.wait (%p6186_p3), %s577_s19, 4096  }
  0x96   : > { %4932 = vsyncadd (%p6186_p3), %s577_s19, 4294963200  ;;  %p6187_p4 = scmp.eq.s32.totalorder %s5093_s0, 0 }
  0x98   : > { %4934 = dma.done.wait (%p6187_p4), [#allocation7], 10240   ;;  %p6188_p6 = pmov %p6187_p4 }
  0x99   : > { %p6189_p12 = pmov %p6187_p4 }
  0x9a   : > { %4936 = vsyncadd (%p6188_p6), [#allocation7], 4294957056 }
  0x9b   : > { %4938 = dma.done.wait (%p6189_p12), [#allocation10], 2048   ;;  %p6190_p0 = pmov %p6187_p4 }
  0x9d   : > { %4940 = vsyncadd (%p6190_p0), [#allocation10], 4294965248  ;;  %p6191_p7 = pmov %p6190_p0 }
  0x9e   : > { %p6192_p2 = pmov %p6190_p0 }
  0x9f   : > { %4942 = dma.done.wait (%p6191_p7), [#allocation13], 2048  }
  0xa0   : > { %4944 = vsyncadd (%p6192_p2), [#allocation13], 4294965248  ;;  %v4563_v0 = vld [vmem:[#allocation6 + $0x38] sm:$0xff]   ;;  %v4564_v1 = vld [vmem:[#allocation6 + $0x30] sm:$0xff]   ;;  %vm1072_vm0 = vcmask 1043459   ;;  %vm1059_vm4 = vcmask 1040384  }
  0xa1   : > { %4271 = vmatprep.subr.bf16.mxu0 %v4563_v0  ;;  %v4565_v2 = vld [vmem:[#allocation6 + $0x28] sm:$0xff]   ;;  %v4566_v3 = vld [vmem:[#allocation6 + $0x20] sm:$0xff]   ;;  %v4567_v7 = vld [vmem:[#allocation6 + $0x18] sm:$0xff]   ;;  %vm1073_vm1 = vsmask.f32 7950  ;;  %vm4978_vm8 = vmmov 0  }
  0xa2   : > { %4272 = vmatpush3.bf16.msra.mxu0 %v4563_v0  ;;  %v657_v4 = vld [vmem:[%s5269_s1] sm:$0xff]  ;;  %v4568_v8 = vld [vmem:[#allocation6 + $0x10] sm:$0xff]   ;;  %v4569_v9 = vld [vmem:[#allocation6 + $0x8] sm:$0xff]   ;;  %vm1060_vm3 = vsmask.f32 256  ;;  %s6209_s30 = sld [smem:[#allocation34_spill]] }
  0xa3   : > { %4273 = vmatprep.subr.bf16.mxu0 %v4564_v1  ;;  %v661_v5 = vld [vmem:[%s5269_s1 + $0x20] sm:$0xff]  ;;  %v658_v19 = vld [vmem:[%s5269_s1 + $0x8] sm:$0xff]  ;;  %v659_v31 = vld [vmem:[%s5269_s1 + $0x10] sm:$0xff]  ;;  %vm1521_vm6 = vsmask.f32 4368  ;;  %s6210_s18 = sld [smem:[#allocation32_spill]] }
  0xa4   : > { %v5289_v6 = vpack.c.bf16 %v661_v5, %v657_v4  ;;  %v4570_v10 = vld [vmem:[#allocation6] sm:$0xff]   ;;  %v662_v20 = vld [vmem:[%s5269_s1 + $0x28] sm:$0xff]  ;;  %v663_v32 = vld [vmem:[%s5269_s1 + $0x30] sm:$0xff]  ;;  %s3779_s17 = sshll.u32 %s5265_s16, 6  ;;  %s4032_s29 = sshll.u32 %s5093_s0, 10 }
  0xa5   : > { %v665_v11 = vld [vmem:[%s5269_s1 + $0x40] sm:$0xff]  ;;  %v693_v22 = vpack.c.bf16 %v662_v20, %v658_v19  ;;  %v666_v23 = vld [vmem:[%s5269_s1 + $0x48] sm:$0xff]  ;;  %v697_v34 = vpack.c.bf16 %v663_v32, %v659_v31  ;;  %v667_v35 = vld [vmem:[%s5269_s1 + $0x50] sm:$0xff]  ;;  %s6062_s23 = scalar_lea.vmem [#allocation15], %s3779_s17  ;;  %s6211_s7 = sld [smem:[#allocation35_spill]] }
  0xa6   : > { %4274 = vmatpush3.bf16.msra.mxu0 %v4564_v1  ;;  %4287 = vmatprep.mubr.bf16.mxu0 %v5289_v6  ;;  %v669_v12 = vld [vmem:[%s5269_s1 + $0x60] sm:$0xff]  ;;  %v670_v24 = vld [vmem:[%s5269_s1 + $0x68] sm:$0xff]  ;;  %v671_v36 = vld [vmem:[%s5269_s1 + $0x70] sm:$0xff]  ;;  %s3628_s26 = sshll.u32 %s6062_s23, 4  ;;  %s3615_s11 = scalar_lea.sflag [#allocation5], %s5265_s16  ;;  %s6085_s26 = int_to_ptr.vmem [resolvable:$true] %s3628_s26 }
  0xa7   : > { %4275 = vmatprep.subr.bf16.mxu0 %v4565_v2  ;;  %v673_v13 = vld [vmem:[%s5269_s1 + $0x80] sm:$0xff]  ;;  %v5296_v15 = vpack.c.bf16 %v669_v12, %v665_v11  ;;  %v674_v25 = vld [vmem:[%s5269_s1 + $0x88] sm:$0xff]  ;;  %v694_v27 = vpack.c.bf16 %v670_v24, %v666_v23  ;;  %v675_v37 = vld [vmem:[%s5269_s1 + $0x90] sm:$0xff]  ;;  %v698_v39 = vpack.c.bf16 %v671_v36, %v667_v35  ;;  %v4976_v24 = vmov 0   ;;  %s4887_s14 = scalar_lea.vmem %s6085_s26, 1024  ;;  %p6212_p8 = scmp.ne.s32.totalorder %s6181_s13, 0 }
  0xa8   : > { %v677_v14 = vld [vmem:[%s5269_s1 + $0xa0] sm:$0xff]  ;;  %v678_v26 = vld [vmem:[%s5269_s1 + $0xa8] sm:$0xff]  ;;  %v679_v38 = vld [vmem:[%s5269_s1 + $0xb0] sm:$0xff]  ;;  %1057 = vst [vmem:[#allocation2 + $0x4] sm:$0xf] %v4976_v24  ;;  %p4888_p9 = scmp.ne.s32.totalorder %s6085_s26, %s4887_s14  ;;  %s4979_s0 = smov [#allocation15]  }
  0xa9   : > { %6193 = vst [vmem:[#allocation23_spill] sm:$0xff] %v5296_v15  ;;  %v5298_v16 = vpack.c.bf16 %v677_v14, %v673_v13  ;;  %v681_v17 = vld [vmem:[%s5269_s1 + $0xc0] sm:$0xff]  ;;  %v695_v28 = vpack.c.bf16 %v678_v26, %v674_v25  ;;  %v682_v29 = vld [vmem:[%s5269_s1 + $0xc8] sm:$0xff]  ;;  %v699_v40 = vpack.c.bf16 %v679_v38, %v675_v37  ;;  %v683_v41 = vld [vmem:[%s5269_s1 + $0xd0] sm:$0xff] }
  0xaa   : > { %4276 = vmatpush3.bf16.msra.mxu0 %v4565_v2  ;;  %v685_v18 = vld [vmem:[%s5269_s1 + $0xe0] sm:$0xff]  ;;  %v686_v30 = vld [vmem:[%s5269_s1 + $0xe8] sm:$0xff]  ;;  %v687_v42 = vld [vmem:[%s5269_s1 + $0xf0] sm:$0xff]  ;;  %1067 = vst [vmem:[#allocation2 + $0x94] sm:$0xf] %v4976_v24  ;;  %p4889_p10 = pnand %p4888_p9, %p6212_p8 }
  0xab   : > { %4277 = vmatprep.subr.bf16.mxu0 %v4566_v3  ;;  %6194 = vst [vmem:[#allocation24_spill] sm:$0xff] %v5298_v16  ;;  %v5306_v21 = vpack.c.bf16 %v685_v18, %v681_v17  ;;  %v696_v33 = vpack.c.bf16 %v686_v30, %v682_v29  ;;  %v660_v43 = vld [vmem:[%s5269_s1 + $0x18] sm:$0xff]  ;;  %v700_v45 = vpack.c.bf16 %v687_v42, %v683_v41  ;;  %v4573_v58 = vld [vmem:[#allocation8 + $0x170] sm:$0xff]   ;;  %v4575_v60 = vld [vmem:[#allocation8 + $0x168] sm:$0xff]   ;;  %s6083_s9 = scalar_lea.hbm %s6211_s7, %s4032_s29 }
  0xac   : > { %v664_v44 = vld [vmem:[%s5269_s1 + $0x38] sm:$0xff]  ;;  %v4574_v59 = vld [vmem:[#allocation8 + $0x130] sm:$0xff]   ;;  %v4576_v61 = vld [vmem:[#allocation8 + $0x128] sm:$0xff]   ;;  %1174 = vst [vmem:[#allocation2 + $0xa4] sm:$0xf] %v4976_v24  ;;  %p4890_p11 = pneg %p4889_p10 }
  0xad   : > { %6195 = vst [vmem:[#allocation25_spill] sm:$0xff] %v5306_v21  ;;  %v701_v46 = vpack.c.bf16 %v664_v44, %v660_v43  ;;  %v668_v47 = vld [vmem:[%s5269_s1 + $0x58] sm:$0xff]  ;;  %v4577_v62 = vld [vmem:[#allocation8 + $0x160] sm:$0xff]   ;;  %v4581_v2 = vld [vmem:[#allocation8 + $0x150] sm:$0xff]  }
  0xae   : > { %4278 = vmatpush3.bf16.msra.mxu0 %v4566_v3  ;;  %v672_v48 = vld [vmem:[%s5269_s1 + $0x78] sm:$0xff]  ;;  %v4578_v63 = vld [vmem:[#allocation8 + $0x120] sm:$0xff]   ;;  %v4582_v3 = vld [vmem:[#allocation8 + $0x110] sm:$0xff]   ;;  %1181 = vst [vmem:[#allocation2 + $0x134] sm:$0xf] %v4976_v24 }
  0xaf   : > { %4279 = vmatprep.subr.bf16.mxu0 %v4567_v7  ;;  %v676_v49 = vld [vmem:[%s5269_s1 + $0x98] sm:$0xff]  ;;  %v702_v51 = vpack.c.bf16 %v672_v48, %v668_v47  ;;  %vm5331_vm2 = vmand %vm1072_vm0, %vm1073_vm1  ;;  %v4583_v5 = vld [vmem:[#allocation8 + $0x148] sm:$0xff]   ;;  %1285 = vst [vmem:[#allocation2 + $0x144] sm:$0xf] %v4976_v24 }
  0xb0   : > { %v680_v50 = vld [vmem:[%s5269_s1 + $0xb8] sm:$0xff]  ;;  %v4585_v12 = vld [vmem:[#allocation8 + $0x140] sm:$0xff]   ;;  %1286 = vst [vmem:[#allocation2 + $0x148] sm:$0xf] %v4976_v24  ;;  %1292 = vst [vmem:[#allocation2 + $0x1d4] sm:$0xf] %v4976_v24 }
  0xb1   : > { %v703_v52 = vpack.c.bf16 %v680_v50, %v676_v49  ;;  %v684_v53 = vld [vmem:[%s5269_s1 + $0xd8] sm:$0xff]  ;;  %v1192_v13 = vld [vmem:[#allocation2 + $0xc4] sm:$0x8]  ;;  %1403 = vst [vmem:[#allocation2 + $0x274] sm:$0xf] %v4976_v24  ;;  %v4594_v26 = vld [vmem:[#allocation8 + $0x70] sm:$0xff]  }
  0xb2   : > { %4280 = vmatpush3.bf16.msra.mxu0 %v4567_v7  ;;  %v688_v54 = vld [vmem:[%s5269_s1 + $0xf8] sm:$0xff]  ;;  %v1189_v7 = vld [vmem:[#allocation2 + $0xb4] sm:$0x8]  ;;  %v4586_v14 = vld [vmem:[#allocation8 + $0x100] sm:$0xff]   ;;  %v1193_v17 = vsel %vm5331_vm2, 0, %v1192_v13 }
  0xb3   : > { %4281 = vmatprep.subr.bf16.mxu0 %v4568_v8  ;;  %v704_v55 = vpack.c.bf16 %v688_v54, %v684_v53  ;;  %v4571_v56 = vld [vmem:[#allocation8 + $0x178] sm:$0xff]   ;;  %v1198_v18 = vld [vmem:[#allocation2 + $0xe4] sm:$0x8]  ;;  %1194 = vst [vmem:[#allocation2 + $0xc4] sm:$0x8] %v1193_v17  ;;  %v4598_v32 = vld [vmem:[#allocation8 + $0x68] sm:$0xff]  }
  0xb4   : > { %v4572_v57 = vld [vmem:[#allocation8 + $0x138] sm:$0xff]   ;;  %v1199_v19 = vsel %vm5331_vm2, 0, %v1198_v18  ;;  %1396 = vst [vmem:[#allocation2 + $0x1e4] sm:$0xf] %v4976_v24  ;;  %1397 = vst [vmem:[#allocation2 + $0x1e8] sm:$0xf] %v4976_v24 }
  0xb5   : > { %v4579_v0 = vld [vmem:[#allocation8 + $0x158] sm:$0xff]   ;;  %1200 = vst [vmem:[#allocation2 + $0xe4] sm:$0x8] %v1199_v19  ;;  %v1207_v25 = vld [vmem:[#allocation2 + $0x114] sm:$0x8]  ;;  %v4603_v37 = vld [vmem:[#allocation8 + $0x60] sm:$0xff]  }
  0xb6   : > { %4282 = vmatpush3.bf16.msra.mxu0 %v4568_v8  ;;  %v4580_v1 = vld [vmem:[#allocation8 + $0x118] sm:$0xff]   ;;  %v4584_v8 = vld [vmem:[#allocation8 + $0x108] sm:$0xff]   ;;  %v1201_v29 = vld [vmem:[#allocation2 + $0xf4] sm:$0x8] }
  0xb7   : > { %4283 = vmatprep.subr.bf16.mxu0 %v4569_v9  ;;  %v5343_v20 = vld [vmem:[#allocation8 + $0x238] sm:$0xff]   ;;  %v1202_v30 = vsel %vm5331_vm2, 0, %v1201_v29  ;;  %v1210_v31 = vld [vmem:[#allocation2 + $0x124] sm:$0x8]  ;;  %v1078_v44 = vld [vmem:[#allocation2 + $0x14] sm:$0x8] }
  0xb8   : > { %v4592_v23 = vld [vmem:[#allocation8 + $0x38] sm:$0xff]   ;;  %1203 = vst [vmem:[#allocation2 + $0xf4] sm:$0x8] %v1202_v30  ;;  %v1204_v35 = vld [vmem:[#allocation2 + $0x104] sm:$0x8]  ;;  %v1079_v47 = vsel %vm5331_vm2, 0, %v1078_v44  ;;  %vm5407_vm5 = vmand %vm1059_vm4, %vm1060_vm3 }
  0xb9   : > { %v1205_v36 = vsel %vm5331_vm2, 0, %v1204_v35  ;;  %v4604_v38 = vld [vmem:[#allocation8 + $0x20] sm:$0xff]   ;;  %v4609_v42 = vld [vmem:[#allocation8 + $0x18] sm:$0xff]   ;;  %v1084_v49 = vld [vmem:[#allocation2 + $0x34] sm:$0x8] }
  0xba   : > { %4284 = vmatpush3.bf16.msra.mxu0 %v4569_v9  ;;  %v1190_v9 = vsel %vm5331_vm2, 0, %v1189_v7  ;;  %1206 = vst [vmem:[#allocation2 + $0x104] sm:$0x8] %v1205_v36  ;;  %v1075_v43 = vld [vmem:[#allocation2 + $0x4] sm:$0x8]  ;;  %v1085_v50 = vsel %vm5331_vm2, 0, %v1084_v49  ;;  %vm5652_vm7 = vmor %vm1060_vm3, %vm1521_vm6 }
  0xbb   : > { %4285 = vmatprep.subr.bf16.mxu0 %v4570_v10  ;;  %1191 = vst [vmem:[#allocation2 + $0xb4] sm:$0x8] %v1190_v9  ;;  %1080 = vst [vmem:[#allocation2 + $0x14] sm:$0x8] %v1079_v47  ;;  %v4611_v53 = vld [vmem:[#allocation8 + $0x50] sm:$0xff]   ;;  %v4615_v35 = vld [vmem:[#allocation8 + $0x48] sm:$0xff]  }
  0xbc   : > { %1086 = vst [vmem:[#allocation2 + $0x34] sm:$0x8] %v1085_v50  ;;  %v1300_v7 = vld [vmem:[#allocation2 + $0x154] sm:$0x8]  ;;  %v1309_v18 = vld [vmem:[#allocation2 + $0x184] sm:$0x8] }
  0xbd   : > { %v1301_v9 = vsel %vm5331_vm2, 0, %v1300_v7  ;;  %v1411_v13 = vld [vmem:[#allocation2 + $0x1f4] sm:$0x8]  ;;  %v1315_v24 = vld [vmem:[#allocation2 + $0x1a4] sm:$0x8] }
  0xbe   : > { %4286 = vmatpush3.bf16.msra.mxu0 %v4570_v10  ;;  %v1195_v10 = vld [vmem:[#allocation2 + $0xd4] sm:$0x8]  ;;  %1302 = vst [vmem:[#allocation2 + $0x154] sm:$0x8] %v1301_v9  ;;  %v1108_v44 = vld [vmem:[#allocation2 + $0x1c] sm:$0x1] }
  0xbf   : > { %4137 = vmatprep.subr.bf16.mxu0 %v4571_v56  ;;  %v1196_v11 = vsel %vm5331_vm2, 0, %v1195_v10  ;;  %v1093_v56 = vld [vmem:[#allocation2 + $0x64] sm:$0x8]  ;;  %v1312_v19 = vld [vmem:[#allocation2 + $0x194] sm:$0x8] }
  0xc0   : > { %1197 = vst [vmem:[#allocation2 + $0xd4] sm:$0x8] %v1196_v11  ;;  %v1303_v10 = vld [vmem:[#allocation2 + $0x164] sm:$0x8]  ;;  %v1306_v11 = vld [vmem:[#allocation2 + $0x174] sm:$0x8] }
  0xc1   : > { %4288 = vmatmul.mubr.bf16.vlgmr.msra.gmra.mxu0 %v5296_v15  ;;  %v1307_v17 = vsel %vm5331_vm2, 0, %v1306_v11  ;;  %v1324_v29 = vld [vmem:[#allocation2 + $0x1d4] sm:$0x8]  ;;  %v1114_v50 = vld [vmem:[#allocation2 + $0x3c] sm:$0x1] }
  0xc2   : > { %4291 = vmatprep.mubr.bf16.mxu0 %v5298_v16  ;;  %4138 = vmatpush3.bf16.msra.mxu0 %v4572_v57  ;;  %v1096_v57 = vld [vmem:[#allocation2 + $0x74] sm:$0x8]  ;;  %1308 = vst [vmem:[#allocation2 + $0x174] sm:$0x8] %v1307_v17  ;;  %v1222_v7 = vld [vmem:[#allocation2 + $0xcc] sm:$0x1] }
  0xc3   : > { %4139 = vmatprep.subr.bf16.mxu0 %v4573_v58  ;;  %v1094_v58 = vsel %vm5331_vm2, 0, %v1093_v56  ;;  %v1223_v9 = vsel %vm5407_vm5, 0, %v1222_v7  ;;  %v1228_v11 = vld [vmem:[#allocation2 + $0xec] sm:$0x1]  ;;  %v1453_v7 = vld [vmem:[#allocation2 + $0x23c] sm:$0x1] }
  0xc4   : > { %1095 = vst [vmem:[#allocation2 + $0x64] sm:$0x8] %v1094_v58  ;;  %v1126_v58 = vld [vmem:[#allocation2 + $0x7c] sm:$0x1]  ;;  %1224 = vst [vmem:[#allocation2 + $0xcc] sm:$0x1] %v1223_v9 }
  0xc5   : > { %v1234_v17 = vld [vmem:[#allocation2 + $0x10c] sm:$0x1]  ;;  %v1454_v9 = vsel %vm5407_vm5, 0, %v1453_v7 }
  0xc6   : > { %4140 = vmatpush3.bf16.msra.mxu0 %v4574_v59  ;;  %v1097_v59 = vsel %vm5331_vm2, 0, %v1096_v57  ;;  %v1123_v57 = vld [vmem:[#allocation2 + $0x6c] sm:$0x1]  ;;  %1455 = vst [vmem:[#allocation2 + $0x23c] sm:$0x1] %v1454_v9 }
  0xc7   : > { %4141 = vmatprep.subr.bf16.mxu0 %v4575_v60  ;;  %v1099_v60 = vld [vmem:[#allocation2 + $0x84] sm:$0x8]  ;;  %1098 = vst [vmem:[#allocation2 + $0x74] sm:$0x8] %v1097_v59  ;;  %v1124_v59 = vsel %vm5407_vm5, 0, %v1123_v57 }
  0xc8   : > { %1125 = vst [vmem:[#allocation2 + $0x6c] sm:$0x1] %v1124_v59  ;;  %v1441_v57 = vld [vmem:[#allocation2 + $0x1fc] sm:$0x1] }
  0xc9   : > { %4292 = vmatmul.mubr.bf16.gmra.mxu0 %v5306_v21  ;;  %v1442_v59 = vsel %vm5407_vm5, 0, %v1441_v57 }
  0xca   : > { %4295 = vmatprep.mubr.bf16.mxu0 %v693_v22  ;;  %4142 = vmatpush3.bf16.msra.mxu0 %v4576_v61  ;;  %v4590_v22 = vld [vmem:[#allocation8 + $0x78] sm:$0xff]   ;;  %v1102_v61 = vld [vmem:[#allocation2 + $0x94] sm:$0x8]  ;;  %1443 = vst [vmem:[#allocation2 + $0x1fc] sm:$0x1] %v1442_v59 }
  0xcb   : > { %4143 = vmatprep.subr.bf16.mxu0 %v4577_v62  ;;  %4057 = vmatprep.subr.bf16.mxu1 %v4590_v22  ;;  %v1100_v62 = vsel %vm5331_vm2, 0, %v1099_v60  ;;  %v1310_v22 = vsel %vm5331_vm2, 0, %v1309_v18  ;;  %v1127_v60 = vsel %vm5407_vm5, 0, %v1126_v58  ;;  %v1237_v18 = vld [vmem:[#allocation2 + $0x11c] sm:$0x1] }
  0xcc   : > { %4058 = vmatpush3.bf16.msra.mxu1 %v4592_v23  ;;  %1101 = vst [vmem:[#allocation2 + $0x84] sm:$0x8] %v1100_v62  ;;  %v1313_v23 = vsel %vm5331_vm2, 0, %v1312_v19  ;;  %1311 = vst [vmem:[#allocation2 + $0x184] sm:$0x8] %v1310_v22 }
  0xcd   : > { %4059 = vmatprep.subr.bf16.mxu1 %v4594_v26  ;;  %1314 = vst [vmem:[#allocation2 + $0x194] sm:$0x8] %v1313_v23  ;;  %v1316_v26 = vsel %vm5331_vm2, 0, %v1315_v24  ;;  %v1176_v62 = vld [vmem:[#allocation2 + $0xac] sm:$0x1]  ;;  %v1235_v23 = vsel %vm5407_vm5, 0, %v1234_v17 }
  0xce   : > { %4144 = vmatpush3.bf16.msra.mxu0 %v4578_v63  ;;  %v1103_v63 = vsel %vm5331_vm2, 0, %v1102_v61  ;;  %1317 = vst [vmem:[#allocation2 + $0x1a4] sm:$0x8] %v1316_v26  ;;  %v1129_v61 = vld [vmem:[#allocation2 + $0x8c] sm:$0x1]  ;;  %v1238_v24 = vsel %vm5407_vm5, 0, %v1237_v18 }
  0xcf   : > { %4145 = vmatprep.subr.bf16.mxu0 %v4579_v0  ;;  %v1186_v0 = vld [vmem:[#allocation2 + $0xa4] sm:$0x8]  ;;  %1104 = vst [vmem:[#allocation2 + $0x94] sm:$0x8] %v1103_v63  ;;  %1128 = vst [vmem:[#allocation2 + $0x7c] sm:$0x1] %v1127_v60 }
  0xd0   : > { %v1130_v63 = vsel %vm5407_vm5, 0, %v1129_v61  ;;  %1236 = vst [vmem:[#allocation2 + $0x10c] sm:$0x1] %v1235_v23  ;;  %1239 = vst [vmem:[#allocation2 + $0x11c] sm:$0x1] %v1238_v24 }
  0xd1   : > { %4296 = vmatmul.mubr.bf16.gmra.mxu0 %v694_v27  ;;  %v1208_v27 = vsel %vm5331_vm2, 0, %v1207_v25  ;;  %v1318_v25 = vld [vmem:[#allocation2 + $0x1b4] sm:$0x8]  ;;  %1131 = vst [vmem:[#allocation2 + $0x8c] sm:$0x1] %v1130_v63 }
  0xd2   : > { %4299 = vmatprep.mubr.bf16.mxu0 %v695_v28  ;;  %4146 = vmatpush3.bf16.msra.mxu0 %v4580_v1  ;;  %v4595_v28 = vld [vmem:[#allocation8 + $0x30] sm:$0xff]   ;;  %1209 = vst [vmem:[#allocation2 + $0x114] sm:$0x8] %v1208_v27  ;;  %v1319_v27 = vsel %vm5331_vm2, 0, %v1318_v25  ;;  %v1444_v60 = vld [vmem:[#allocation2 + $0x20c] sm:$0x1] }
  0xd3   : > { %4147 = vmatprep.subr.bf16.mxu0 %v4581_v2  ;;  %4060 = vmatpush3.bf16.msra.mxu1 %v4595_v28  ;;  %v1213_v1 = vld [vmem:[#allocation2 + $0x134] sm:$0x8]  ;;  %v1187_v2 = vsel %vm5331_vm2, 0, %v1186_v0  ;;  %v1321_v28 = vld [vmem:[#allocation2 + $0x1c4] sm:$0x8]  ;;  %v1177_v0 = vsel %vm5407_vm5, 0, %v1176_v62 }
  0xd4   : > { %4061 = vmatprep.subr.bf16.mxu1 %v4598_v32  ;;  %1188 = vst [vmem:[#allocation2 + $0xa4] sm:$0x8] %v1187_v2  ;;  %1320 = vst [vmem:[#allocation2 + $0x1b4] sm:$0x8] %v1319_v27  ;;  %v1322_v30 = vsel %vm5331_vm2, 0, %v1321_v28  ;;  %v1445_v63 = vsel %vm5407_vm5, 0, %v1444_v60 }
  0xd5   : > { %v1435_v32 = vld [vmem:[#allocation2 + $0x274] sm:$0x8]  ;;  %1323 = vst [vmem:[#allocation2 + $0x1c4] sm:$0x8] %v1322_v30  ;;  %v1219_v2 = vld [vmem:[#allocation2 + $0xbc] sm:$0x1] }
  0xd6   : > { %4148 = vmatpush3.bf16.msra.mxu0 %v4582_v3  ;;  %v1214_v3 = vsel %vm5331_vm2, 0, %v1213_v1  ;;  %v1183_v1 = vld [vmem:[#allocation2 + $0x13c] sm:$0x1]  ;;  %1178 = vst [vmem:[#allocation2 + $0xac] sm:$0x1] %v1177_v0 }
  0xd7   : > { %4149 = vmatprep.subr.bf16.mxu0 %v4583_v5  ;;  %v1297_v5 = vld [vmem:[#allocation2 + $0x144] sm:$0x8]  ;;  %1215 = vst [vmem:[#allocation2 + $0x134] sm:$0x8] %v1214_v3  ;;  %v1184_v3 = vsel %vm5407_vm5, 0, %v1183_v1 }
  0xd8   : > { %1185 = vst [vmem:[#allocation2 + $0x13c] sm:$0x1] %v1184_v3  ;;  %v1240_v27 = vld [vmem:[#allocation2 + $0x12c] sm:$0x1]  ;;  %v1447_v61 = vld [vmem:[#allocation2 + $0x21c] sm:$0x1] }
  0xd9   : > { %4300 = vmatmul.mubr.bf16.gmra.mxu0 %v696_v33  ;;  %v1211_v33 = vsel %vm5331_vm2, 0, %v1210_v31  ;;  %v1325_v31 = vsel %vm5331_vm2, 0, %v1324_v29  ;;  %v1287_v28 = vld [vmem:[#allocation2 + $0x14c] sm:$0x1]  ;;  %v1241_v29 = vsel %vm5407_vm5, 0, %v1240_v27  ;;  %v1448_v0 = vsel %vm5407_vm5, 0, %v1447_v61 }
  0xda   : > { %4303 = vmatprep.mubr.bf16.mxu0 %v697_v34  ;;  %4150 = vmatpush3.bf16.msra.mxu0 %v4584_v8  ;;  %v4600_v34 = vld [vmem:[#allocation8 + $0x28] sm:$0xff]   ;;  %1212 = vst [vmem:[#allocation2 + $0x124] sm:$0x8] %v1211_v33  ;;  %v1298_v8 = vsel %vm5331_vm2, 0, %v1297_v5  ;;  %v4612_v33 = vld [vmem:[#allocation8 + $0x10] sm:$0xff]   ;;  %v1220_v5 = vsel %vm5407_vm5, 0, %v1219_v2 }
  0xdb   : > { %4151 = vmatprep.subr.bf16.mxu0 %v4585_v12  ;;  %4062 = vmatpush3.bf16.msra.mxu1 %v4600_v34  ;;  %v1408_v12 = vld [vmem:[#allocation2 + $0x1e4] sm:$0x8]  ;;  %1299 = vst [vmem:[#allocation2 + $0x144] sm:$0x8] %v1298_v8  ;;  %1326 = vst [vmem:[#allocation2 + $0x1d4] sm:$0x8] %v1325_v31 }
  0xdc   : > { %4063 = vmatprep.subr.bf16.mxu1 %v4603_v37  ;;  %v1436_v34 = vsel %vm5331_vm2, 0, %v1435_v32  ;;  %v1409_v36 = vsel %vm5331_vm2, 0, %v1408_v12  ;;  %v1412_v37 = vsel %vm5331_vm2, 0, %v1411_v13  ;;  %v1225_v8 = vld [vmem:[#allocation2 + $0xdc] sm:$0x1]  ;;  %v1229_v13 = vsel %vm5407_vm5, 0, %v1228_v11 }
  0xdd   : > { %1437 = vst [vmem:[#allocation2 + $0x274] sm:$0x8] %v1436_v34  ;;  %1410 = vst [vmem:[#allocation2 + $0x1e4] sm:$0x8] %v1409_v36  ;;  %v1231_v12 = vld [vmem:[#allocation2 + $0xfc] sm:$0x1] }
  0xde   : > { %4152 = vmatpush3.bf16.msra.mxu0 %v4586_v14  ;;  %v1304_v14 = vsel %vm5331_vm2, 0, %v1303_v10  ;;  %1413 = vst [vmem:[#allocation2 + $0x1f4] sm:$0x8] %v1412_v37  ;;  %1221 = vst [vmem:[#allocation2 + $0xbc] sm:$0x1] %v1220_v5  ;;  %v1226_v10 = vsel %vm5407_vm5, 0, %v1225_v8 }
  0xdf   : > { %4319 = vmatprep.subr.bf16.mxu0 %v5343_v20  ;;  %4064 = vmatpush3.bf16.msra.mxu1 %v4604_v38  ;;  %1305 = vst [vmem:[#allocation2 + $0x164] sm:$0x8] %v1304_v14  ;;  %v4616_v38 = vld [vmem:[#allocation8 + $0x8] sm:$0xff]   ;;  %1227 = vst [vmem:[#allocation2 + $0xdc] sm:$0x1] %v1226_v10  ;;  %v1232_v14 = vsel %vm5407_vm5, 0, %v1231_v12 }
  0xe0   : > { %1230 = vst [vmem:[#allocation2 + $0xec] sm:$0x1] %v1229_v13  ;;  %1233 = vst [vmem:[#allocation2 + $0xfc] sm:$0x1] %v1232_v14  ;;  %v1288_v30 = vsel %vm5407_vm5, 0, %v1287_v28 }
  0xe1   : > { %4304 = vmatmul.mubr.bf16.gmra.mxu0 %v698_v39  ;;  %v1417_v39 = vld [vmem:[#allocation2 + $0x214] sm:$0x8]  ;;  %v1294_v31 = vld [vmem:[#allocation2 + $0x1dc] sm:$0x1]  ;;  %1242 = vst [vmem:[#allocation2 + $0x12c] sm:$0x1] %v1241_v29 }
  0xe2   : > { %4307 = vmatprep.mubr.bf16.mxu0 %v699_v40  ;;  %v4607_v40 = vld [vmem:[#allocation8 + $0x58] sm:$0xff]   ;;  %v1418_v41 = vsel %vm5331_vm2, 0, %v1417_v39  ;;  %v4618_v39 = vld [vmem:[#allocation8 + $0x40] sm:$0xff]   ;;  %1289 = vst [vmem:[#allocation2 + $0x14c] sm:$0x1] %v1288_v30 }
  0xe3   : > { %1419 = vst [vmem:[#allocation2 + $0x214] sm:$0x8] %v1418_v41  ;;  %4065 = vmatprep.subr.bf16.mxu1 %v4607_v40  ;;  %v1062_v40 = vld [vmem:[#allocation2 + $0xc] sm:$0x1]  ;;  %v1069_v41 = vld [vmem:[#allocation2 + $0x9c] sm:$0x1] }
  0xe4   : > { %4066 = vmatpush3.bf16.msra.mxu1 %v4609_v42  ;;  %v4619_v42 = vld [vmem:[#allocation8] sm:$0xff]   ;;  %v1070_v47 = vsel %vm5407_vm5, 0, %v1069_v41  ;;  %v1330_v32 = vld [vmem:[#allocation2 + $0x15c] sm:$0x1]  ;;  %v1216_v37 = vld [vmem:[#allocation2 + $0xac] sm:$0x1] }
  0xe5   : > { %4067 = vmatprep.subr.bf16.mxu1 %v4611_v53  ;;  %1071 = vst [vmem:[#allocation2 + $0x9c] sm:$0x1] %v1070_v47  ;;  %v1117_v53 = vld [vmem:[#allocation2 + $0x4c] sm:$0x1]  ;;  %v1331_v34 = vsel %vm5407_vm5, 0, %v1330_v32  ;;  %v1217_v41 = vsel %vm5407_vm5, 0, %v1216_v37 }
  0xe6   : > { %v1336_v36 = vld [vmem:[#allocation2 + $0x17c] sm:$0x1]  ;;  %1332 = vst [vmem:[#allocation2 + $0x15c] sm:$0x1] %v1331_v34  ;;  %1218 = vst [vmem:[#allocation2 + $0xac] sm:$0x1] %v1217_v41 }
  0xe7   : > { %v1450_v1 = vld [vmem:[#allocation2 + $0x22c] sm:$0x1]  ;;  %1446 = vst [vmem:[#allocation2 + $0x20c] sm:$0x1] %v1445_v63  ;;  %1449 = vst [vmem:[#allocation2 + $0x21c] sm:$0x1] %v1448_v0 }
  0xe8   : > { %4068 = vmatpush3.bf16.msra.mxu1 %v4612_v33  ;;  %v1295_v33 = vsel %vm5407_vm5, 0, %v1294_v31  ;;  %v1451_v5 = vsel %vm5407_vm5, 0, %v1450_v1  ;;  %v1456_v10 = vld [vmem:[#allocation2 + $0x24c] sm:$0x1]  ;;  %v1459_v11 = vld [vmem:[#allocation2 + $0x25c] sm:$0x1] }
  0xe9   : > { %4308 = vmatmul.mubr.bf16.gmra.mxu0 %v700_v45  ;;  %v1081_v45 = vld [vmem:[#allocation2 + $0x24] sm:$0x8]  ;;  %4069 = vmatprep.subr.bf16.mxu1 %v4615_v35  ;;  %v1333_v35 = vld [vmem:[#allocation2 + $0x16c] sm:$0x1]  ;;  %1296 = vst [vmem:[#allocation2 + $0x1dc] sm:$0x1] %v1295_v33 }
  0xea   : > { %4311 = vmatprep.mubr.bf16.mxu0 %v701_v46  ;;  %v1076_v46 = vsel %vm5331_vm2, 0, %v1075_v43  ;;  %v1082_v48 = vsel %vm5331_vm2, 0, %v1081_v45  ;;  %v1111_v45 = vld [vmem:[#allocation2 + $0x2c] sm:$0x1]  ;;  %1452 = vst [vmem:[#allocation2 + $0x22c] sm:$0x1] %v1451_v5 }
  0xeb   : > { %1077 = vst [vmem:[#allocation2 + $0x4] sm:$0x8] %v1076_v46  ;;  %1083 = vst [vmem:[#allocation2 + $0x24] sm:$0x8] %v1082_v48  ;;  %v1063_v46 = vsel %vm5407_vm5, 0, %v1062_v40  ;;  %v1109_v48 = vsel %vm5407_vm5, 0, %v1108_v44 }
  0xec   : > { %v1112_v49 = vsel %vm5407_vm5, 0, %v1111_v45  ;;  %4070 = vmatpush3.bf16.msra.mxu1 %v4616_v38  ;;  %1064 = vst [vmem:[#allocation2 + $0xc] sm:$0x1] %v1063_v46  ;;  %1110 = vst [vmem:[#allocation2 + $0x1c] sm:$0x1] %v1109_v48  ;;  %v1334_v38 = vsel %vm5407_vm5, 0, %v1333_v35 }
  0xed   : > { %1113 = vst [vmem:[#allocation2 + $0x2c] sm:$0x1] %v1112_v49  ;;  %4071 = vmatprep.subr.bf16.mxu1 %v4618_v39  ;;  %v1132_v22 = vld [vmem:[#allocation2 + $0x9c] sm:$0x1]  ;;  %v1337_v39 = vsel %vm5407_vm5, 0, %v1336_v36  ;;  %v1457_v12 = vsel %vm5407_vm5, 0, %v1456_v10 }
  0xee   : > { %v1133_v26 = vsel %vm5407_vm5, 0, %v1132_v22  ;;  %v1339_v40 = vld [vmem:[#allocation2 + $0x18c] sm:$0x1]  ;;  %1335 = vst [vmem:[#allocation2 + $0x16c] sm:$0x1] %v1334_v38  ;;  %v1460_v13 = vsel %vm5407_vm5, 0, %v1459_v11 }
  0xef   : > { %1134 = vst [vmem:[#allocation2 + $0x9c] sm:$0x1] %v1133_v26  ;;  %1338 = vst [vmem:[#allocation2 + $0x17c] sm:$0x1] %v1337_v39  ;;  %v1340_v44 = vsel %vm5407_vm5, 0, %v1339_v40 }
  0xf0   : > { %4072 = vmatpush3.bf16.msra.mxu1 %v4619_v42  ;;  %v1243_v42 = vld [vmem:[#allocation2 + $0x13c] sm:$0x1]  ;;  %1341 = vst [vmem:[#allocation2 + $0x18c] sm:$0x1] %v1340_v44  ;;  %v1345_v48 = vld [vmem:[#allocation2 + $0x1ac] sm:$0x1] }
  0xf1   : > { %4312 = vmatmul.mubr.bf16.gmra.mxu0 %v702_v51  ;;  %v1087_v51 = vld [vmem:[#allocation2 + $0x44] sm:$0x8]  ;;  %v1342_v45 = vld [vmem:[#allocation2 + $0x19c] sm:$0x1]  ;;  %v1244_v46 = vsel %vm5407_vm5, 0, %v1243_v42 }
  0xf2   : > { %4315 = vmatprep.mubr.bf16.mxu0 %v703_v52  ;;  %v1090_v52 = vld [vmem:[#allocation2 + $0x54] sm:$0x8]  ;;  %v1088_v54 = vsel %vm5331_vm2, 0, %v1087_v51  ;;  %v4622_v51 = vld [vmem:[#allocation8 + $0xf8] sm:$0xff]   ;;  %v1343_v47 = vsel %vm5407_vm5, 0, %v1342_v45 }
  0xf3   : > { %1089 = vst [vmem:[#allocation2 + $0x44] sm:$0x8] %v1088_v54  ;;  %v1120_v54 = vld [vmem:[#allocation2 + $0x5c] sm:$0x1]  ;;  %4097 = vmatprep.subr.bf16.mxu1 %v4622_v51  ;;  %v1105_v19 = vld [vmem:[#allocation2 + $0xc] sm:$0x1] }
  0xf4   : > { %v1121_v56 = vsel %vm5407_vm5, 0, %v1120_v54  ;;  %v1106_v25 = vsel %vm5407_vm5, 0, %v1105_v19  ;;  %v1348_v49 = vld [vmem:[#allocation2 + $0x1bc] sm:$0x1]  ;;  %1245 = vst [vmem:[#allocation2 + $0x13c] sm:$0x1] %v1244_v46 }
  0xf5   : > { %1122 = vst [vmem:[#allocation2 + $0x5c] sm:$0x1] %v1121_v56  ;;  %1107 = vst [vmem:[#allocation2 + $0xc] sm:$0x1] %v1106_v25  ;;  %v1349_v51 = vsel %vm5407_vm5, 0, %v1348_v49 }
  0xf6   : > { %1344 = vst [vmem:[#allocation2 + $0x19c] sm:$0x1] %v1343_v47  ;;  %1350 = vst [vmem:[#allocation2 + $0x1bc] sm:$0x1] %v1349_v51  ;;  %v1405_v56 = vld [vmem:[#allocation2 + $0x27c] sm:$0x1] }
  0xf7   : > { %v1406_v58 = vsel %vm5407_vm5, 0, %v1405_v56  ;;  %v1327_v62 = vld [vmem:[#allocation2 + $0x14c] sm:$0x1]  ;;  %v1354_v3 = vld [vmem:[#allocation2 + $0x1dc] sm:$0x1] }
  0xf8   : > { %1407 = vst [vmem:[#allocation2 + $0x27c] sm:$0x1] %v1406_v58  ;;  %v1328_v2 = vsel %vm5407_vm5, 0, %v1327_v62  ;;  %v1355_v8 = vsel %vm5407_vm5, 0, %v1354_v3  ;;  %v1462_v14 = vld [vmem:[#allocation2 + $0x26c] sm:$0x1] }
  0xf9   : > { %4316 = vmatmul.mubr.bf16.gmra.mxu0 %v704_v55  ;;  %v1091_v55 = vsel %vm5331_vm2, 0, %v1090_v52  ;;  %v1115_v52 = vsel %vm5407_vm5, 0, %v1114_v50  ;;  %v1346_v50 = vsel %vm5407_vm5, 0, %v1345_v48  ;;  %1329 = vst [vmem:[#allocation2 + $0x14c] sm:$0x1] %v1328_v2  ;;  %v1463_v17 = vsel %vm5407_vm5, 0, %v1462_v14 }
  0xfa   : > { %1092 = vst [vmem:[#allocation2 + $0x54] sm:$0x8] %v1091_v55  ;;  %1116 = vst [vmem:[#allocation2 + $0x3c] sm:$0x1] %v1115_v52  ;;  %v1118_v55 = vsel %vm5407_vm5, 0, %v1117_v53 }
  0xfb   : > { %1119 = vst [vmem:[#allocation2 + $0x4c] sm:$0x1] %v1118_v55  ;;  %v1351_v52 = vld [vmem:[#allocation2 + $0x1cc] sm:$0x1]  ;;  %1347 = vst [vmem:[#allocation2 + $0x1ac] sm:$0x1] %v1346_v50 }
  0xfc   : > { %v1398_v53 = vld [vmem:[#allocation2 + $0x1ec] sm:$0x1]  ;;  %v1352_v54 = vsel %vm5407_vm5, 0, %v1351_v52  ;;  %1356 = vst [vmem:[#allocation2 + $0x1dc] sm:$0x1] %v1355_v8 }
  0xfd   : > { %v1399_v55 = vsel %vm5407_vm5, 0, %v1398_v53  ;;  %1353 = vst [vmem:[#allocation2 + $0x1cc] sm:$0x1] %v1352_v54  ;;  %1458 = vst [vmem:[#allocation2 + $0x24c] sm:$0x1] %v1457_v12 }
  0xfe   : > { %1400 = vst [vmem:[#allocation2 + $0x1ec] sm:$0x1] %v1399_v55  ;;  %1461 = vst [vmem:[#allocation2 + $0x25c] sm:$0x1] %v1460_v13  ;;  %v1414_v18 = vld [vmem:[#allocation2 + $0x204] sm:$0x8] }
  0xff   : > { %1464 = vst [vmem:[#allocation2 + $0x26c] sm:$0x1] %v1463_v17  ;;  %v1415_v22 = vsel %vm5331_vm2, 0, %v1414_v18  ;;  %v1465_v24 = vld [vmem:[#allocation2 + $0x27c] sm:$0x1] }
 0x100   : > { %1416 = vst [vmem:[#allocation2 + $0x204] sm:$0x8] %v1415_v22  ;;  %v1466_v25 = vsel %vm5407_vm5, 0, %v1465_v24  ;;  %v1420_v26 = vld [vmem:[#allocation2 + $0x224] sm:$0x8] }
 0x101   : > { %1467 = vst [vmem:[#allocation2 + $0x27c] sm:$0x1] %v1466_v25  ;;  %v1423_v27 = vld [vmem:[#allocation2 + $0x234] sm:$0x8]  ;;  %v1421_v28 = vsel %vm5331_vm2, 0, %v1420_v26 }
 0x102   : > { %v1424_v29 = vsel %vm5331_vm2, 0, %v1423_v27  ;;  %1422 = vst [vmem:[#allocation2 + $0x224] sm:$0x8] %v1421_v28  ;;  %v1426_v30 = vld [vmem:[#allocation2 + $0x244] sm:$0x8] }
 0x103   : > { %1425 = vst [vmem:[#allocation2 + $0x234] sm:$0x8] %v1424_v29  ;;  %v1429_v31 = vld [vmem:[#allocation2 + $0x254] sm:$0x8]  ;;  %v1427_v32 = vsel %vm5331_vm2, 0, %v1426_v30 }
 0x104   : > { %v1430_v43 = vsel %vm5331_vm2, 0, %v1429_v31  ;;  %1428 = vst [vmem:[#allocation2 + $0x244] sm:$0x8] %v1427_v32  ;;  %v1432_v33 = vld [vmem:[#allocation2 + $0x264] sm:$0x8] }
 0x105   : > { %v1438_v19 = vld [vmem:[#allocation2 + $0x1ec] sm:$0x1]  ;;  %1431 = vst [vmem:[#allocation2 + $0x254] sm:$0x8] %v1430_v43  ;;  %v1433_v34 = vsel %vm5331_vm2, 0, %v1432_v33 }
 0x106   : > { %v1439_v23 = vsel %vm5407_vm5, 0, %v1438_v19  ;;  %1434 = vst [vmem:[#allocation2 + $0x264] sm:$0x8] %v1433_v34  ;;  %v5522_v35 = vld [vmem:[%s6132_s2] ss:$0 sm:$0xff] }
 0x107   : > { %1440 = vst [vmem:[#allocation2 + $0x1ec] sm:$0x1] %v1439_v23  ;;  %v5527_v37 = vld [vmem:[%s6133_s3] ss:$0 sm:$0xff] }
 0x181   : > { %v4289_v36 = vpop.f32.mrf.mxu0 }
 0x182   : > { %v939_v38 = vmul.f32 %v4289_v36, %v5522_v35 }
 0x183   : > { %v803_v39 = vpop.f32.mrf.mxu0 }
 0x184   : > { %v978_v40 = vadd.f32 %v5527_v37, %v939_v38  ;;  %v937_v4 = vmul.f32 %v5522_v35, %v803_v39 }
 0x185   : > { %v4290_v41 = vpop.f32.mrf.mxu0 }
 0x186   : > { %v1010_v42 = vmax.f32 %v978_v40, 0.0  ;;  %v976_v44 = vadd.f32 %v5527_v37, %v937_v4  ;;  %v940_v45 = vmul.f32 %v4290_v41, %v5522_v35 }
 0x187   : > { %v806_v46 = vpop.f32.mrf.mxu0 }
 0x188   : > { %v4002_v47 = vpack.c.bf16 %v1010_v42, %v1010_v42  ;;  %v1008_v48 = vmax.f32 %v976_v44, 0.0  ;;  %v979_v49 = vadd.f32 %v5527_v37, %v940_v45  ;;  %v938_v50 = vmul.f32 %v5522_v35, %v806_v46 }
 0x189   : > { %v4293_v51 = vpop.f32.mrf.mxu0 }
 0x18a   : > { %1166 = vst [vmem:[#allocation2 + $0x38] sm:$0xf] %v4002_v47  ;;  %v4000_v52 = vpack.c.bf16 %v1008_v48, %v1008_v48  ;;  %v1011_v53 = vmax.f32 %v979_v49, 0.0  ;;  %v977_v54 = vadd.f32 %v5527_v37, %v938_v50  ;;  %v943_v55 = vmul.f32 %v4293_v51, %v5522_v35 }
 0x18b   : > { %v819_v56 = vpop.f32.mrf.mxu0 }
 0x18c   : > { %1164 = vst [vmem:[#allocation2 + $0x18] sm:$0xf] %v4000_v52  ;;  %v4003_v57 = vpack.c.bf16 %v1011_v53, %v1011_v53  ;;  %v1009_v58 = vmax.f32 %v977_v54, 0.0  ;;  %v982_v59 = vadd.f32 %v5527_v37, %v943_v55  ;;  %v941_v60 = vmul.f32 %v5522_v35, %v819_v56 }
 0x18d   : > { %v4294_v61 = vpop.f32.mrf.mxu0 }
 0x18e   : > { %1167 = vst [vmem:[#allocation2 + $0x48] sm:$0xf] %v4003_v57  ;;  %v4001_v62 = vpack.c.bf16 %v1009_v58, %v1009_v58  ;;  %v1014_v63 = vmax.f32 %v982_v59, 0.0  ;;  %v980_v0 = vadd.f32 %v5527_v37, %v941_v60  ;;  %v944_v1 = vmul.f32 %v4294_v61, %v5522_v35 }
 0x18f   : > { %v822_v2 = vpop.f32.mrf.mxu0 }
 0x190   : > { %1165 = vst [vmem:[#allocation2 + $0x28] sm:$0xf] %v4001_v62  ;;  %v4006_v3 = vpack.c.bf16 %v1014_v63, %v1014_v63  ;;  %v1012_v5 = vmax.f32 %v980_v0, 0.0  ;;  %v983_v7 = vadd.f32 %v5527_v37, %v944_v1  ;;  %v942_v8 = vmul.f32 %v5522_v35, %v822_v2 }
 0x191   : > { %v4297_v9 = vpop.f32.mrf.mxu0 }
 0x192   : > { %1170 = vst [vmem:[#allocation2 + $0x78] sm:$0xf] %v4006_v3  ;;  %v4004_v10 = vpack.c.bf16 %v1012_v5, %v1012_v5  ;;  %v1015_v11 = vmax.f32 %v983_v7, 0.0  ;;  %v981_v12 = vadd.f32 %v5527_v37, %v942_v8  ;;  %v947_v13 = vmul.f32 %v4297_v9, %v5522_v35 }
 0x193   : > { %v835_v14 = vpop.f32.mrf.mxu0 }
 0x194   : > { %1168 = vst [vmem:[#allocation2 + $0x58] sm:$0xf] %v4004_v10  ;;  %v4007_v17 = vpack.c.bf16 %v1015_v11, %v1015_v11  ;;  %v1013_v18 = vmax.f32 %v981_v12, 0.0  ;;  %v986_v19 = vadd.f32 %v5527_v37, %v947_v13  ;;  %v945_v22 = vmul.f32 %v5522_v35, %v835_v14 }
 0x195   : > { %v4298_v23 = vpop.f32.mrf.mxu0 }
 0x196   : > { %1171 = vst [vmem:[#allocation2 + $0x88] sm:$0xf] %v4007_v17  ;;  %v4005_v24 = vpack.c.bf16 %v1013_v18, %v1013_v18  ;;  %v1018_v25 = vmax.f32 %v986_v19, 0.0  ;;  %v984_v26 = vadd.f32 %v5527_v37, %v945_v22  ;;  %v948_v27 = vmul.f32 %v4298_v23, %v5522_v35 }
 0x197   : > { %v838_v28 = vpop.f32.mrf.mxu0 }
 0x198   : > { %1169 = vst [vmem:[#allocation2 + $0x68] sm:$0xf] %v4005_v24  ;;  %v4010_v29 = vpack.c.bf16 %v1018_v25, %v1018_v25  ;;  %v1016_v30 = vmax.f32 %v984_v26, 0.0  ;;  %v987_v31 = vadd.f32 %v5527_v37, %v948_v27  ;;  %v946_v32 = vmul.f32 %v5522_v35, %v838_v28  ;;  %v4588_v25 = vld [vmem:[#allocation2 + $0x18] ss:$16 sps:$4 sm:$0xff]   ;;  %v4593_v27 = vld [vmem:[#allocation8 + $0x230] sm:$0xff]  }
 0x199   : > { %v4301_v43 = vpop.f32.mrf.mxu0 }
 0x19a   : > { %1277 = vst [vmem:[#allocation2 + $0xd8] sm:$0xf] %v4010_v29  ;;  %v4008_v33 = vpack.c.bf16 %v1016_v30, %v1016_v30  ;;  %v1019_v34 = vmax.f32 %v987_v31, 0.0  ;;  %v985_v36 = vadd.f32 %v5527_v37, %v946_v32  ;;  %v951_v38 = vmul.f32 %v4301_v43, %v5522_v35 }
 0x19b   : > { %v851_v39 = vpop.f32.mrf.mxu0 }
 0x19c   : > { %1275 = vst [vmem:[#allocation2 + $0xb8] sm:$0xf] %v4008_v33  ;;  %v4011_v40 = vpack.c.bf16 %v1019_v34, %v1019_v34  ;;  %v1017_v4 = vmax.f32 %v985_v36, 0.0  ;;  %v990_v41 = vadd.f32 %v5527_v37, %v951_v38  ;;  %v949_v42 = vmul.f32 %v5522_v35, %v851_v39  ;;  %v5584_v33 = vld [vmem:[#allocation2 + $0x1e8] sm:$0xf] }
 0x19d   : > { %v4302_v44 = vpop.f32.mrf.mxu0 }
 0x19e   : > { %1278 = vst [vmem:[#allocation2 + $0xe8] sm:$0xf] %v4011_v40  ;;  %v4009_v45 = vpack.c.bf16 %v1017_v4, %v1017_v4  ;;  %v1022_v46 = vmax.f32 %v990_v41, 0.0  ;;  %v988_v47 = vadd.f32 %v5527_v37, %v949_v42  ;;  %v952_v48 = vmul.f32 %v4302_v44, %v5522_v35  ;;  %v4597_v4 = vld [vmem:[#allocation8 + $0x228] sm:$0xff]  }
 0x19f   : > { %v854_v49 = vpop.f32.mrf.mxu0  ;;  %v1529_v42 = vshrl.u32 %v5584_v33, 16 }
 0x1a0   : > { %1276 = vst [vmem:[#allocation2 + $0xc8] sm:$0xf] %v4009_v45  ;;  %v4014_v50 = vpack.c.bf16 %v1022_v46, %v1022_v46  ;;  %v1020_v51 = vmax.f32 %v988_v47, 0.0  ;;  %v991_v52 = vadd.f32 %v5527_v37, %v952_v48  ;;  %v950_v53 = vmul.f32 %v5522_v35, %v854_v49  ;;  %v4596_v49 = vld [vmem:[#allocation2 + $0x38] ss:$16 sps:$4 sm:$0xff]  }
 0x1a1   : > { %v4305_v54 = vpop.f32.mrf.mxu0  ;;  %v5578_v26 = vld [vmem:[#allocation2 + $0xd8] sm:$0xf] }
 0x1a2   : > { %1281 = vst [vmem:[#allocation2 + $0x118] sm:$0xf] %v4014_v50  ;;  %v4012_v55 = vpack.c.bf16 %v1020_v51, %v1020_v51  ;;  %v1023_v56 = vmax.f32 %v991_v52, 0.0  ;;  %v989_v57 = vadd.f32 %v5527_v37, %v950_v53  ;;  %v955_v58 = vmul.f32 %v4305_v54, %v5522_v35  ;;  %v1505_v50 = vld [vmem:[#allocation2 + $0x1e4] sm:$0x8] }
 0x1a3   : > { %v867_v59 = vpop.f32.mrf.mxu0  ;;  %v5570_v13 = vld [vmem:[#allocation2 + $0xb8] sm:$0xf] }
 0x1a4   : > { %1279 = vst [vmem:[#allocation2 + $0xf8] sm:$0xf] %v4012_v55  ;;  %v4015_v60 = vpack.c.bf16 %v1023_v56, %v1023_v56  ;;  %v1021_v61 = vmax.f32 %v989_v57, 0.0  ;;  %v994_v62 = vadd.f32 %v5527_v37, %v955_v58  ;;  %v953_v63 = vmul.f32 %v5522_v35, %v867_v59  ;;  %v4602_v56 = vld [vmem:[#allocation8 + $0x220] sm:$0xff]  }
 0x1a5   : > { %v4306_v0 = vpop.f32.mrf.mxu0  ;;  %v5572_v14 = vld [vmem:[#allocation2 + $0xe8] sm:$0xf] }
 0x1a6   : > { %1282 = vst [vmem:[#allocation2 + $0x128] sm:$0xf] %v4015_v60  ;;  %v4013_v1 = vpack.c.bf16 %v1021_v61, %v1021_v61  ;;  %v1026_v2 = vmax.f32 %v994_v62, 0.0  ;;  %v992_v3 = vadd.f32 %v5527_v37, %v953_v63  ;;  %v956_v5 = vmul.f32 %v4306_v0, %v5522_v35  ;;  %v1507_v60 = vld [vmem:[#allocation2 + $0x1f4] sm:$0x8] }
 0x1a7   : > { %v870_v7 = vpop.f32.mrf.mxu0  ;;  %v5566_v8 = vld [vmem:[#allocation2 + $0xc8] sm:$0xf]  ;;  %v3867_v29 = vcombine.low %v5578_v26, %v5572_v14 }
 0x1a8   : > { %1280 = vst [vmem:[#allocation2 + $0x108] sm:$0xf] %v4013_v1  ;;  %v4018_v9 = vpack.c.bf16 %v1026_v2, %v1026_v2  ;;  %v1024_v10 = vmax.f32 %v992_v3, 0.0  ;;  %v995_v11 = vadd.f32 %v5527_v37, %v956_v5  ;;  %v954_v12 = vmul.f32 %v5522_v35, %v870_v7  ;;  %v1511_v1 = vld [vmem:[#allocation2 + $0x214] sm:$0x8] }
 0x1a9   : > { %v4309_v17 = vpop.f32.mrf.mxu0  ;;  %v3866_v18 = vcombine.low %v5570_v13, %v5566_v8  ;;  %v1524_v3 = vshrl.u32 %v1505_v50, 16  ;;  %v1532_v5 = vshll.u32 %v5584_v33, 16  ;;  %v1515_v50 = vld [vmem:[#allocation2 + $0x234] sm:$0x8] }
 0x1aa   : > { %1388 = vst [vmem:[#allocation2 + $0x178] sm:$0xf] %v4018_v9  ;;  %v4016_v19 = vpack.c.bf16 %v1024_v10, %v1024_v10  ;;  %v1027_v22 = vmax.f32 %v995_v11, 0.0  ;;  %v993_v23 = vadd.f32 %v5527_v37, %v954_v12  ;;  %v959_v24 = vmul.f32 %v4309_v17, %v5522_v35  ;;  %v4606_v12 = vld [vmem:[#allocation8 + $0x218] sm:$0xff]  }
 0x1ab   : > { %2821 = vmatprep.mubr.bf16.mxu0 %v3866_v18  ;;  %v883_v28 = vpop.f32.mrf.mxu0  ;;  %v5596_v55 = vld [vmem:[#allocation2 + $0xf8] sm:$0xf]  ;;  %v1537_v18 = vshrl.u32 %v1507_v60, 16  ;;  %v4614_v60 = vld [vmem:[#allocation8 + $0x208] sm:$0xff]  }
 0x1ac   : > { %1386 = vst [vmem:[#allocation2 + $0x158] sm:$0xf] %v4016_v19  ;;  %v4019_v30 = vpack.c.bf16 %v1027_v22, %v1027_v22  ;;  %v1025_v31 = vmax.f32 %v993_v23, 0.0  ;;  %v998_v32 = vadd.f32 %v5527_v37, %v959_v24  ;;  %v957_v43 = vmul.f32 %v5522_v35, %v883_v28  ;;  %2822 = vmatmul.mubr.bf16.vlgmr.msra.gmra.mxu0 %v4588_v25  ;;  %v1767_v28 = vld [vmem:[#allocation2 + $0x214] sm:$0x8] }
 0x1ad   : > { %2829 = vmatprep.mubr.bf16.mxu0 %v3867_v29  ;;  %4320 = vmatpush3.bf16.msra.mxu0 %v5343_v20  ;;  %v4310_v34 = vpop.f32.mrf.mxu0  ;;  %v1563_v19 = vshrl.u32 %v1511_v1, 16 }
 0x1ae   : > { %1389 = vst [vmem:[#allocation2 + $0x188] sm:$0xf] %v4019_v30  ;;  %v4017_v36 = vpack.c.bf16 %v1025_v31, %v1025_v31  ;;  %v1030_v38 = vmax.f32 %v998_v32, 0.0  ;;  %v996_v39 = vadd.f32 %v5527_v37, %v957_v43  ;;  %v960_v40 = vmul.f32 %v4310_v34, %v5522_v35  ;;  %4321 = vmatprep.subr.bf16.mxu0 %v4593_v27  ;;  %v1509_v30 = vld [vmem:[#allocation2 + $0x204] sm:$0x8] }
 0x1af   : > { %v886_v41 = vpop.f32.mrf.mxu0  ;;  %v5592_v47 = vld [vmem:[#allocation2 + $0x108] sm:$0xf] }
 0x1b0   : > { %1387 = vst [vmem:[#allocation2 + $0x168] sm:$0xf] %v4017_v36  ;;  %v4022_v44 = vpack.c.bf16 %v1030_v38, %v1030_v38  ;;  %v1028_v45 = vmax.f32 %v996_v39, 0.0  ;;  %v999_v46 = vadd.f32 %v5527_v37, %v960_v40  ;;  %v958_v20 = vmul.f32 %v5522_v35, %v886_v41  ;;  %v4605_v36 = vld [vmem:[#allocation2 + $0x58] ss:$16 sps:$4 sm:$0xff]   ;;  %v4610_v39 = vld [vmem:[#allocation8 + $0x210] sm:$0xff]  }
 0x1b1   : > { %4322 = vmatpush3.bf16.msra.mxu0 %v4593_v27  ;;  %v4313_v48 = vpop.f32.mrf.mxu0  ;;  %v3868_v58 = vcombine.low %v5596_v55, %v5592_v47  ;;  %v5607_v27 = vld [vmem:[#allocation2 + $0x128] sm:$0xf]  ;;  %v5611_v38 = vld [vmem:[#allocation2 + $0x118] sm:$0xf]  ;;  %v5615_v41 = vrot.slane %v1524_v3, 11 }
 0x1b2   : > { %1392 = vst [vmem:[#allocation2 + $0x1b8] sm:$0xf] %v4022_v44  ;;  %v4020_v51 = vpack.c.bf16 %v1028_v45, %v1028_v45  ;;  %v1031_v52 = vmax.f32 %v999_v46, 0.0  ;;  %v997_v53 = vadd.f32 %v5527_v37, %v958_v20  ;;  %v963_v54 = vmul.f32 %v4313_v48, %v5522_v35  ;;  %4323 = vmatprep.subr.bf16.mxu0 %v4597_v4 }
 0x1b3   : > { %v899_v57 = vpop.f32.mrf.mxu0  ;;  %v4601_v59 = vld [vmem:[#allocation2 + $0x148] ss:$16 sps:$4 sm:$0xff]   ;;  %v1531_v44 = vrot.slane %v1529_v42, 7 }
 0x1b4   : > { %1390 = vst [vmem:[#allocation2 + $0x198] sm:$0xf] %v4020_v51  ;;  %v4023_v61 = vpack.c.bf16 %v1031_v52, %v1031_v52  ;;  %v1029_v62 = vmax.f32 %v997_v53, 0.0  ;;  %v1002_v63 = vadd.f32 %v5527_v37, %v963_v54  ;;  %v961_v0 = vmul.f32 %v5522_v35, %v899_v57  ;;  %2830 = vmatmul.mubr.bf16.gmra.mxu0 %v4596_v49  ;;  %v1513_v49 = vld [vmem:[#allocation2 + $0x224] sm:$0x8] }
 0x1b5   : > { %2837 = vmatprep.mubr.bf16.mxu0 %v3868_v58  ;;  %4324 = vmatpush3.bf16.msra.mxu0 %v4597_v4  ;;  %v4314_v2 = vpop.f32.mrf.mxu0  ;;  %v3869_v4 = vcombine.low %v5611_v38, %v5607_v27  ;;  %v5621_v52 = vrot.slane %v1537_v18, 11  ;;  %v1550_v53 = vshrl.u32 %v1509_v30, 16  ;;  %v5623_v54 = vrot.slane %v1563_v19, 11 }
 0x1b6   : > { %1393 = vst [vmem:[#allocation2 + $0x1c8] sm:$0xf] %v4023_v61  ;;  %v4021_v7 = vpack.c.bf16 %v1029_v62, %v1029_v62  ;;  %v1034_v9 = vmax.f32 %v1002_v63, 0.0  ;;  %v1000_v10 = vadd.f32 %v5527_v37, %v961_v0  ;;  %v964_v11 = vmul.f32 %v4314_v2, %v5522_v35  ;;  %2691 = vmatprep.mubr.bf16.mxu1 %v4601_v59  ;;  %v1769_v61 = vld [vmem:[#allocation2 + $0x224] sm:$0x8] }
 0x1b7   : > { %4325 = vmatprep.subr.bf16.mxu0 %v4602_v56  ;;  %v902_v17 = vpop.f32.mrf.mxu0  ;;  %v1576_v63 = vshrl.u32 %v1513_v49, 16  ;;  %v1589_v0 = vshrl.u32 %v1515_v50, 16 }
 0x1b8   : > { %1391 = vst [vmem:[#allocation2 + $0x1a8] sm:$0xf] %v4021_v7  ;;  %v4026_v22 = vpack.c.bf16 %v1034_v9, %v1034_v9  ;;  %v1032_v23 = vmax.f32 %v1000_v10, 0.0  ;;  %v1003_v24 = vadd.f32 %v5527_v37, %v964_v11  ;;  %v962_v25 = vmul.f32 %v5522_v35, %v902_v17  ;;  %v4617_v9 = vld [vmem:[#allocation8 + $0x200] sm:$0xff]  }
 0x1b9   : > { %4326 = vmatpush3.bf16.msra.mxu0 %v4602_v56  ;;  %v4317_v29 = vpop.f32.mrf.mxu0  ;;  %v1806_v56 = vshrl.u32 %v1767_v28, 16  ;;  %v5629_v10 = vrot.slane %v1550_v53, 11  ;;  %v5631_v11 = vld [vmem:[#allocation2 + $0x244] sm:$0x8]  ;;  %v1534_v28 = vor.u32 %v1532_v5, %v1531_v44  ;;  %v5646_v30 = vrot.slane %v1589_v0, 11 }
 0x1ba   : > { %1499 = vst [vmem:[#allocation2 + $0x218] sm:$0xf] %v4026_v22  ;;  %v4024_v31 = vpack.c.bf16 %v1032_v23, %v1032_v23  ;;  %v1035_v32 = vmax.f32 %v1003_v24, 0.0  ;;  %v1001_v43 = vadd.f32 %v5527_v37, %v962_v25  ;;  %v967_v34 = vmul.f32 %v4317_v29, %v5522_v35  ;;  %4327 = vmatprep.subr.bf16.mxu0 %v4606_v12  ;;  %v4613_v23 = vld [vmem:[#allocation2 + $0x78] ss:$16 sps:$4 sm:$0xff]  }
 0x1bb   : > { %v915_v40 = vpop.f32.mrf.mxu0  ;;  %v5635_v17 = vrot.slane %v1806_v56, 11  ;;  %v5644_v29 = vrot.slane %v1576_v63, 11  ;;  %v1777_v44 = vld [vmem:[#allocation2 + $0x264] sm:$0x8]  ;;  %v1535_v50 = vsel %vm5652_vm7, %v5615_v41, %v1534_v28  ;;  %v4625_v28 = vld [vmem:[#allocation8 + $0xf0] sm:$0xff]  }
 0x1bc   : > { %1497 = vst [vmem:[#allocation2 + $0x1f8] sm:$0xf] %v4024_v31  ;;  %v4027_v45 = vpack.c.bf16 %v1035_v32, %v1035_v32  ;;  %v1033_v46 = vmax.f32 %v1001_v43, 0.0  ;;  %v1006_v20 = vadd.f32 %v5527_v37, %v967_v34  ;;  %v965_v48 = vmul.f32 %v5522_v35, %v915_v40  ;;  %2838 = vmatmul.mubr.bf16.gmra.mxu0 %v4605_v36  ;;  %v1771_v31 = vld [vmem:[#allocation2 + $0x234] sm:$0x8] }
 0x1bd   : > { %2845 = vmatprep.mubr.bf16.mxu0 %v3869_v4  ;;  %4328 = vmatpush3.bf16.msra.mxu0 %v4606_v12  ;;  %v4318_v51 = vpop.f32.mrf.mxu0  ;;  %v5633_v12 = vld [vmem:[#allocation2 + $0x254] sm:$0x8]  ;;  %v1773_v36 = vld [vmem:[#allocation2 + $0x244] sm:$0x8] }
 0x1be   : > { %1500 = vst [vmem:[#allocation2 + $0x228] sm:$0xf] %v4027_v45  ;;  %v4025_v42 = vpack.c.bf16 %v1033_v46, %v1033_v46  ;;  %v1038_v57 = vmax.f32 %v1006_v20, 0.0  ;;  %v1004_v58 = vadd.f32 %v5527_v37, %v965_v48  ;;  %v968_v59 = vmul.f32 %v4318_v51, %v5522_v35  ;;  %4329 = vmatprep.subr.bf16.mxu0 %v4610_v39  ;;  %v1775_v4 = vld [vmem:[#allocation2 + $0x254] sm:$0x8] }
 0x1bf   : > { %v918_v62 = vpop.f32.mrf.mxu0 }
 0x1c0   : > { %1498 = vst [vmem:[#allocation2 + $0x208] sm:$0xf] %v4025_v42  ;;  %v4030_v1 = vpack.c.bf16 %v1038_v57, %v1038_v57  ;;  %v1036_v2 = vmax.f32 %v1004_v58, 0.0  ;;  %v1007_v3 = vadd.f32 %v5527_v37, %v968_v59  ;;  %v966_v7 = vmul.f32 %v5522_v35, %v918_v62 }
 0x1c1   : > { %4330 = vmatpush3.bf16.msra.mxu0 %v4610_v39  ;;  %v5638_v24 = vld [vmem:[#allocation2 + $0x218] sm:$0xf]  ;;  %v1819_v35 = vshrl.u32 %v1769_v61, 16  ;;  %v1832_v57 = vshrl.u32 %v1771_v31, 16  ;;  %v1845_v58 = vshrl.u32 %v1773_v36, 16  ;;  %v1858_v59 = vshrl.u32 %v1775_v4, 16 }
 0x1c2   : > { %1503 = vst [vmem:[#allocation2 + $0x258] sm:$0xf] %v4030_v1  ;;  %v4028_v18 = vpack.c.bf16 %v1036_v2, %v1036_v2  ;;  %v1039_v19 = vmax.f32 %v1007_v3, 0.0  ;;  %v1005_v22 = vadd.f32 %v5527_v37, %v966_v7  ;;  %4331 = vmatprep.subr.bf16.mxu0 %v4614_v60  ;;  %v1568_v40 = vshrl.u32 %v5638_v24, 16  ;;  %v4623_v1 = vld [vmem:[#allocation8 + $0xb8] sm:$0xff]   ;;  %v4668_v39 = vld [vmem:[#allocation9 + $0x30] sm:$0xff]  }
 0x1c3   : > { %v5640_v25 = vld [vmem:[#allocation2 + $0x1f8] sm:$0xf]  ;;  %v5677_v41 = vrot.slane %v1819_v35, 11  ;;  %v1571_v2 = vshll.u32 %v5638_v24, 16  ;;  %v1871_v7 = vshrl.u32 %v1777_v44, 16  ;;  %v5697_v36 = vrot.slane %v1858_v59, 11 }
 0x1c4   : > { %1501 = vst [vmem:[#allocation2 + $0x238] sm:$0xf] %v4028_v18  ;;  %v4031_v32 = vpack.c.bf16 %v1039_v19, %v1039_v19  ;;  %v1037_v43 = vmax.f32 %v1005_v22, 0.0  ;;  %2846 = vmatmul.mubr.bf16.gmra.mxu0 %v4613_v23  ;;  %v1542_v5 = vshrl.u32 %v5640_v25, 16  ;;  %v5658_v46 = vld [vmem:[#allocation2 + $0x1f8] sm:$0xf] }
 0x1c5   : > { %4332 = vmatpush3.bf16.msra.mxu0 %v4614_v60  ;;  %v5660_v20 = vld [vmem:[#allocation2 + $0x228] sm:$0xf]  ;;  %v1545_v53 = vshll.u32 %v5640_v25, 16  ;;  %v5674_v60 = vld [vmem:[#allocation2 + $0x218] sm:$0xf]  ;;  %v1570_v63 = vrot.slane %v1568_v40, 7 }
 0x1c6   : > { %1504 = vst [vmem:[#allocation2 + $0x268] sm:$0xf] %v4031_v32  ;;  %v4029_v45 = vpack.c.bf16 %v1037_v43, %v1037_v43  ;;  %4333 = vmatprep.subr.bf16.mxu0 %v4617_v9  ;;  %v5662_v48 = vld [vmem:[#allocation2 + $0x228] sm:$0xf]  ;;  %v1544_v51 = vrot.slane %v1542_v5, 7  ;;  %v3879_v0 = vcombine.low %v5674_v60, %v5660_v20  ;;  %v5693_v32 = vrot.slane %v1832_v57, 11 }
 0x1c7   : > { %v5664_v49 = vld [vmem:[#allocation2 + $0x208] sm:$0xf]  ;;  %v1581_v3 = vshrl.u32 %v5662_v48, 16  ;;  %v5695_v43 = vrot.slane %v1845_v58, 11  ;;  %v1573_v4 = vor.u32 %v1571_v2, %v1570_v63  ;;  %v4626_v57 = vld [vmem:[#allocation8 + $0xb0] sm:$0xff]  }
 0x1c8   : > { %v5670_v56 = vld [vmem:[#allocation2 + $0x208] sm:$0xf]  ;;  %1502 = vst [vmem:[#allocation2 + $0x248] sm:$0xf] %v4029_v45  ;;  %v3878_v42 = vcombine.low %v5658_v46, %v5664_v49  ;;  %v1547_v61 = vor.u32 %v1545_v53, %v1544_v51  ;;  %v1811_v45 = vshrl.u32 %v5674_v60, 16 }
 0x1c9   : > { %4334 = vmatpush3.bf16.msra.mxu0 %v4617_v9  ;;  %v1555_v62 = vshrl.u32 %v5670_v56, 16  ;;  %v1558_v22 = vshll.u32 %v5670_v56, 16  ;;  %v5691_v31 = vld [vmem:[#allocation2 + $0x258] sm:$0xf]  ;;  %v1583_v63 = vrot.slane %v1581_v3, 7 }
 0x1ca   : > { %4335 = vmatprep.mubr.bf16.mxu0 %v3878_v42  ;;  %v1548_v9 = vsel %vm5652_vm7, %v5621_v52, %v1547_v61  ;;  %v4624_v5 = vld [vmem:[#allocation2 + $0x168] ss:$16 sps:$4 sm:$0xff]   ;;  %v5706_v42 = vrot.slane %v1871_v7, 11  ;;  %v1863_v59 = vshrl.u32 %v5691_v31, 16  ;;  %v1813_v3 = vrot.slane %v1811_v45, 7  ;;  %v4632_v45 = vld [vmem:[#allocation8 + $0xe0] sm:$0xff]  }
 0x1cb   : > { %v5686_v18 = vld [vmem:[#allocation2 + $0x238] sm:$0xf]  ;;  %v1557_v19 = vrot.slane %v1555_v62, 7  ;;  %v3846_v35 = vcombine.low %v1535_v50, %v1548_v9  ;;  %v4629_v9 = vld [vmem:[#allocation8 + $0xe8] sm:$0xff]  }
 0x1cc   : > { %v5689_v23 = vld [vmem:[#allocation2 + $0x238] sm:$0xf]  ;;  %4336 = vmatmul.mubr.bf16.vlgmr.msra.gmra.mxu0 %v3879_v0  ;;  %v1837_v53 = vshrl.u32 %v5686_v18, 16  ;;  %v1840_v34 = vshll.u32 %v5686_v18, 16  ;;  %v1865_v51 = vrot.slane %v1863_v59, 7  ;;  %v1814_v59 = vshll.u32 %v5674_v60, 16 }
 0x1cd   : > { %v5699_v52 = vld [vmem:[#allocation2 + $0x268] sm:$0xf]  ;;  %v1560_v40 = vor.u32 %v1558_v22, %v1557_v19  ;;  %v1594_v44 = vshrl.u32 %v5689_v23, 16  ;;  %2692 = vmatmul.mubr.bf16.vlgmr.msra.gmra.mxu1 %v3846_v35  ;;  %v1597_v7 = vshll.u32 %v5689_v23, 16  ;;  %v1574_v22 = vsel %vm5652_vm7, %v5623_v54, %v1573_v4  ;;  %v5724_v50 = vld [vmem:[#allocation2 + $0x258] sm:$0xf] }
 0x1ce   : > { %4098 = vmatpush3.bf16.msra.mxu1 %v4623_v1  ;;  %2699 = vmatprep.mubr.bf16.mxu1 %v4624_v5  ;;  %v1876_v61 = vshrl.u32 %v5699_v52, 16  ;;  %v3881_v62 = vcombine.low %v5691_v31, %v5699_v52  ;;  %v1584_v35 = vshll.u32 %v5662_v48, 16  ;;  %v1879_v54 = vshll.u32 %v5699_v52, 16  ;;  %v4630_v4 = vld [vmem:[#allocation8 + $0xa8] sm:$0xff]   ;;  %v4634_v60 = vld [vmem:[#allocation8 + $0xd8] sm:$0xff]  }
 0x1cf   : > { %v1774_v58 = vld [vmem:[#allocation2 + $0x248] sm:$0xf]  ;;  %4099 = vmatprep.subr.bf16.mxu1 %v4625_v28  ;;  %v1596_v19 = vrot.slane %v1594_v44, 7  ;;  %v1561_v1 = vsel %vm5652_vm7, %v5629_v10, %v1560_v40  ;;  %v1839_v28 = vrot.slane %v1837_v53, 7  ;;  %v1866_v10 = vshll.u32 %v5691_v31, 16 }
 0x1d0   : > { %v1850_v0 = vshrl.u32 %v1774_v58, 16  ;;  %v3880_v2 = vcombine.low %v5686_v18, %v1774_v58  ;;  %v5721_v5 = vld [vmem:[#allocation2 + $0x248] sm:$0xf]  ;;  %v1853_v44 = vshll.u32 %v1774_v58, 16  ;;  %v1878_v40 = vrot.slane %v1876_v61, 7 }
 0x1d1   : > { %v3847_v21 = vcombine.low %v1561_v1, %v1574_v22  ;;  %v1586_v53 = vor.u32 %v1584_v35, %v1583_v63  ;;  %v1599_v16 = vor.u32 %v1597_v7, %v1596_v19  ;;  %v1607_v18 = vshrl.u32 %v5721_v5, 16  ;;  %v4631_v58 = vld [vmem:[#allocation2 + $0x188] ss:$16 sps:$4 sm:$0xff]   ;;  %v4633_v63 = vld [vmem:[#allocation8 + $0xa0] sm:$0xff]  }
 0x1d2   : > { %v1852_v37 = vrot.slane %v1850_v0, 7  ;;  %4339 = vmatprep.mubr.bf16.mxu0 %v3880_v2  ;;  %4100 = vmatpush3.bf16.msra.mxu1 %v4626_v57  ;;  %v1610_v0 = vshll.u32 %v5721_v5, 16  ;;  %v1620_v57 = vshrl.u32 %v5724_v50, 16  ;;  %v1824_v31 = vshrl.u32 %v5660_v20, 16  ;;  %v1637_v19 = vld [vmem:[#allocation2 + $0xc4] sm:$0x8] }
 0x1d3   : > { %4101 = vmatprep.subr.bf16.mxu1 %v4629_v9  ;;  %v1623_v52 = vshll.u32 %v5724_v50, 16  ;;  %v1827_v61 = vshll.u32 %v5660_v20, 16  ;;  %v1635_v9 = vld [vmem:[#allocation2 + $0xb4] sm:$0x8]  ;;  %v1816_v7 = vor.u32 %v1814_v59, %v1813_v3  ;;  %v1868_v22 = vor.u32 %v1866_v10, %v1865_v51 }
 0x1d4   : > { %4340 = vmatmul.mubr.bf16.gmra.mxu0 %v3881_v62  ;;  %v1842_v62 = vor.u32 %v1840_v34, %v1839_v28  ;;  %v1855_v2 = vor.u32 %v1853_v44, %v1852_v37  ;;  %v1826_v1 = vrot.slane %v1824_v31, 7  ;;  %v1881_v35 = vor.u32 %v1879_v54, %v1878_v40  ;;  %v4635_v40 = vld [vmem:[#allocation8 + $0x98] sm:$0xff]  }
 0x1d5   : > { %2700 = vmatmul.mubr.bf16.gmra.mxu1 %v3847_v21  ;;  %v1600_v21 = vsel %vm5652_vm7, %v5646_v30, %v1599_v16  ;;  %v1609_v15 = vrot.slane %v1607_v18, 7  ;;  %v1622_v20 = vrot.slane %v1620_v57, 7  ;;  %v1869_v51 = vsel %vm5652_vm7, %v5697_v36, %v1868_v22  ;;  %v4637_v57 = vld [vmem:[#allocation8 + $0xd0] sm:$0xff]  }
 0x1d6   : > { %4102 = vmatpush3.bf16.msra.mxu1 %v4630_v4  ;;  %2707 = vmatprep.mubr.bf16.mxu1 %v4631_v58  ;;  %v1843_v37 = vsel %vm5652_vm7, %v5693_v32, %v1842_v62  ;;  %v1856_v34 = vsel %vm5652_vm7, %v5695_v43, %v1855_v2  ;;  %v1829_v3 = vor.u32 %v1827_v61, %v1826_v1  ;;  %v6202_v44 = vshrl.u32 %v5566_v8, 16 }
 0x1d7   : > { %4103 = vmatprep.subr.bf16.mxu1 %v4632_v45  ;;  %v5744_v28 = vcombine.low %v1843_v37, %v1856_v34  ;;  %v1652_v30 = vshrl.u32 %v1635_v9, 16  ;;  %v1665_v10 = vshrl.u32 %v1637_v19, 16  ;;  %v1882_v32 = vsel %vm5652_vm7, %v5706_v42, %v1881_v35  ;;  %v4638_v19 = vld [vmem:[#allocation8 + $0x90] sm:$0xff]  }
 0x1d8   : > { %v1672_v16 = vrot.slane %v6202_v44, 7  ;;  %v1587_v43 = vsel %vm5652_vm7, %v5644_v29, %v1586_v53  ;;  %v1817_v54 = vsel %vm5652_vm7, %v5635_v17, %v1816_v7  ;;  %v1830_v36 = vsel %vm5652_vm7, %v5677_v41, %v1829_v3  ;;  %v4636_v53 = vld [vmem:[#allocation2 + $0x1a8] ss:$16 sps:$4 sm:$0xff]   ;;  %v1641_v7 = vld [vmem:[#allocation2 + $0xe4] sm:$0x8] }
 0x1d9   : > { %v5763_v4 = vcombine.low %v1869_v51, %v1882_v32  ;;  %v6203_v45 = vshrl.u32 %v5570_v13, 16  ;;  %v1673_v42 = vshll.u32 %v5566_v8, 16  ;;  %v3848_v58 = vcombine.low %v1587_v43, %v1600_v21  ;;  %v4640_v21 = vld [vmem:[#allocation8 + $0x88] sm:$0xff]   ;;  %v4641_v44 = vld [vmem:[#allocation8 + $0xc0] sm:$0xff]  }
 0x1da   : > { %4104 = vmatpush3.bf16.msra.mxu1 %v4633_v63  ;;  %v5768_v29 = vcombine.low %v1817_v54, %v1830_v36  ;;  %v6204_v59 = vshrl.u32 %v5631_v11, 16  ;;  %v1612_v31 = vor.u32 %v1610_v0, %v1609_v15  ;;  %v6205_v61 = vshrl.u32 %v5633_v12, 16  ;;  %v4639_v11 = vld [vmem:[#allocation8 + $0xc8] sm:$0xff]   ;;  %v1639_v12 = vld [vmem:[#allocation2 + $0xd4] sm:$0x8]  ;;  %v4643_v36 = vld [vmem:[#allocation8 + $0x1f8] sm:$0xff]  }
 0x1db   : > { %v1659_v18 = vrot.slane %v6203_v45, 7  ;;  %4105 = vmatprep.subr.bf16.mxu1 %v4634_v60  ;;  %v1625_v62 = vor.u32 %v1623_v52, %v1622_v20  ;;  %v1660_v2 = vshll.u32 %v5570_v13, 16  ;;  %v1696_v63 = vshrl.u32 %v5572_v14, 16  ;;  %v1645_v54 = vld [vmem:[#allocation2 + $0x104] sm:$0x8] }
 0x1dc   : > { %v3828_v17 = vrot.slane %v6204_v59, 11  ;;  %v3829_v41 = vrot.slane %v6205_v61, 11  ;;  %v3831_v8 = vrot.slane %v1665_v10, 11  ;;  %v1675_v9 = vor.u32 %v1673_v42, %v1672_v16  ;;  %v1643_v42 = vld [vmem:[#allocation2 + $0xf4] sm:$0x8] }
 0x1dd   : > { %2708 = vmatmul.mubr.bf16.gmra.mxu1 %v3848_v58  ;;  %v1683_v1 = vshrl.u32 %v5578_v26, 16  ;;  %v3830_v15 = vrot.slane %v1652_v30, 11  ;;  %v1662_v0 = vor.u32 %v1660_v2, %v1659_v18  ;;  %v1698_v22 = vrot.slane %v1696_v63, 7 }
 0x1de   : > { %4106 = vmatpush3.bf16.msra.mxu1 %v4635_v40  ;;  %2715 = vmatprep.mubr.bf16.mxu1 %v4636_v53  ;;  %v1613_v52 = vsel %vm5652_vm7, %v3828_v17, %v1612_v31  ;;  %v1626_v13 = vsel %vm5652_vm7, %v3829_v41, %v1625_v62  ;;  %v1676_v35 = vsel %vm5652_vm7, %v3831_v8, %v1675_v9  ;;  %v1691_v60 = vshrl.u32 %v1641_v7, 16  ;;  %v4642_v40 = vld [vmem:[#allocation8 + $0x80] sm:$0xff]   ;;  %v4645_v53 = vld [vmem:[#allocation8 + $0x1b8] sm:$0xff]   ;;  %v4646_v62 = vld [vmem:[#allocation8 + $0x1f0] sm:$0xff]  }
 0x1df   : > { %4107 = vmatprep.subr.bf16.mxu1 %v4637_v57  ;;  %v1678_v37 = vshrl.u32 %v1639_v12, 16  ;;  %v1685_v34 = vrot.slane %v1683_v1, 7  ;;  %v1699_v20 = vshll.u32 %v5572_v14, 16  ;;  %v3849_v3 = vcombine.low %v1613_v52, %v1626_v13  ;;  %v4647_v7 = vld [vmem:[#allocation8 + $0x1b0] sm:$0xff]   ;;  %v4650_v52 = vld [vmem:[#allocation8 + $0x1a8] sm:$0xff]  }
 0x1e0   : > { %v1663_v51 = vsel %vm5652_vm7, %v3830_v15, %v1662_v0  ;;  %v1686_v30 = vshll.u32 %v5578_v26, 16  ;;  %v1722_v10 = vshrl.u32 %v5592_v47, 16  ;;  %v3833_v32 = vrot.slane %v1691_v60, 11  ;;  %v1647_v15 = vld [vmem:[#allocation2 + $0x114] sm:$0x8] }
 0x1e1   : > { %v3858_v16 = vcombine.low %v1663_v51, %v1676_v35  ;;  %v1701_v43 = vor.u32 %v1699_v20, %v1698_v22  ;;  %v1709_v14 = vshrl.u32 %v5596_v55, 16  ;;  %v3832_v45 = vrot.slane %v1678_v37, 11  ;;  %v4651_v37 = vld [vmem:[#allocation8 + $0x1e0] sm:$0xff]  }
 0x1e2   : > { %4108 = vmatpush3.bf16.msra.mxu1 %v4638_v19  ;;  %v1688_v18 = vor.u32 %v1686_v30, %v1685_v34  ;;  %v1724_v58 = vrot.slane %v1722_v10, 7  ;;  %v1717_v57 = vshrl.u32 %v1645_v54, 16  ;;  %v1704_v59 = vshrl.u32 %v1643_v42, 16  ;;  %v1765_v54 = vld [vmem:[#allocation2 + $0x204] sm:$0x8] }
 0x1e3   : > { %4109 = vmatprep.subr.bf16.mxu1 %v4639_v11  ;;  %v1702_v26 = vsel %vm5652_vm7, %v3833_v32, %v1701_v43  ;;  %v1711_v17 = vrot.slane %v1709_v14, 7  ;;  %v1725_v31 = vshll.u32 %v5592_v47, 16  ;;  %v3854_v61 = vcombine.low %v5584_v33, %v5640_v25  ;;  %v1649_v47 = vld [vmem:[#allocation2 + $0x124] sm:$0x8]  ;;  %v4648_v33 = vld [vmem:[#allocation8 + $0x1e8] sm:$0xff]   ;;  %v4656_v32 = vld [vmem:[#allocation8 + $0x1d0] sm:$0xff]  }
 0x1e4   : > { %v1689_v41 = vsel %vm5652_vm7, %v3832_v45, %v1688_v18  ;;  %v1712_v63 = vshll.u32 %v5596_v55, 16  ;;  %v1748_v8 = vshrl.u32 %v5607_v27, 16  ;;  %v3835_v9 = vrot.slane %v1717_v57, 11  ;;  %v4658_v45 = vld [vmem:[#allocation8 + $0x1c8] sm:$0xff]   ;;  %v1763_v18 = vld [vmem:[#allocation2 + $0x1f4] sm:$0x8] }
 0x1e5   : > { %2716 = vmatmul.mubr.bf16.gmra.mxu1 %v3849_v3  ;;  %v3859_v2 = vcombine.low %v1689_v41, %v1702_v26  ;;  %v1727_v19 = vor.u32 %v1725_v31, %v1724_v58  ;;  %v1735_v1 = vshrl.u32 %v5611_v38, 16  ;;  %v3834_v25 = vrot.slane %v1704_v59, 11  ;;  %v4660_v26 = vld [vmem:[#allocation8 + $0x188] sm:$0xff]   ;;  %v4662_v59 = vld [vmem:[#allocation8 + $0x1c0] sm:$0xff]  }
 0x1e6   : > { %4110 = vmatpush3.bf16.msra.mxu1 %v4640_v21  ;;  %2756 = vmatprep.mubr.bf16.mxu1 %v3858_v16  ;;  %v1714_v11 = vor.u32 %v1712_v63, %v1711_v17  ;;  %v1750_v0 = vrot.slane %v1748_v8, 7  ;;  %v1743_v12 = vshrl.u32 %v1649_v47, 16  ;;  %v1730_v13 = vshrl.u32 %v1647_v15, 16  ;;  %v4653_v16 = vld [vmem:[#allocation8 + $0x1d8] sm:$0xff]  }
 0x1e7   : > { %4111 = vmatprep.subr.bf16.mxu1 %v4641_v44  ;;  %v1728_v55 = vsel %vm5652_vm7, %v3835_v9, %v1727_v19  ;;  %v1737_v22 = vrot.slane %v1735_v1, 7  ;;  %v1751_v35 = vshll.u32 %v5607_v27, 16  ;;  %v3855_v60 = vcombine.low %v5670_v56, %v5638_v24  ;;  %v4652_v44 = vld [vmem:[#allocation8 + $0x1a0] sm:$0xff]   ;;  %v4655_v56 = vld [vmem:[#allocation8 + $0x198] sm:$0xff]  }
 0x1e8   : > { %v1715_v21 = vsel %vm5652_vm7, %v3834_v25, %v1714_v11  ;;  %v1738_v20 = vshll.u32 %v5611_v38, 16  ;;  %v3837_v3 = vrot.slane %v1743_v12, 11  ;;  %v3836_v27 = vrot.slane %v1730_v13, 11  ;;  %v4664_v8 = vld [vmem:[#allocation2 + $0x178] ss:$16 sps:$4 sm:$0xff]   ;;  %v4676_v25 = vld [vmem:[#allocation11 + $0x30] sm:$0xff]  }
 0x1e9   : > { %v3860_v34 = vcombine.low %v1715_v21, %v1728_v55  ;;  %v1753_v51 = vor.u32 %v1751_v35, %v1750_v0  ;;  %v3856_v10 = vcombine.low %v5662_v48, %v5689_v23  ;;  %v1798_v43 = vshrl.u32 %v5664_v49, 16  ;;  %v4666_v9 = vld [vmem:[#allocation2 + $0x1b8] ss:$16 sps:$4 sm:$0xff]   ;;  %v4674_v21 = vld [vmem:[#allocation9] sm:$0xff]  }
 0x1ea   : > { %4112 = vmatpush3.bf16.msra.mxu1 %v4642_v40  ;;  %v1740_v30 = vor.u32 %v1738_v20, %v1737_v22  ;;  %v1785_v14 = vshrl.u32 %v5658_v46, 16  ;;  %v1793_v58 = vshrl.u32 %v1765_v54, 16  ;;  %v1801_v23 = vshll.u32 %v5664_v49, 16  ;;  %v4667_v19 = vld [vmem:[#allocation9 + $0x38] sm:$0xff]   ;;  %v4673_v12 = vld [vmem:[#allocation9 + $0x8] sm:$0xff]  }
 0x1eb   : > { %4177 = vmatprep.subr.bf16.mxu1 %v4643_v36  ;;  %v1754_v24 = vsel %vm5652_vm7, %v3837_v3, %v1753_v51  ;;  %v4657_v36 = vld [vmem:[#allocation8 + $0x190] sm:$0xff]   ;;  %v1800_v42 = vrot.slane %v1798_v43, 7  ;;  %v1780_v57 = vshrl.u32 %v1763_v18, 16  ;;  %v1788_v17 = vshll.u32 %v5658_v46, 16  ;;  %v4665_v46 = vld [vmem:[#allocation2 + $0x198] ss:$16 sps:$4 sm:$0xff]  }
 0x1ec   : > { %v1741_v38 = vsel %vm5652_vm7, %v3836_v27, %v1740_v30  ;;  %v1787_v48 = vrot.slane %v1785_v14, 7  ;;  %v3839_v41 = vrot.slane %v1793_v58, 11  ;;  %v4675_v47 = vld [vmem:[#allocation11 + $0x38] sm:$0xff]  }
 0x1ed   : > { %2757 = vmatmul.mubr.bf16.vlgmr.msra.gmra.mxu1 %v3854_v61  ;;  %v3861_v40 = vcombine.low %v1741_v38, %v1754_v24  ;;  %v1803_v31 = vor.u32 %v1801_v23, %v1800_v42  ;;  %v4661_v61 = vld [vmem:[#allocation2 + $0x158] ss:$16 sps:$4 sm:$0xff]   ;;  %v3838_v63 = vrot.slane %v1780_v57, 11 }
 0x1ee   : > { %4178 = vmatpush3.bf16.msra.mxu1 %v4645_v53  ;;  %2764 = vmatprep.mubr.bf16.mxu1 %v3859_v2  ;;  %v3857_v53 = vcombine.low %v5721_v5, %v5724_v50  ;;  %v4663_v2 = vld [vmem:[#allocation8 + $0x180] sm:$0xff]  }
 0x1ef   : > { %4179 = vmatprep.subr.bf16.mxu1 %v4646_v62  ;;  %v1790_v62 = vor.u32 %v1788_v17, %v1787_v48  ;;  %v1804_v49 = vsel %vm5652_vm7, %v3839_v41, %v1803_v31 }
 0x1f1   : > { %v1791_v50 = vsel %vm5652_vm7, %v3838_v63, %v1790_v62 }
 0x1f2   : > { %4180 = vmatpush3.bf16.msra.mxu1 %v4647_v7  ;;  %v3870_v5 = vcombine.low %v1791_v50, %v1804_v49  ;;  %v4977_v7 = vmov 0.0  }
 0x1f3   : > { %4181 = vmatprep.subr.bf16.mxu1 %v4648_v33  ;;  %4363 = vmatprep.subr.bf16.mxu0 %v4977_v7  ;;  %v4672_v33 = vld [vmem:[#allocation9 + $0x10] sm:$0xff]  }
 0x1f4   : > { %4379 = vmatprep.mubr.msk.bf16.mxu0 %vm4978_vm8, %v4977_v7  ;;  %4364 = vmatpush3.bf16.msra.mxu0 %v4675_v47 }
 0x1f5   : > { %2765 = vmatmul.mubr.bf16.gmra.mxu1 %v3855_v60  ;;  %4365 = vmatprep.subr.bf16.mxu0 %v4977_v7 }
 0x1f6   : > { %4182 = vmatpush3.bf16.msra.mxu1 %v4650_v52  ;;  %2772 = vmatprep.mubr.bf16.mxu1 %v3860_v34  ;;  %v4677_v52 = vld [vmem:[#allocation11 + $0x28] sm:$0xff]  }
 0x1f7   : > { %4183 = vmatprep.subr.bf16.mxu1 %v4651_v37  ;;  %v4678_v37 = vld [vmem:[#allocation11 + $0x20] sm:$0xff]  }
 0x1f8   : > { %4366 = vmatpush3.bf16.msra.mxu0 %v4676_v25 }
 0x1f9   : > { %4367 = vmatprep.subr.bf16.mxu0 %v4977_v7 }
 0x1fa   : > { %4184 = vmatpush3.bf16.msra.mxu1 %v4652_v44  ;;  %v4679_v44 = vld [vmem:[#allocation11 + $0x18] sm:$0xff]  }
 0x1fb   : > { %4185 = vmatprep.subr.bf16.mxu1 %v4653_v16 }
 0x1fc   : > { %4368 = vmatpush3.bf16.msra.mxu0 %v4677_v52 }
 0x1fd   : > { %2773 = vmatmul.mubr.bf16.gmra.mxu1 %v3856_v10  ;;  %4369 = vmatprep.subr.bf16.mxu0 %v4977_v7 }
 0x1fe   : > { %4186 = vmatpush3.bf16.msra.mxu1 %v4655_v56  ;;  %2780 = vmatprep.mubr.bf16.mxu1 %v3861_v40  ;;  %v4680_v56 = vld [vmem:[#allocation11 + $0x10] sm:$0xff]  }
 0x1ff   : > { %4187 = vmatprep.subr.bf16.mxu1 %v4656_v32 }
 0x200   : > { %4370 = vmatpush3.bf16.msra.mxu0 %v4678_v37 }
 0x201   : > { %4371 = vmatprep.subr.bf16.mxu0 %v4977_v7 }
 0x202   : > { %4188 = vmatpush3.bf16.msra.mxu1 %v4657_v36 }
 0x203   : > { %4189 = vmatprep.subr.bf16.mxu1 %v4658_v45 }
 0x204   : > { %4372 = vmatpush3.bf16.msra.mxu0 %v4679_v44 }
 0x205   : > { %2781 = vmatmul.mubr.bf16.gmra.mxu1 %v3857_v53  ;;  %4373 = vmatprep.subr.bf16.mxu0 %v4977_v7 }
 0x206   : > { %4190 = vmatpush3.bf16.msra.mxu1 %v4660_v26  ;;  %2886 = vmatprep.mubr.bf16.mxu1 %v4661_v61 }
 0x207   : > { %4191 = vmatprep.subr.bf16.mxu1 %v4662_v59 }
 0x208   : > { %4374 = vmatpush3.bf16.msra.mxu0 %v4680_v56 }
 0x209   : > { %4375 = vmatprep.subr.bf16.mxu0 %v4977_v7 }
 0x20a   : > { %4192 = vmatpush3.bf16.msra.mxu1 %v4663_v2 }
 0x20b   : > { %4343 = vmatprep.subr.bf16.mxu1 %v4977_v7 }
 0x20d   : > { %2887 = vmatmul.mubr.bf16.vlgmr.msra.gmra.mxu1 %v3870_v5 }
 0x20e   : > { %2894 = vmatprep.mubr.bf16.mxu1 %v4664_v8  ;;  %4344 = vmatpush3.bf16.msra.mxu1 %v4667_v19 }
 0x20f   : > { %4345 = vmatprep.subr.bf16.mxu1 %v4977_v7 }
 0x212   : > { %4346 = vmatpush3.bf16.msra.mxu1 %v4668_v39 }
 0x213   : > { %4347 = vmatprep.subr.bf16.mxu1 %v4977_v7 }
 0x215   : > { %2895 = vmatmul.mubr.bf16.gmra.mxu1 %v5768_v29  ;;  %v4671_v29 = vld [vmem:[#allocation9 + $0x18] sm:$0xff]  }
 0x216   : > { %2902 = vmatprep.mubr.bf16.mxu1 %v4665_v46 }
 0x21d   : > { %2903 = vmatmul.mubr.bf16.gmra.mxu1 %v5744_v28  ;;  %v4669_v28 = vld [vmem:[#allocation9 + $0x28] sm:$0xff]  }
 0x21e   : > { %2910 = vmatprep.mubr.bf16.mxu1 %v4666_v9  ;;  %4348 = vmatpush3.bf16.msra.mxu1 %v4669_v28 }
 0x21f   : > { %4349 = vmatprep.subr.bf16.mxu1 %v4977_v7 }
 0x225   : > { %2911 = vmatmul.mubr.bf16.gmra.mxu1 %v5763_v4  ;;  %v4670_v4 = vld [vmem:[#allocation9 + $0x20] sm:$0xff]  }
 0x226   : > { %4359 = vmatprep.mubr.msk.bf16.mxu1 %vm4978_vm8, %v4977_v7  ;;  %4350 = vmatpush3.bf16.msra.mxu1 %v4670_v4 }
 0x227   : > { %4351 = vmatprep.subr.bf16.mxu1 %v4977_v7 }
 0x22a   : > { %4352 = vmatpush3.bf16.msra.mxu1 %v4671_v29 }
 0x22b   : > { %4353 = vmatprep.subr.bf16.mxu1 %v4977_v7 }
 0x22e   : > { %4354 = vmatpush3.bf16.msra.mxu1 %v4672_v33 }
 0x22f   : > { %4355 = vmatprep.subr.bf16.mxu1 %v4977_v7 }
 0x232   : > { %4356 = vmatpush3.bf16.msra.mxu1 %v4673_v12 }
 0x233   : > { %4357 = vmatprep.subr.bf16.mxu1 %v4977_v7 }
 0x236   : > { %4358 = vmatpush3.bf16.msra.mxu1 %v4674_v21 }
 0x26c   : > { %v5834_v1 = vpop.f32.mrf.mxu0 }
 0x26e   : > { %v5838_v15 = vpop.f32.mrf.mxu0 }
 0x270   : > { %v5844_v22 = vpop.f32.mrf.mxu0 }
 0x272   : > { %v4157_v20 = vpop.f32.mrf.mxu0 }
 0x273   : > { %v4158_v37 = vadd.f32 %v4157_v20, %v5844_v22 }
 0x274   : > { %v5853_v27 = vpop.f32.mrf.mxu0 }
 0x276   : > { %v4160_v38 = vpop.f32.mrf.mxu0 }
 0x278   : > { %v5861_v54 = vpop.f32.mrf.mxu0 }
 0x27a   : > { %v4163_v18 = vpop.f32.mrf.mxu0 }
 0x27c   : > { %v5871_v48 = vpop.f32.mrf.mxu0 }
 0x27e   : > { %v5875_v57 = vpop.f32.mrf.mxu0 }
 0x280   : > { %v5877_v17 = vpop.f32.mrf.mxu0 }
 0x282   : > { %v5879_v41 = vpop.f32.mrf.mxu0 }
 0x284   : > { %v5881_v63 = vpop.f32.mrf.mxu0 }
 0x286   : > { %v5883_v5 = vpop.f32.mrf.mxu0 }
 0x288   : > { %v5885_v9 = vpop.f32.mrf.mxu0 }
 0x28a   : > { %v5887_v28 = vpop.f32.mrf.mxu0 }
 0x28c   : > { %v4337_v47 = vpop.f32.mrf.mxu0 }
 0x28d   : > { %v4073_v11 = vpop.f32.mrf.mxu1 }
 0x28f   : > { %v4074_v0 = vpop.f32.mrf.mxu1 }
 0x290   : > { %v5840_v55 = vadd.f32 %v4074_v0, %v4073_v11  ;;  %v2953_v0 = vpop.f32.mrf.mxu0 }
 0x291   : > { %v4076_v13 = vpop.f32.mrf.mxu1 }
 0x293   : > { %v4077_v35 = vpop.f32.mrf.mxu1 }
 0x294   : > { %v5846_v60 = vadd.f32 %v4077_v35, %v4076_v13 }
 0x295   : > { %v4079_v34 = vpop.f32.mrf.mxu1 }
 0x297   : > { %v4080_v3 = vpop.f32.mrf.mxu1 }
 0x298   : > { %v5850_v51 = vadd.f32 %v4080_v3, %v4079_v34  ;;  %v4338_v34 = vpop.f32.mrf.mxu0 }
 0x299   : > { %v4082_v16 = vpop.f32.mrf.mxu1 }
 0x29b   : > { %v4083_v30 = vpop.f32.mrf.mxu1 }
 0x29c   : > { %v5855_v24 = vadd.f32 %v4083_v30, %v4082_v16 }
 0x29d   : > { %v4085_v10 = vpop.f32.mrf.mxu1 }
 0x29f   : > { %v4086_v32 = vpop.f32.mrf.mxu1 }
 0x2a0   : > { %v5858_v43 = vadd.f32 %v4086_v32, %v4085_v10  ;;  %v4155_v10 = vadd.f32 %v5838_v15, %v5834_v1 }
 0x2a1   : > { %v4088_v40 = vpop.f32.mrf.mxu1 }
 0x2a3   : > { %v4089_v14 = vpop.f32.mrf.mxu1 }
 0x2a4   : > { %v5863_v36 = vadd.f32 %v4089_v14, %v4088_v40 }
 0x2a5   : > { %v5865_v45 = vpop.f32.mrf.mxu1 }
 0x2a7   : > { %v5867_v42 = vpop.f32.mrf.mxu1 }
 0x2a9   : > { %v5869_v58 = vpop.f32.mrf.mxu1 }
 0x2ab   : > { %v5873_v23 = vpop.f32.mrf.mxu1 }
 0x2ad   : > { %v4113_v26 = vpop.f32.mrf.mxu1 }
 0x2af   : > { %v4114_v53 = vpop.f32.mrf.mxu1 }
 0x2b0   : > { %v4115_v12 = vadd.f32 %v4114_v53, %v4113_v26  ;;  %v4161_v26 = vadd.f32 %v4160_v38, %v5853_v27 }
 0x2b1   : > { %v4116_v59 = vpop.f32.mrf.mxu1 }
 0x2b2   : > { %v2759_v3 = vadd.f32 %v4115_v12, %v5840_v55 }
 0x2b3   : > { %v4117_v31 = vpop.f32.mrf.mxu1 }
 0x2b4   : > { %v4118_v25 = vadd.f32 %v4117_v31, %v4116_v59  ;;  %v2824_v53 = vadd.f32 %v4155_v10, %v2759_v3 }
 0x2b5   : > { %v4119_v61 = vpop.f32.mrf.mxu1 }
 0x2b6   : > { %v2762_v35 = vadd.f32 %v4118_v25, %v5846_v60  ;;  %v2956_v60 = vpop.f32.mrf.mxu0 }
 0x2b7   : > { %v4120_v62 = vpop.f32.mrf.mxu1 }
 0x2b8   : > { %v4121_v13 = vadd.f32 %v4120_v62, %v4119_v61  ;;  %v2827_v40 = vadd.f32 %v4158_v37, %v2762_v35  ;;  %v5900_v1 = vpop.f32.mrf.mxu0 }
 0x2b9   : > { %v4122_v2 = vpop.f32.mrf.mxu1 }
 0x2ba   : > { %v2767_v16 = vadd.f32 %v4121_v13, %v5850_v51 }
 0x2bb   : > { %v4123_v49 = vpop.f32.mrf.mxu1 }
 0x2bc   : > { %v4124_v30 = vadd.f32 %v4123_v49, %v4122_v2  ;;  %v2832_v31 = vadd.f32 %v4161_v26, %v2767_v16  ;;  %v4164_v2 = vadd.f32 %v4163_v18, %v5861_v54 }
 0x2bd   : > { %v4125_v50 = vpop.f32.mrf.mxu1 }
 0x2be   : > { %v2770_v20 = vadd.f32 %v4124_v30, %v5855_v24  ;;  %v4167_v24 = vadd.f32 %v5875_v57, %v5871_v48  ;;  %v4170_v48 = vadd.f32 %v5879_v41, %v5877_v17 }
 0x2bf   : > { %v4126_v8 = vpop.f32.mrf.mxu1 }
 0x2c0   : > { %v4127_v55 = vadd.f32 %v4126_v8, %v4125_v50  ;;  %v2835_v38 = vadd.f32 %v4164_v2, %v2770_v20  ;;  %v5908_v50 = vld [vmem:[%s6135_s5] ss:$0 sm:$0xff]  ;;  %v2969_v8 = vpop.f32.mrf.mxu0 }
 0x2c1   : > { %v4128_v46 = vpop.f32.mrf.mxu1 }
 0x2c2   : > { %v2775_v27 = vadd.f32 %v4127_v55, %v5858_v43 }
 0x2c3   : > { %v4129_v19 = vpop.f32.mrf.mxu1 }
 0x2c4   : > { %v4130_v15 = vadd.f32 %v4129_v19, %v4128_v46 }
 0x2c5   : > { %v4131_v39 = vpop.f32.mrf.mxu1 }
 0x2c6   : > { %v2778_v46 = vadd.f32 %v4130_v15, %v5863_v36  ;;  %v3955_v36 = vld [vmem:[%s6136_s6] ss:$0 sm:$0xff] }
 0x2c7   : > { %v4132_v4 = vpop.f32.mrf.mxu1 }
 0x2c8   : > { %v4133_v35 = vadd.f32 %v4132_v4, %v4131_v39  ;;  %v4342_v39 = vpop.f32.mrf.mxu0  ;;  %v2843_v30 = vadd.f32 %v4170_v48, %v2778_v46 }
 0x2c9   : > { %v5889_v29 = vpop.f32.mrf.mxu1 }
 0x2cb   : > { %v4135_v33 = vpop.f32.mrf.mxu1 }
 0x2cc   : > { %v4136_v4 = vadd.f32 %v4135_v33, %v5889_v29 }
 0x2cd   : > { %v4193_v11 = vpop.f32.mrf.mxu1 }
 0x2cf   : > { %v4194_v52 = vpop.f32.mrf.mxu1 }
 0x2d0   : > { %v4195_v32 = vadd.f32 %v4194_v52, %v4193_v11 }
 0x2d1   : > { %v4196_v21 = vpop.f32.mrf.mxu1 }
 0x2d2   : > { %v2889_v51 = vadd.f32 %v4195_v32, %v2824_v53 }
 0x2d3   : > { %v4197_v44 = vpop.f32.mrf.mxu1 }
 0x2d4   : > { %v4198_v56 = vadd.f32 %v4197_v44, %v4196_v21  ;;  %v2954_v52 = vadd.f32 %v2953_v0, %v2889_v51  ;;  %v2840_v0 = vadd.f32 %v4167_v24, %v2775_v27 }
 0x2d5   : > { %v4199_v14 = vpop.f32.mrf.mxu1 }
 0x2d6   : > { %v2892_v59 = vadd.f32 %v4198_v56, %v2827_v40  ;;  %v2991_v57 = vmul.f32 %v5908_v50, %v2954_v52 }
 0x2d7   : > { %v4200_v22 = vpop.f32.mrf.mxu1 }
 0x2d8   : > { %v4201_v61 = vadd.f32 %v4200_v22, %v4199_v14  ;;  %v2957_v25 = vadd.f32 %v2956_v60, %v2892_v59  ;;  %v4173_v14 = vadd.f32 %v5883_v5, %v5881_v63  ;;  %v2972_v60 = vpop.f32.mrf.mxu0 }
 0x2d9   : > { %v4202_v62 = vpop.f32.mrf.mxu1 }
 0x2da   : > { %v2897_v49 = vadd.f32 %v4201_v61, %v2832_v31  ;;  %v2992_v19 = vmul.f32 %v5908_v50, %v2957_v25  ;;  %v4176_v31 = vadd.f32 %v5887_v28, %v5885_v9 }
 0x2db   : > { %v4203_v11 = vpop.f32.mrf.mxu1 }
 0x2dc   : > { %v4204_v12 = vadd.f32 %v4203_v11, %v4202_v62  ;;  %v2962_v54 = vadd.f32 %v4337_v47, %v2897_v49  ;;  %v4093_v47 = vadd.f32 %v5867_v42, %v5865_v45  ;;  %v4096_v45 = vadd.f32 %v5873_v23, %v5869_v58 }
 0x2dd   : > { %v4205_v13 = vpop.f32.mrf.mxu1  ;;  %v5927_v42 = vadd.f32 %v3955_v36, %v2991_v57 }
 0x2de   : > { %v2900_v18 = vadd.f32 %v4204_v12, %v2835_v38  ;;  %v2993_v44 = vmul.f32 %v5908_v50, %v2962_v54  ;;  %v2783_v41 = vadd.f32 %v4133_v35, %v4093_v47  ;;  %v2786_v53 = vadd.f32 %v4136_v4, %v4096_v45  ;;  %v4681_v4 = vld [vmem:[#allocation11 + $0x8] sm:$0xff]  }
 0x2df   : > { %v4206_v43 = vpop.f32.mrf.mxu1  ;;  %v3014_v63 = vmax.f32 %v5927_v42, 0.0  ;;  %4376 = vmatpush3.bf16.msra.mxu0 %v4681_v4 }
 0x2e0   : > { %v2965_v21 = vadd.f32 %v4338_v34, %v2900_v18  ;;  %v4207_v37 = vadd.f32 %v4206_v43, %v4205_v13  ;;  %v5922_v34 = vadd.f32 %v3955_v36, %v2992_v19  ;;  %v5931_v26 = vadd.f32 %v3955_v36, %v2993_v44  ;;  %4377 = vmatprep.subr.bf16.mxu0 %v4977_v7  ;;  %v4685_v7 = vld [vmem:[#allocation12 + $0x30] sm:$0xff]  }
 0x2e1   : > { %v4208_v3 = vpop.f32.mrf.mxu1  ;;  %v2848_v58 = vadd.f32 %v4173_v14, %v2783_v41  ;;  %v2851_v15 = vadd.f32 %v4176_v31, %v2786_v53  ;;  %v4683_v14 = vld [vmem:[#allocation12 + $0x38] sm:$0xff]   ;;  %v4689_v53 = vld [vmem:[#allocation12 + $0x20] sm:$0xff]   ;;  %v5998_v31 = vld [vmem:[#allocation14 + $0x10] sm:$0xff]  }
 0x2e2   : > { %v2905_v16 = vadd.f32 %v4207_v37, %v2840_v0  ;;  %v2994_v56 = vmul.f32 %v5908_v50, %v2965_v21  ;;  %v3015_v59 = vmax.f32 %v5922_v34, 0.0  ;;  %v3016_v61 = vmax.f32 %v5931_v26, 0.0  ;;  %4383 = vmatprep.subr.bf16.mxu1 %v4683_v14 }
 0x2e3   : > { %v4209_v17 = vpop.f32.mrf.mxu1 }
 0x2e4   : > { %v2970_v10 = vadd.f32 %v2969_v8, %v2905_v16  ;;  %v4210_v32 = vadd.f32 %v4209_v17, %v4208_v3  ;;  %v5935_v20 = vadd.f32 %v3955_v36, %v2994_v56  ;;  %v3022_v49 = vadd.f32 %v3015_v59, %v3014_v63 }
 0x2e5   : > { %v4211_v40 = vpop.f32.mrf.mxu1 }
 0x2e6   : > { %v2995_v29 = vmul.f32 %v5908_v50, %v2970_v10  ;;  %v2908_v33 = vadd.f32 %v4210_v32, %v2843_v30  ;;  %v3017_v11 = vmax.f32 %v5935_v20, 0.0  ;;  %v3023_v38 = vadd.f32 %v3022_v49, %v3016_v61  ;;  %v3054_v30 = vld [vmem:[%s6138_s8] sm:$0x1]  ;;  %v6207_v20 = vld [vmem:[#allocation24_spill] sm:$0xff] }
 0x2e7   : > { %v4212_v22 = vpop.f32.mrf.mxu1  ;;  %v4698_v49 = vld [vmem:[#allocation14] sm:$0xff]  }
 0x2e8   : > { %v2973_v55 = vadd.f32 %v2972_v60, %v2908_v33  ;;  %v4213_v23 = vadd.f32 %v4212_v22, %v4211_v40  ;;  %v5941_v51 = vadd.f32 %v3955_v36, %v2995_v29  ;;  %v3024_v24 = vadd.f32 %v3023_v38, %v3017_v11  ;;  %v5979_v29 = vld [vmem:[#allocation14 + $0x38] sm:$0xff]   ;;  %v5983_v33 = vld [vmem:[#allocation14 + $0x30] sm:$0xff]   ;;  %v4687_v60 = vld [vmem:[#allocation12 + $0x28] sm:$0xff]  }
 0x2e9   : > { %v4214_v5 = vpop.f32.mrf.mxu1  ;;  %v5990_v22 = vld [vmem:[#allocation14 + $0x20] sm:$0xff]  }
 0x2ea   : > { %v2996_v62 = vmul.f32 %v5908_v50, %v2973_v55  ;;  %v2913_v2 = vadd.f32 %v4213_v23, %v2848_v58  ;;  %v3018_v12 = vmax.f32 %v5941_v51, 0.0  ;;  %v4691_v55 = vld [vmem:[#allocation12 + $0x18] sm:$0xff]   ;;  %v4693_v23 = vld [vmem:[#allocation12 + $0x10] sm:$0xff]  }
 0x2eb   : > { %v4215_v25 = vpop.f32.mrf.mxu1  ;;  %v5994_v58 = vld [vmem:[#allocation14 + $0x18] sm:$0xff]  }
 0x2ec   : > { %v5949_v9 = vadd.f32 %v3955_v36, %v2996_v62  ;;  %v2978_v28 = vadd.f32 %v5900_v1, %v2913_v2  ;;  %v4216_v27 = vadd.f32 %v4215_v25, %v4214_v5  ;;  %v3025_v1 = vadd.f32 %v3024_v24, %v3018_v12  ;;  %v4695_v5 = vld [vmem:[#allocation12 + $0x8] sm:$0xff]   ;;  %v4697_v2 = vld [vmem:[#allocation12] sm:$0xff]  }
 0x2ed   : > { %v4696_v62 = vld [vmem:[#allocation14 + $0x8] sm:$0xff]   ;;  %v3161_v25 = vld [vmem:[%s6140_s10] sm:$0x1] }
 0x2ee   : > { %v2997_v52 = vmul.f32 %v5908_v50, %v2978_v28  ;;  %v2916_v13 = vadd.f32 %v4216_v27, %v2851_v15  ;;  %v3019_v54 = vmax.f32 %v5949_v9, 0.0  ;;  %v6206_v15 = vld [vmem:[#allocation23_spill] sm:$0xff] }
 0x2f0   : > { %v5959_v18 = vadd.f32 %v3955_v36, %v2997_v52  ;;  %v2981_v8 = vadd.f32 %v4342_v39, %v2916_v13  ;;  %v3026_v43 = vadd.f32 %v3025_v1, %v3019_v54 }
 0x2f2   : > { %v3020_v46 = vmax.f32 %v5959_v18, 0.0  ;;  %v2998_v19 = vmul.f32 %v5908_v50, %v2981_v8  ;;  %v6049_v18 = vld [vmem:[%s6209_s30] ss:$0 sm:$0xff]  ;;  %s4891_s30 = sshll.u32 %s4979_s0, 4  ;;  %s4892_s30 = int_to_ptr.vmem [resolvable:$false] %s4891_s30 }
 0x2f3   : > { %s4893_s28 = scalar_lea.vmem %s4892_s30, 2048  ;;  %p4894_p13 = scmp.lt.s32.totalorder %s6085_s26, %s4892_s30 }
 0x2f4   : > { %v5967_v35 = vadd.f32 %v3955_v36, %v2998_v19  ;;  %v3027_v21 = vadd.f32 %v3026_v43, %v3020_v46  ;;  %v4682_v36 = vld [vmem:[#allocation11] sm:$0xff]   ;;  %v3256_v19 = vlaneseq  ;;  %p4895_p5 = scmp.lt.s32.totalorder %s4893_s28, %s4887_s14 }
 0x2f5   : > { %4378 = vmatpush3.bf16.msra.mxu0 %v4682_v36  ;;  %v3982_v36 = vld [vmem:[%s6210_s18] ss:$0 sm:$0xff] }
 0x2f6   : > { %v3021_v0 = vmax.f32 %v5967_v35, 0.0  ;;  %4407 = vmatprep.subr.bf16.mxu0 %v5979_v29  ;;  %v3257_v43 = vshrl.u32 %v3256_v19, 7  ;;  %p4896_p1 = por %p4895_p5, %p4894_p13 }
 0x2f8   : > { %v3028_v37 = vadd.f32 %v3027_v21, %v3021_v0  ;;  %v3258_v21 = vsub.s32 0, %v3257_v43  ;;  %p4897_p3 = pnand %p4896_p1, %p4890_p11 }
 0x2fa   : > { %v3029_v48 = vrot.slane %v3028_v37, 4 }
 0x2fc   : > { %v3030_v57 = vadd.f32 %v3029_v48, %v3028_v37 }
 0x2fe   : > { %v3031_v3 = vrot.slane %v3030_v57, 2 }
 0x300   : > { %v3032_v47 = vadd.f32 %v3031_v3, %v3030_v57 }
 0x302   : > { %v3033_v44 = vrot.slane %v3032_v47, 1 }
 0x304   : > { %v3034_v16 = vadd.f32 %v3033_v44, %v3032_v47 }
 0x306   : > { %v3036_v50 = vmul.f32 0.015625, %v3034_v16 }
 0x308   : > { %v3037_v39 = vpack.c.bf16 %v3036_v50, %v3036_v50 }
 0x30a   : > { %4360 = vmatmul.mubr.bf16.vlgmr.msra.gmra.mxu1 %v3037_v39 }
 0x30b   : > { %4384 = vmatpush3.bf16.msra.mxu1 %v4683_v14 }
 0x30c   : > { %4385 = vmatprep.subr.bf16.mxu1 %v4685_v7 }
 0x30f   : > { %4386 = vmatpush3.bf16.msra.mxu1 %v4685_v7 }
 0x310   : > { %4387 = vmatprep.subr.bf16.mxu1 %v4687_v60 }
 0x313   : > { %4388 = vmatpush3.bf16.msra.mxu1 %v4687_v60 }
 0x314   : > { %4389 = vmatprep.subr.bf16.mxu1 %v4689_v53 }
 0x317   : > { %4390 = vmatpush3.bf16.msra.mxu1 %v4689_v53 }
 0x318   : > { %4391 = vmatprep.subr.bf16.mxu1 %v4691_v55 }
 0x31b   : > { %4392 = vmatpush3.bf16.msra.mxu1 %v4691_v55 }
 0x31c   : > { %4393 = vmatprep.subr.bf16.mxu1 %v4693_v23 }
 0x31f   : > { %4394 = vmatpush3.bf16.msra.mxu1 %v4693_v23 }
 0x320   : > { %4395 = vmatprep.subr.bf16.mxu1 %v4695_v5 }
 0x323   : > { %4396 = vmatpush3.bf16.msra.mxu1 %v4695_v5 }
 0x324   : > { %4397 = vmatprep.subr.bf16.mxu1 %v4697_v2 }
 0x327   : > { %4398 = vmatpush3.bf16.msra.mxu1 %v4697_v2 }
 0x328   : > { %4431 = vmatprep.subr.bf16.mxu1 %v5979_v29 }
 0x3ca   : > { %v3137_v17 = vpop.f32.mrf.mxu1 }
 0x3cb   : > { %v3138_v41 = vadd.f32 %v3137_v17, %v3054_v30 }
 0x3cc   : > { %v4361_v56 = vpop.f32.mrf.mxu1 }
 0x3cd   : > { %v3143_v10 = vmax.f32 %v3138_v41, 0.0 }
 0x3ce   : > { %v3140_v32 = vpop.f32.mrf.mxu1 }
 0x3cf   : > { %v3144_v45 = vpack.c.bf16 %v3143_v10, %v3143_v10 }
 0x3d0   : > { %v4362_v40 = vpop.f32.mrf.mxu1 }
 0x3d1   : > { %4380 = vmatmul.mubr.bf16.vlgmr.msra.gmra.mxu0 %v3144_v45 }
 0x3d2   : > { %4423 = vmatprep.mubr.bf16.mxu0 %v5289_v6  ;;  %4408 = vmatpush3.bf16.msra.mxu0 %v5979_v29  ;;  %v5987_v6 = vld [vmem:[#allocation14 + $0x28] sm:$0xff]  }
 0x3d3   : > { %4409 = vmatprep.subr.bf16.mxu0 %v5983_v33 }
 0x3d6   : > { %4410 = vmatpush3.bf16.msra.mxu0 %v5983_v33 }
 0x3d7   : > { %4411 = vmatprep.subr.bf16.mxu0 %v5987_v6 }
 0x3da   : > { %4412 = vmatpush3.bf16.msra.mxu0 %v5987_v6 }
 0x3db   : > { %4413 = vmatprep.subr.bf16.mxu0 %v5990_v22 }
 0x3de   : > { %4414 = vmatpush3.bf16.msra.mxu0 %v5990_v22 }
 0x3df   : > { %4415 = vmatprep.subr.bf16.mxu0 %v5994_v58 }
 0x3e2   : > { %4416 = vmatpush3.bf16.msra.mxu0 %v5994_v58 }
 0x3e3   : > { %4417 = vmatprep.subr.bf16.mxu0 %v5998_v31 }
 0x3e6   : > { %4418 = vmatpush3.bf16.msra.mxu0 %v5998_v31 }
 0x3e7   : > { %4419 = vmatprep.subr.bf16.mxu0 %v4696_v62 }
 0x3ea   : > { %4420 = vmatpush3.bf16.msra.mxu0 %v4696_v62 }
 0x3eb   : > { %4421 = vmatprep.subr.bf16.mxu0 %v4698_v49 }
 0x3ee   : > { %4422 = vmatpush3.bf16.msra.mxu0 %v4698_v49 }
 0x3f1   : > { %4424 = vmatmul.mubr.bf16.vlgmr.msra.gmra.mxu0 %v6206_v15 }
 0x491   : > { %v3244_v28 = vpop.f32.mrf.mxu0 }
 0x492   : > { %v3245_v27 = vadd.f32 %v3244_v28, %v3161_v25 }
 0x493   : > { %v4381_v38 = vpop.f32.mrf.mxu0 }
 0x494   : > { %v3972_v52 = vmul.f32 -1.442695, %v3245_v27 }
 0x495   : > { %v3247_v13 = vpop.f32.mrf.mxu0 }
 0x496   : > { %4699 = vpow2.f32 %v3972_v52 }
 0x497   : > { %v4382_v24 = vpop.f32.mrf.mxu0 }
 0x4a3   : > { %v4700_v8 = vpop.eup %4699 }
 0x4a4   : > { %v3253_v1 = vadd.f32 1.0, %v4700_v8 }
 0x4a6   : > { %4701 = vrcp.f32 %v3253_v1 }
 0x4b3   : > { %v4702_v37 = vpop.eup %4701 }
 0x4b4   : > { %v3259_v48 = vrot.slane %v4702_v37, %v3258_v21 }
 0x4b6   : > { %v3260_v57 = vmul.f32 %v3259_v48, %v3014_v63  ;;  %v3261_v3 = vmul.f32 %v3259_v48, %v3015_v59  ;;  %v3262_v47 = vmul.f32 %v3259_v48, %v3016_v61  ;;  %v3263_v44 = vmul.f32 %v3259_v48, %v3017_v11  ;;  %v6208_v63 = vld [vmem:[#allocation25_spill] sm:$0xff]  ;;  %v4425_v61 = vpop.f32.mrf.mxu0  ;;  %v6040_v11 = vld [vmem:[%s6145_s15] ss:$0 sm:$0xff] }
 0x4b7   : > { %v3264_v16 = vmul.f32 %v3259_v48, %v3018_v12  ;;  %v3265_v50 = vmul.f32 %v3259_v48, %v3019_v54  ;;  %v3266_v34 = vmul.f32 %v3259_v48, %v3020_v46  ;;  %v3267_v26 = vmul.f32 %v3259_v48, %v3021_v0  ;;  %v3981_v54 = vld [vmem:[%s6142_s12] ss:$0 sm:$0xff] }
 0x4b8   : > { %v3268_v39 = vpack.c.bf16 %v3261_v3, %v3260_v57  ;;  %v3269_v4 = vpack.c.bf16 %v3263_v44, %v3262_v47  ;;  %v3529_v51 = vpop.f32.mrf.mxu0  ;;  %v3569_v12 = vmul.f32 %v4425_v61, %v6040_v11 }
 0x4b9   : > { %v3270_v42 = vpack.c.bf16 %v3265_v50, %v3264_v16  ;;  %v3271_v59 = vpack.c.bf16 %v3267_v26, %v3266_v34  ;;  %v3567_v46 = vmul.f32 %v6040_v11, %v3529_v51 }
 0x4ba   : > { %4399 = vmatprep.mubr.bf16.mxu1 %v3268_v39  ;;  %v4426_v9 = vpop.f32.mrf.mxu0  ;;  %v3584_v17 = vadd.f32 %v6049_v18, %v3569_v12 }
 0x4bb   : > { %4400 = vmatmul.mubr.bf16.vlgmr.msra.gmra.mxu1 %v3269_v4  ;;  %v3570_v41 = vmul.f32 %v4426_v9, %v6040_v11  ;;  %v3582_v40 = vadd.f32 %v6049_v18, %v3567_v46 }
 0x4bc   : > { %4439 = vmatpush3.bf16.msra.mxu1 %v5979_v29  ;;  %4403 = vmatprep.mubr.bf16.mxu1 %v3270_v42  ;;  %v3532_v35 = vpop.f32.mrf.mxu0 }
 0x4bd   : > { %4432 = vmatprep.subr.bf16.mxu1 %v5983_v33  ;;  %v3568_v10 = vmul.f32 %v6040_v11, %v3532_v35  ;;  %v3585_v60 = vadd.f32 %v6049_v18, %v3570_v41 }
 0x4bf   : > { %v3583_v53 = vadd.f32 %v6049_v18, %v3568_v10 }
 0x4c0   : > { %4440 = vmatpush3.bf16.msra.mxu1 %v5983_v33 }
 0x4c1   : > { %4433 = vmatprep.subr.bf16.mxu1 %v5987_v6 }
 0x4c3   : > { %4404 = vmatmul.mubr.bf16.gmra.mxu1 %v3271_v59 }
 0x4c4   : > { %4441 = vmatpush3.bf16.msra.mxu1 %v5987_v6  ;;  %4427 = vmatprep.mubr.bf16.mxu1 %v6207_v20 }
 0x4c5   : > { %4434 = vmatprep.subr.bf16.mxu1 %v5990_v22 }
 0x4c8   : > { %4442 = vmatpush3.bf16.msra.mxu1 %v5990_v22 }
 0x4c9   : > { %4435 = vmatprep.subr.bf16.mxu1 %v5994_v58 }
 0x4cc   : > { %4443 = vmatpush3.bf16.msra.mxu1 %v5994_v58 }
 0x4cd   : > { %4436 = vmatprep.subr.bf16.mxu1 %v5998_v31 }
 0x4d0   : > { %4444 = vmatpush3.bf16.msra.mxu1 %v5998_v31 }
 0x4d1   : > { %4437 = vmatprep.subr.bf16.mxu1 %v4696_v62 }
 0x4d4   : > { %4445 = vmatpush3.bf16.msra.mxu1 %v4696_v62 }
 0x4d5   : > { %4438 = vmatprep.subr.bf16.mxu1 %v4698_v49 }
 0x4d8   : > { %4446 = vmatpush3.bf16.msra.mxu1 %v4698_v49 }
 0x4db   : > { %4428 = vmatmul.mubr.bf16.vlgmr.msra.gmra.mxu1 %v6208_v63 }
 0x57b   : > { %v4401_v0 = vpop.f32.mrf.mxu1 }
 0x57c   : > { %v3410_v30 = vmul.f32 %v4401_v0, %v3981_v54 }
 0x57d   : > { %v3370_v56 = vpop.f32.mrf.mxu1 }
 0x57e   : > { %v3425_v32 = vadd.f32 %v3982_v36, %v3410_v30  ;;  %v3408_v45 = vmul.f32 %v3981_v54, %v3370_v56 }
 0x57f   : > { %v4402_v14 = vpop.f32.mrf.mxu1 }
 0x580   : > { %v3592_v29 = vadd.f32 %v3584_v17, %v3425_v32  ;;  %v3423_v7 = vadd.f32 %v3982_v36, %v3408_v45  ;;  %v3411_v33 = vmul.f32 %v4402_v14, %v3981_v54 }
 0x581   : > { %v3373_v6 = vpop.f32.mrf.mxu1 }
 0x582   : > { %v3600_v22 = vmax.f32 %v3592_v29, 0.0  ;;  %v3590_v55 = vadd.f32 %v3582_v40, %v3423_v7  ;;  %v3426_v58 = vadd.f32 %v3982_v36, %v3411_v33  ;;  %v3409_v23 = vmul.f32 %v3981_v54, %v3373_v6 }
 0x583   : > { %v4405_v25 = vpop.f32.mrf.mxu1 }
 0x584   : > { %3608 = vst [vmem:[%s6062_s23 + $0x10] sm:$0xff] %v3600_v22  ;;  %v3598_v31 = vmax.f32 %v3590_v55, 0.0  ;;  %v3593_v5 = vadd.f32 %v3585_v60, %v3426_v58  ;;  %v3424_v62 = vadd.f32 %v3982_v36, %v3409_v23  ;;  %v3414_v52 = vmul.f32 %v4405_v25, %v3981_v54 }
 0x585   : > { %v3386_v28 = vpop.f32.mrf.mxu1 }
 0x586   : > { %3606 = vst [vmem:[%s6062_s23] sm:$0xff] %v3598_v31  ;;  %v3601_v2 = vmax.f32 %v3593_v5, 0.0  ;;  %v3591_v49 = vadd.f32 %v3583_v53, %v3424_v62  ;;  %v3412_v13 = vmul.f32 %v3981_v54, %v3386_v28  ;;  %v3429_v43 = vadd.f32 %v3982_v36, %v3414_v52 }
 0x587   : > { %v4406_v27 = vpop.f32.mrf.mxu1 }
 0x588   : > { %3609 = vst [vmem:[%s6062_s23 + $0x18] sm:$0xff] %v3601_v2  ;;  %v3599_v15 = vmax.f32 %v3591_v49, 0.0  ;;  %v3415_v1 = vmul.f32 %v4406_v27, %v3981_v54  ;;  %v3427_v48 = vadd.f32 %v3982_v36, %v3412_v13 }
 0x589   : > { %v3389_v38 = vpop.f32.mrf.mxu1 }
 0x58a   : > { %3607 = vst [vmem:[%s6062_s23 + $0x8] sm:$0xff] %v3599_v15  ;;  %v3413_v3 = vmul.f32 %v3981_v54, %v3389_v38  ;;  %v3430_v50 = vadd.f32 %v3982_v36, %v3415_v1 }
 0x58c   : > { %v3428_v59 = vadd.f32 %v3982_v36, %v3413_v3 }
 0x59b   : > { %v4429_v24 = vpop.f32.mrf.mxu1 }
 0x59c   : > { %v3573_v8 = vmul.f32 %v4429_v24, %v6040_v11 }
 0x59d   : > { %v3545_v19 = vpop.f32.mrf.mxu1 }
 0x59e   : > { %v3588_v21 = vadd.f32 %v6049_v18, %v3573_v8  ;;  %v3571_v37 = vmul.f32 %v6040_v11, %v3545_v19 }
 0x59f   : > { %v4430_v57 = vpop.f32.mrf.mxu1 }
 0x5a0   : > { %v3596_v47 = vadd.f32 %v3588_v21, %v3429_v43  ;;  %v3586_v44 = vadd.f32 %v6049_v18, %v3571_v37  ;;  %v3574_v16 = vmul.f32 %v4430_v57, %v6040_v11 }
 0x5a1   : > { %v3548_v39 = vpop.f32.mrf.mxu1 }
 0x5a2   : > { %v3604_v4 = vmax.f32 %v3596_v47, 0.0  ;;  %v3594_v42 = vadd.f32 %v3586_v44, %v3427_v48  ;;  %v3589_v34 = vadd.f32 %v6049_v18, %v3574_v16  ;;  %v3572_v26 = vmul.f32 %v6040_v11, %v3548_v39 }
 0x5a4   : > { %3612 = vst [vmem:[%s6062_s23 + $0x30] sm:$0xff] %v3604_v4  ;;  %v3602_v20 = vmax.f32 %v3594_v42, 0.0  ;;  %v3597_v63 = vadd.f32 %v3589_v34, %v3430_v50  ;;  %v3587_v61 = vadd.f32 %v6049_v18, %v3572_v26 }
 0x5a6   : > { %3610 = vst [vmem:[%s6062_s23 + $0x20] sm:$0xff] %v3602_v20  ;;  %v3605_v51 = vmax.f32 %v3597_v63, 0.0  ;;  %v3595_v9 = vadd.f32 %v3587_v61, %v3428_v59 }
 0x5a8   : > { %3613 = vst [vmem:[%s6062_s23 + $0x38] sm:$0xff] %v3605_v51  ;;  %v3603_v11 = vmax.f32 %v3595_v9, 0.0 }
 0x5aa   : > { %3611 = vst [vmem:[%s6062_s23 + $0x28] sm:$0xff] %v3603_v11 }
 0x5ab   : > { %4900 = shalt.err (!%p4897_p3)
}
 0x5ac   : > { %s4901_s20 = scalar_lea.hbm %s6083_s9, 1024  ;;  %s4905_s23 = scalar_lea.hbm %s6211_s7, 2048 }
 0x5ad   : > { %p4902_p4 = scmp.ne.s32.totalorder %s6083_s9, %s4901_s20  ;;  %p4906_p0 = scmp.lt.s32.totalorder %s6083_s9, %s6211_s7 }
 0x5ae   : > { %p4907_p7 = scmp.lt.s32.totalorder %s4905_s23, %s4901_s20 }
 0x5af   : > { %p4903_p6 = pnand %p4902_p4, %p6212_p8 }
 0x5b0   : > { %p4908_p2 = por %p4907_p7, %p4906_p0 }
 0x5b1   : > { %p4904_p12 = pneg %p4903_p6 }
 0x5b3   : > { %p4909_p9 = pnand %p4908_p2, %p4904_p12 }
 0x5b5   : > { %4912 = shalt.err (!%p4909_p9)
}
 0x5b6   : > { %s4980_s1 = smov 128   ;;  %s4981_s14 = smov 8  }
 0x5b7   : > { %4473 = dma.vmem_to_hbm [thread:$0]  (%p6212_p8), %s6085_s26, 1024, %s6083_s9, %s3615_s11, %s4980_s1, %s4980_s1, %s4981_s14  }
 0x5b8 PF: > { %s3643_s0 = sand.u32 1, %s4951_s24   ;;  %p6213_p10 = scmp.ne.s32.totalorder %s6182_s21, 0 }
 0x5b9   : > { %p6214_p11 = scmp.ge.s32.totalorder %s4963_s27, 2  ;;  %s3644_s30 = scalar_lea.sflag [#allocation5], %s3643_s0 }
 0x5bb   : > { %p4499_p13 = pnand %p6214_p11, %p6213_p10 }
 0x5bd   : > { %p4500_p5 = pneg %p4499_p13 }
 0x5bf   : > { %4946 = dma.done.wait (%p4500_p5), %s3644_s30, 1024  }
 0x5c0   : > { %4948 = vsyncadd (%p4500_p5), %s3644_s30, 4294966272  ;;  %s6215_s28 = sld [smem:[#allocation21_spill]]  ;;  %p33_p1 = scmp.ge.s32.totalorder %s5193_s22, 4  }
 0x5c1   : > { %s6216_s26 = sld [smem:[#allocation22_spill]]  ;;  %s6217_s24 = smov %s4955_s25 }
 0x5c2   : > { %s6219_s27 = smov %s5193_s22  ;;  %35 = sbr.rel (!%p33_p1) target bundleno = 19 (0x13), region = 168 }
 0x5c6   : > { %s6218_s25 = smov %s6215_s28 }
 0x5c7   :  { %3649 = vsyncpa [#allocation4], 1 }
 0x5c8   :  { %3651 = vsyncpa [#allocation4 + $0x1], 1 }
 0x5c9   :  { %3652 = vsyncpa [#allocation7], 1 }
 0x5ca   :  { %3653 = vsyncpa [#allocation10], 1 }
 0x5cb   :  { %3654 = vsyncpa [#allocation13], 1 }
 0x5cc   :  { %3655 = vsyncpa [#allocation5], 1 }
 0x5cd   :  { %3657 = vsyncpa [#allocation5 + $0x1], 1 }

</bundles_post_ra>
